<compile_context>
chip_gen: v7x
topology: tpu7x:2x2x1
jax: 0.10.0
libtpu: 0.0.40
codegen_flags: <defaults>
</compile_context>

<pallas_src>
import functools
import math

import jax
import jax.numpy as jnp
from jax.experimental import pallas as pl
from jax.experimental.pallas import tpu as pltpu

IN_F = 512
HID1 = 2048
HID2 = 1024
TK = 1024  # HID1 block streamed per grid step (W1 columns / W2 rows)


def gcnet_img_kernel(x_ref, adj_ref, wadj_ref, w1_ref, w2_ref, w3_ref, b3_ref,
                     out_ref, acc_ref, adj_scr, z_scr, *, gamma, alpha):
    k = pl.program_id(0)

    @pl.when(k == 0)
    def _():
        acc_ref[...] = jnp.zeros_like(acc_ref)
        # Effective adjacency and z = adj' @ x computed once, kept resident in
        # VMEM scratch for all K steps (z stored bf16 for the W1 matmul).
        adj_eff = adj_ref[...] + gamma * wadj_ref[...]
        adj_scr[...] = adj_eff
        z = jnp.dot(adj_eff, x_ref[...], preferred_element_type=jnp.float32)
        z_scr[...] = z.astype(jnp.bfloat16)

    adj_eff = adj_scr[...]

    # gc1: columns [k*TK, (k+1)*TK) of h1 (relu is elementwise -> slice-safe).
    h1_k = jnp.maximum(
        jnp.dot(z_scr[...], w1_ref[...],
                preferred_element_type=jnp.float32), 0.0)

    # gc2 pre-activation accumulated over the HID1 contraction:
    #   adj' @ h1 @ W2 = sum_k (adj' @ h1_k) @ W2[k-rows, :]
    t_k = jnp.dot(adj_eff, h1_k, preferred_element_type=jnp.float32)
    acc_ref[...] += jnp.dot(t_k.astype(jnp.bfloat16), w2_ref[...],
                            preferred_element_type=jnp.float32)

    @pl.when(k == pl.num_programs(0) - 1)
    def _():
        h2 = jnp.maximum(acc_ref[...], 0.0)
        y = jnp.dot(h2, w3_ref[...],
                    preferred_element_type=jnp.float32) + b3_ref[...]
        out_ref[...] = jnp.tanh(alpha * y)


def gcnet_img_forward(x, adj, w_adj, w1, w2, w3, b3, *, gamma, alpha=1.0):
    n = x.shape[0]
    bit = w3.shape[1]
    n_steps = HID1 // TK

    # One-time retile so each streamed (IN_F, TK) W1 block is a CONTIGUOUS HBM
    # slab: w1_tiled[k] == w1[:, k*TK:(k+1)*TK].  (In a real model, store W1
    # in this tiled layout so this transpose is not paid per call.)
    w1_tiled = w1.reshape(IN_F, n_steps, TK).transpose(1, 0, 2)

    kernel = functools.partial(gcnet_img_kernel, gamma=gamma, alpha=alpha)

    flops = 2 * n * (n * IN_F + IN_F * HID1 + n * HID1 + HID1 * HID2
                     + HID2 * bit)
    bytes_accessed = (w1.size * w1.dtype.itemsize
                      + w2.size * w2.dtype.itemsize
                      + w3.size * w3.dtype.itemsize
                      + x.size * 4 + 2 * n * n * 4 + bit * 4 + n * bit * 4)

    grid_spec = pltpu.PrefetchScalarGridSpec(
        num_scalar_prefetch=0,
        grid=(n_steps,),
        in_specs=[
            pl.BlockSpec((n, IN_F), lambda k: (0, 0)),       # x      (resident)
            pl.BlockSpec((n, n), lambda k: (0, 0)),          # adj    (resident)
            pl.BlockSpec((n, n), lambda k: (0, 0)),          # w_adj  (resident)
            pl.BlockSpec((None, IN_F, TK), lambda k: (k, 0, 0)),  # W1 tile
            pl.BlockSpec((TK, HID2), lambda k: (k, 0)),      # W2 row block
            pl.BlockSpec((HID2, bit), lambda k: (0, 0)),     # W3     (resident)
            pl.BlockSpec((1, bit), lambda k: (0, 0)),        # b3     (resident)
        ],
        out_specs=pl.BlockSpec((n, bit), lambda k: (0, 0)),
        scratch_shapes=[
            pltpu.VMEM((n, HID2), jnp.float32),    # gc2 pre-act accumulator
            pltpu.VMEM((n, n), jnp.float32),       # adj' (resident)
            pltpu.VMEM((n, IN_F), jnp.bfloat16),   # z = adj' @ x (resident)
        ],
    )

    return pl.pallas_call(
        kernel,
        out_shape=jax.ShapeDtypeStruct((n, bit), jnp.float32),
        grid_spec=grid_spec,
        compiler_params=pltpu.CompilerParams(
            dimension_semantics=("arbitrary",),
            vmem_limit_bytes=32 << 20,
        ),
        cost_estimate=pl.CostEstimate(
            flops=flops,
            transcendentals=n * bit,
            bytes_accessed=bytes_accessed,
        ),
    )(x, adj, w_adj, w1_tiled, w2, w3, b3)


def init_params(key, batch_size, bit):
    k1, k2, k3, k4, k5, k6 = jax.random.split(key, 6)

    # gc1 / gc2 weights: xavier_normal_, stored bf16 (f32-accumulated matmuls)
    def xavier_normal(k, fan_in, fan_out):
        std = math.sqrt(2.0 / (fan_in + fan_out))
        return std * jax.random.normal(k, (fan_in, fan_out), jnp.float32)

    w1 = xavier_normal(k1, IN_F, HID1).astype(jnp.bfloat16)
    w2 = xavier_normal(k2, HID1, HID2).astype(jnp.bfloat16)

    # nn.Linear(1024, bit): kaiming-uniform-ish weight, uniform bias (tiny; f32)
    bound_w = math.sqrt(1.0 / HID2)
    w3 = jax.random.uniform(k3, (HID2, bit), jnp.float32, -bound_w, bound_w)
    b3 = jax.random.uniform(k4, (1, bit), jnp.float32, -bound_w, bound_w)

    # adjacency-correction weight: kaiming_uniform_
    bound_a = math.sqrt(6.0 / batch_size)
    w_adj = jax.random.uniform(k5, (batch_size, batch_size), jnp.float32,
                               -bound_a, bound_a)
    return w_adj, w1, w2, w3, b3, k6


def reference_forward(x, adj, w_adj, w1, w2, w3, b3, *, gamma, alpha=1.0):
    # Pure-JAX reference mirroring the kernel's bf16-input / f32-accumulate
    # matmuls (only the HID1 block-accumulation order differs).  NOTE: this
    # validates the kernel implementation; the bf16 activation casts are a
    # documented, accepted deviation from exact f32 torch numerics.
    adj_eff = adj + gamma * w_adj
    z = jnp.dot(adj_eff, x, preferred_element_type=jnp.float32)
    h1 = jnp.maximum(jnp.dot(z.astype(jnp.bfloat16), w1,
                             preferred_element_type=jnp.float32), 0.0)
    t = jnp.dot(adj_eff, h1, preferred_element_type=jnp.float32)
    h2 = jnp.maximum(jnp.dot(t.astype(jnp.bfloat16), w2,
                             preferred_element_type=jnp.float32), 0.0)
    y = jnp.dot(h2, w3, preferred_element_type=jnp.float32) + b3
    return jnp.tanh(alpha * y)


if __name__ == "__main__":
    batch_size = 8
    bit = 16
    gamma = 0.5
    alpha = 1.0

    key = jax.random.PRNGKey(0)
    w_adj, w1, w2, w3, b3, key = init_params(key, batch_size, bit)

    kx, kadj = jax.random.split(key)
    x = jax.random.normal(kx, (batch_size, IN_F), jnp.float32)
    adj = jax.random.uniform(kadj, (batch_size, batch_size), jnp.float32)
    adj = 0.5 * (adj + adj.T)  # symmetric-ish adjacency

    out = gcnet_img_forward(x, adj, w_adj, w1, w2, w3, b3,
                            gamma=gamma, alpha=alpha)
    out = jax.block_until_ready(out)

    ref = reference_forward(x, adj, w_adj, w1, w2, w3, b3,
                            gamma=gamma, alpha=alpha)
    assert out.shape == (batch_size, bit)
    err = float(jnp.max(jnp.abs(out - ref)))
    assert jnp.allclose(out, ref, atol=2e-3, rtol=2e-3), err

    print("KERNEL_OK")
</pallas_src>

<mosaic_0001>
module attributes {stable_mosaic.version = 11 : i64} {
  func.func @gcnet_img_kernel(%arg0: i32, %arg1: memref<8x512xf32, #tpu.memory_space<vmem>>, %arg2: memref<8x8xf32, #tpu.memory_space<vmem>>, %arg3: memref<8x8xf32, #tpu.memory_space<vmem>>, %arg4: memref<1x512x1024xbf16, #tpu.memory_space<vmem>>, %arg5: memref<1024x1024xbf16, #tpu.memory_space<vmem>>, %arg6: memref<1024x16xf32, #tpu.memory_space<vmem>>, %arg7: memref<1x16xf32, #tpu.memory_space<vmem>>, %arg8: memref<8x16xf32, #tpu.memory_space<vmem>>, %arg9: memref<8x1024xf32, #tpu.memory_space<vmem>>, %arg10: memref<8x8xf32, #tpu.memory_space<vmem>>, %arg11: memref<8x512xbf16, #tpu.memory_space<vmem>>) attributes {dimension_semantics = [#tpu.dimension_semantics<arbitrary>], iteration_bounds = array<i64: 2>, scalar_prefetch = 0 : i64, scratch_operands = 3 : i64, tpu.core_type = #tpu.core_type<tc>, window_params = [{pipeline_mode = #tpu.pipeline_mode<synchronous>, transform_indices = @transform_0, window_bounds = array<i64: 8, 512>}, {pipeline_mode = #tpu.pipeline_mode<synchronous>, transform_indices = @transform_1, window_bounds = array<i64: 8, 8>}, {pipeline_mode = #tpu.pipeline_mode<synchronous>, transform_indices = @transform_2, window_bounds = array<i64: 8, 8>}, {transform_indices = @transform_3, window_bounds = array<i64: 1, 512, 1024>}, {transform_indices = @transform_4, window_bounds = array<i64: 1024, 1024>}, {pipeline_mode = #tpu.pipeline_mode<synchronous>, transform_indices = @transform_5, window_bounds = array<i64: 1024, 16>}, {pipeline_mode = #tpu.pipeline_mode<synchronous>, transform_indices = @transform_6, window_bounds = array<i64: 1, 16>}, {pipeline_mode = #tpu.pipeline_mode<synchronous>, transform_indices = @transform_7, window_bounds = array<i64: 8, 16>}]} {
    %c0_i32 = arith.constant 0 : i32
    %0 = arith.cmpi eq, %arg0, %c0_i32 : i32
    %1 = arith.extui %0 : i1 to i32
    %c0_i32_0 = arith.constant 0 : i32
    %2 = arith.cmpi ne, %1, %c0_i32_0 : i32
    scf.if %2 {
      %cst_17 = arith.constant 0.000000e+00 : f32
      %20 = vector.broadcast %cst_17 : f32 to vector<8x1024xf32>
      %c0_18 = arith.constant 0 : index
      %c0_19 = arith.constant 0 : index
      %21 = vector.load %arg9[%c0_18, %c0_19] : memref<8x1024xf32, #tpu.memory_space<vmem>>, vector<8x1024xf32>
      tpu.vector_store %arg9[%c0_18, %c0_19], %20 {strides = array<i32>} : memref<8x1024xf32, #tpu.memory_space<vmem>>, vector<8x1024xf32>,
      %c0_20 = arith.constant 0 : index
      %c0_21 = arith.constant 0 : index
      %22 = vector.load %arg2[%c0_20, %c0_21] : memref<8x8xf32, #tpu.memory_space<vmem>>, vector<8x8xf32>
      %c0_22 = arith.constant 0 : index
      %c0_23 = arith.constant 0 : index
      %23 = vector.load %arg3[%c0_22, %c0_23] : memref<8x8xf32, #tpu.memory_space<vmem>>, vector<8x8xf32>
      %cst_24 = arith.constant 5.000000e-01 : f32
      %24 = vector.broadcast %cst_24 : f32 to vector<8x8xf32>
      %25 = arith.mulf %24, %23 : vector<8x8xf32>
      %26 = arith.addf %22, %25 : vector<8x8xf32>
      %c0_25 = arith.constant 0 : index
      %c0_26 = arith.constant 0 : index
      %27 = vector.load %arg10[%c0_25, %c0_26] : memref<8x8xf32, #tpu.memory_space<vmem>>, vector<8x8xf32>
      tpu.vector_store %arg10[%c0_25, %c0_26], %26 {strides = array<i32>} : memref<8x8xf32, #tpu.memory_space<vmem>>, vector<8x8xf32>,
      %c0_27 = arith.constant 0 : index
      %c0_28 = arith.constant 0 : index
      %28 = vector.load %arg1[%c0_27, %c0_28] : memref<8x512xf32, #tpu.memory_space<vmem>>, vector<8x512xf32>
      %cst_29 = arith.constant dense<0.000000e+00> : vector<8x512xf32>
      %29 = tpu.matmul %26, %28, %cst_29 {dimension_numbers = #tpu.dot_dimension_numbers<[1], [0], [0], [1], [0, 0, 1, 1], [], []>} : vector<8x8xf32>, vector<8x512xf32>, vector<8x512xf32> -> vector<8x512xf32>
      %30 = arith.truncf %29 : vector<8x512xf32> to vector<8x512xbf16>
      %c0_30 = arith.constant 0 : index
      %c0_31 = arith.constant 0 : index
      %31 = vector.load %arg11[%c0_30, %c0_31] : memref<8x512xbf16, #tpu.memory_space<vmem>>, vector<8x512xbf16>
      tpu.vector_store %arg11[%c0_30, %c0_31], %30 {strides = array<i32>} : memref<8x512xbf16, #tpu.memory_space<vmem>>, vector<8x512xbf16>,
    } else {
    }
    %c0 = arith.constant 0 : index
    %c0_1 = arith.constant 0 : index
    %3 = vector.load %arg10[%c0, %c0_1] : memref<8x8xf32, #tpu.memory_space<vmem>>, vector<8x8xf32>
    %c0_2 = arith.constant 0 : index
    %c0_3 = arith.constant 0 : index
    %4 = vector.load %arg11[%c0_2, %c0_3] : memref<8x512xbf16, #tpu.memory_space<vmem>>, vector<8x512xbf16>
    %c0_4 = arith.constant 0 : index
    %c0_5 = arith.constant 0 : index
    %c0_6 = arith.constant 0 : index
    %5 = vector.load %arg4[%c0_4, %c0_5, %c0_6] : memref<1x512x1024xbf16, #tpu.memory_space<vmem>>, vector<1x512x1024xbf16>
    %6 = vector.shape_cast %5 : vector<1x512x1024xbf16> to vector<512x1024xbf16>
    %cst = arith.constant dense<0.000000e+00> : vector<8x1024xf32>
    %7 = tpu.matmul %4, %6, %cst {dimension_numbers = #tpu.dot_dimension_numbers<[1], [0], [0], [1], [0, 0, 1, 1], [], []>} : vector<8x512xbf16>, vector<512x1024xbf16>, vector<8x1024xf32> -> vector<8x1024xf32>
    %cst_7 = arith.constant 0.000000e+00 : f32
    %8 = vector.broadcast %cst_7 : f32 to vector<8x1024xf32>
    %9 = arith.maximumf %7, %8 : vector<8x1024xf32>
    %cst_8 = arith.constant dense<0.000000e+00> : vector<8x1024xf32>
    %10 = tpu.matmul %3, %9, %cst_8 {dimension_numbers = #tpu.dot_dimension_numbers<[1], [0], [0], [1], [0, 0, 1, 1], [], []>} : vector<8x8xf32>, vector<8x1024xf32>, vector<8x1024xf32> -> vector<8x1024xf32>
    %c0_9 = arith.constant 0 : index
    %c0_10 = arith.constant 0 : index
    %11 = vector.load %arg9[%c0_9, %c0_10] : memref<8x1024xf32, #tpu.memory_space<vmem>>, vector<8x1024xf32>
    %12 = arith.truncf %10 : vector<8x1024xf32> to vector<8x1024xbf16>
    %c0_11 = arith.constant 0 : index
    %c0_12 = arith.constant 0 : index
    %13 = vector.load %arg5[%c0_11, %c0_12] : memref<1024x1024xbf16, #tpu.memory_space<vmem>>, vector<1024x1024xbf16>
    %cst_13 = arith.constant dense<0.000000e+00> : vector<8x1024xf32>
    %14 = tpu.matmul %12, %13, %cst_13 {dimension_numbers = #tpu.dot_dimension_numbers<[1], [0], [0], [1], [0, 0, 1, 1], [], []>} : vector<8x1024xbf16>, vector<1024x1024xbf16>, vector<8x1024xf32> -> vector<8x1024xf32>
    %15 = arith.addf %11, %14 : vector<8x1024xf32>
    %c0_14 = arith.constant 0 : index
    %c0_15 = arith.constant 0 : index
    %16 = vector.load %arg9[%c0_14, %c0_15] : memref<8x1024xf32, #tpu.memory_space<vmem>>, vector<8x1024xf32>
    tpu.vector_store %arg9[%c0_14, %c0_15], %15 {strides = array<i32>} : memref<8x1024xf32, #tpu.memory_space<vmem>>, vector<8x1024xf32>,
    %c1_i32 = arith.constant 1 : i32
    %17 = arith.cmpi eq, %arg0, %c1_i32 : i32
    %18 = arith.extui %17 : i1 to i32
    %c0_i32_16 = arith.constant 0 : i32
    %19 = arith.cmpi ne, %18, %c0_i32_16 : i32
    scf.if %19 {
      %c0_17 = arith.constant 0 : index
      %c0_18 = arith.constant 0 : index
      %20 = vector.load %arg9[%c0_17, %c0_18] : memref<8x1024xf32, #tpu.memory_space<vmem>>, vector<8x1024xf32>
      %cst_19 = arith.constant 0.000000e+00 : f32
      %21 = vector.broadcast %cst_19 : f32 to vector<8x1024xf32>
      %22 = arith.maximumf %20, %21 : vector<8x1024xf32>
      %c0_20 = arith.constant 0 : index
      %c0_21 = arith.constant 0 : index
      %23 = vector.load %arg6[%c0_20, %c0_21] : memref<1024x16xf32, #tpu.memory_space<vmem>>, vector<1024x16xf32>
      %cst_22 = arith.constant dense<0.000000e+00> : vector<8x16xf32>
      %24 = tpu.matmul %22, %23, %cst_22 {dimension_numbers = #tpu.dot_dimension_numbers<[1], [0], [0], [1], [0, 0, 1, 1], [], []>} : vector<8x1024xf32>, vector<1024x16xf32>, vector<8x16xf32> -> vector<8x16xf32>
      %c0_23 = arith.constant 0 : index
      %c0_24 = arith.constant 0 : index
      %25 = vector.load %arg7[%c0_23, %c0_24] : memref<1x16xf32, #tpu.memory_space<vmem>>, vector<1x16xf32>
      %26 = vector.broadcast %25 : vector<1x16xf32> to vector<8x16xf32>
      %27 = arith.addf %24, %26 : vector<8x16xf32>
      %cst_25 = arith.constant 1.000000e+00 : f32
      %28 = vector.broadcast %cst_25 : f32 to vector<8x16xf32>
      %29 = arith.mulf %28, %27 : vector<8x16xf32>
      %30 = math.tanh %29 : vector<8x16xf32>
      %c0_26 = arith.constant 0 : index
      %c0_27 = arith.constant 0 : index
      %31 = vector.load %arg8[%c0_26, %c0_27] : memref<8x16xf32, #tpu.memory_space<vmem>>, vector<8x16xf32>
      tpu.vector_store %arg8[%c0_26, %c0_27], %30 {strides = array<i32>} : memref<8x16xf32, #tpu.memory_space<vmem>>, vector<8x16xf32>,
    } else {
    }
    return
  }
  func.func @transform_0(%arg0: i32) -> (i32, i32) {
    %c0_i32 = arith.constant 0 : i32
    %c0_i32_0 = arith.constant 0 : i32
    %c0_i32_1 = arith.constant 0 : i32
    return %c0_i32, %c0_i32_0 : i32, i32
  }
  func.func @transform_1(%arg0: i32) -> (i32, i32) {
    %c0_i32 = arith.constant 0 : i32
    %c0_i32_0 = arith.constant 0 : i32
    %c0_i32_1 = arith.constant 0 : i32
    return %c0_i32, %c0_i32_0 : i32, i32
  }
  func.func @transform_2(%arg0: i32) -> (i32, i32) {
    %c0_i32 = arith.constant 0 : i32
    %c0_i32_0 = arith.constant 0 : i32
    %c0_i32_1 = arith.constant 0 : i32
    return %c0_i32, %c0_i32_0 : i32, i32
  }
  func.func @transform_3(%arg0: i32) -> (i32, i32, i32) {
    %c0_i32 = arith.constant 0 : i32
    %c0_i32_0 = arith.constant 0 : i32
    %c0_i32_1 = arith.constant 0 : i32
    return %arg0, %c0_i32, %c0_i32_0 : i32, i32, i32
  }
  func.func @transform_4(%arg0: i32) -> (i32, i32) {
    %c0_i32 = arith.constant 0 : i32
    %c0_i32_0 = arith.constant 0 : i32
    return %arg0, %c0_i32 : i32, i32
  }
  func.func @transform_5(%arg0: i32) -> (i32, i32) {
    %c0_i32 = arith.constant 0 : i32
    %c0_i32_0 = arith.constant 0 : i32
    %c0_i32_1 = arith.constant 0 : i32
    return %c0_i32, %c0_i32_0 : i32, i32
  }
  func.func @transform_6(%arg0: i32) -> (i32, i32) {
    %c0_i32 = arith.constant 0 : i32
    %c0_i32_0 = arith.constant 0 : i32
    %c0_i32_1 = arith.constant 0 : i32
    return %c0_i32, %c0_i32_0 : i32, i32
  }
  func.func @transform_7(%arg0: i32) -> (i32, i32) {
    %c0_i32 = arith.constant 0 : i32
    %c0_i32_0 = arith.constant 0 : i32
    %c0_i32_1 = arith.constant 0 : i32
    return %c0_i32, %c0_i32_0 : i32, i32
  }
}

</mosaic_0001>

<bundles_post_ra>
// kernel: tpu_custom_call.1
= control target key start
LH: loop header
LB: loop body
LE: loop exit
PB: predicated region body
PF: predicated region fallthrough
CT: control target
= control target key end

     0   :  { %s10129_s0 = inlined_call_operand.hbm [shape: f32[8,512], index: 0, kind: input, shape index: {}]   ;;  %s10130_s1 = inlined_call_operand.hbm [shape: f32[8,8], index: 1, kind: input, shape index: {}]   ;;  %s10131_s2 = inlined_call_operand.hbm [shape: f32[8,8], index: 2, kind: input, shape index: {}]   ;;  %s10132_s3 = inlined_call_operand.hbm [shape: bf16[2,512,1024], index: 3, kind: input, shape index: {}]   ;;  %s10133_s4 = inlined_call_operand.hbm [shape: bf16[2048,1024], index: 4, kind: input, shape index: {}]   ;;  %s10134_s5 = inlined_call_operand.vmem [shape: f32[1024,16], index: 5, kind: input, shape index: {}]   ;;  %s10135_s6 = inlined_call_operand.hbm [shape: f32[1,16], index: 6, kind: input, shape index: {}]   ;;  %s10136_s7 = inlined_call_operand.hbm [shape: f32[8,16], index: 7, kind: output, shape index: {}]  }
   0x1   :  { %10147 = sst [smem:[#allocation24_spill]] %s10130_s1 }
   0x2   :  { %10148 = sst [smem:[#allocation25_spill]] %s10132_s3 }
   0x3   :  { %12 = vsyncpa [#allocation6], 0 }
   0x4   :  { %13 = vsyncpa [#allocation9], 0 }
   0x5   :  { %14 = vsyncpa [#allocation12], 0 }
   0x6   :  { %16 = vsyncpa [#allocation12 + $0x1], 0 }
   0x7   :  { %17 = vsyncpa [#allocation15], 0 }
   0x8   :  { %18 = vsyncpa [#allocation7], 0  ;;  %s8553_s24 = smov 0   ;;  %s8555_s25 = smov 0  }
   0x9   :  { %s8557_s26 = smov 0   ;;  %s8559_s27 = smov 0  }
   0xa LB: > { %s8572_s28 = sadd.s32 4294967295, %s8500_s27   ;;  %p107_p0 = scmp.ne.s32.totalorder %s8492_s25, %s8488_s24  ;;  %s8500_s27 = sphi %s8559_s27, %s10174_s27   ;;  %s8496_s26 = sphi %s8557_s26, %s10178_s26   ;;  %s8492_s25 = sphi %s8555_s25, %s10177_s25   ;;  %s8488_s24 = sphi %s8553_s24, %s10176_s24  }
   0xb   : > { %p10137_p1 = scmp.eq.s32.totalorder %s8572_s28, 0  ;;  %p7054_p2 = scmp.ge.s32.totalorder %s8500_s27, 1 }
   0xc   : > { %p207_p3 = scmp.lt.s32.totalorder %s8500_s27, 3  ;;  %s8502_s8 = smov [#allocation8]  }
   0xd   : > { %p8581_p5 = por %p10137_p1, %p107_p0  ;;  %s231_s9 = sshll.u32 %s8502_s8, 4  ;;  %s232_s9 = int_to_ptr.vmem [resolvable:$true] %s231_s9 }
   0xe   : > { %p8585_p6 = pnand %p7054_p2, %p207_p3  ;;  %s8592_s10 = sadd.s32 1, %s8500_s27  }
   0xf   : > { %s10149_s29 = scalar_select %p8581_p5, 1, 0 }
  0x10   : > { %s10150_s30 = scalar_select %p8585_p6, 1, 0 }
  0x11   : > { %p8174_p7 = pneg %p8585_p6  ;;  %10151 = sst [smem:[#allocation22_spill]] %s8592_s10 }
  0x12   : > { %s91_s12 = ssub.s32 %s8500_s27, %s8592_s10  ;;  %s94_s14 = sadd.s32 1, %s8496_s26 }
  0x13   : > { %p8596_p8 = pnand %p8174_p7, %p10137_p1  ;;  %p8602_p9 = scmp.eq.s32.totalorder %s91_s12, 0 }
  0x14   : > { %s10154_s1 = sld [smem:[#allocation24_spill]] }
  0x15   : > { %s10152_s11 = scalar_select %p8596_p8, 1, 0 }
  0x16   : > { %s10153_s13 = scalar_select %p8602_p9, 1, 0 }
  0x17   : > { %p8617_p12 = pneg %p8596_p8 }
  0x1a   : > { %s8252_s17 = scalar_lea.hbm %s10154_s1, 128 }
  0x1b   : > { %p8253_p11 = scmp.ne.s32.totalorder %s10154_s1, %s8252_s17  ;;  %p8259_p2 = scmp.lt.u32.totalorder %s8252_s17, %s10154_s1 }
  0x1d   : > { %p8255_p13 = pnand %p8617_p12, %p8253_p11 }
  0x1f   : > { %p8256_p0 = pneg %p8255_p13 }
  0x21   : > { %p8261_p3 = pnand %p8259_p2, %p8256_p0 }
  0x23   : > { %8264 = shalt.err (!%p8261_p3)
}
  0x24   : > { %s8265_s23 = scalar_lea.vmem %s232_s9, 128  ;;  %p8273_p10 = scmp.lt.s32.totalorder %s232_s9, %s232_s9 }
  0x25   : > { %p8266_p7 = scmp.ne.s32.totalorder %s232_s9, %s8265_s23  ;;  %p8274_p5 = scmp.lt.s32.totalorder %s8265_s23, %s8265_s23 }
  0x27   : > { %p8268_p4 = pnand %p8266_p7, %p8617_p12  ;;  %p8275_p6 = por %p8274_p5, %p8273_p10 }
  0x29   : > { %p8269_p1 = pneg %p8268_p4 }
  0x2b   : > { %p8276_p9 = pnand %p8275_p6, %p8269_p1 }
  0x2d   : > { %8279 = shalt.err (!%p8276_p9)
}
  0x2e   : > { %8180 = dma.hbm_to_vmem [thread:$0]  (!%p8596_p8), %s10154_s1, 128, %s232_s9, [#allocation9]  }
  0x2f   : > { %p10156_p4 = scmp.ne.s32.totalorder %s10153_s13, 0  ;;  %p102_p1 = scmp.eq.s32.totalorder %s8500_s27, 0 }
  0x30   : > { %p8198_p5 = scmp.lt.s32.totalorder %s8500_s27, 2  ;;  %s267_s15 = sand.u32 1, %s8500_s27  }
  0x31   : > { %s8636_s12 = scalar_select %p10156_p4, %s8496_s26, %s94_s14  }
  0x32   : > { %s269_s16 = sand.u32 1, %s8496_s26   ;;  %p10158_p6 = scmp.ne.s32.totalorder %s8496_s26, %s8492_s25 }
  0x33   : > { %10157 = sst [smem:[#allocation23_spill]] %s8636_s12  ;;  %s7060_s17 = sshll.u32 %s269_s16, 11 }
  0x34   : > { %p103_p9 = por %p102_p1, %p10158_p6  ;;  %s7861_s18 = sshll.u32 %s8500_s27, 15 }
  0x35   : > { %s10159_s3 = sld [smem:[#allocation25_spill]]  ;;  %s271_s9 = scalar_lea.vmem [#allocation11], %s7060_s17 }
  0x36   : > { %s278_s13 = sshll.u32 %s271_s9, 4  ;;  %p8653_p10 = pnand %p8198_p5, %p103_p9  ;;  %s8657_s13 = int_to_ptr.vmem [resolvable:$true] %s278_s13 }
  0x37   : > { %s8659_s23 = scalar_lea.sflag [#allocation12], %s267_s15 }
  0x38   : > { %s10160_s14 = scalar_select %p8653_p10, 1, 0 }
  0x39   : > { %p10144_p13 = pneg %p8653_p10 }
  0x3b   : > { %s8651_s22 = scalar_lea.hbm %s10159_s3, %s7861_s18  ;;  %s8285_s18 = scalar_lea.hbm %s10159_s3, 65536 }
  0x3c   : > { %s8280_s24 = scalar_lea.hbm %s8651_s22, 32768  ;;  %p8286_p3 = scmp.lt.u32.totalorder %s8651_s22, %s10159_s3 }
  0x3d   : > { %p8281_p11 = scmp.ne.s32.totalorder %s8651_s22, %s8280_s24  ;;  %p8287_p7 = scmp.lt.u32.totalorder %s8285_s18, %s8280_s24 }
  0x3e   : > { %p8289_p1 = scmp.lt.u32.totalorder %s8280_s24, %s8651_s22 }
  0x3f   : > { %p8283_p0 = pnand %p10144_p13, %p8281_p11  ;;  %p8288_p4 = por %p8287_p7, %p8286_p3 }
  0x41   : > { %p8284_p2 = pneg %p8283_p0  ;;  %p8290_p5 = por %p8289_p1, %p8288_p4 }
  0x43   : > { %p8291_p6 = pnand %p8290_p5, %p8284_p2 }
  0x45   : > { %8294 = shalt.err (!%p8291_p6)
}
  0x46   : > { %s8295_s15 = scalar_lea.vmem %s8657_s13, 32768  ;;  %s8503_s9 = smov [#allocation11]  }
  0x47   : > { %p8296_p9 = scmp.ne.s32.totalorder %s8657_s13, %s8295_s15  ;;  %s8300_s8 = sshll.u32 %s8503_s9, 4  ;;  %s8301_s8 = int_to_ptr.vmem [resolvable:$false] %s8300_s8 }
  0x48   : > { %s8302_s17 = scalar_lea.vmem %s8301_s8, 65536  ;;  %p8303_p8 = scmp.lt.s32.totalorder %s8657_s13, %s8301_s8 }
  0x49   : > { %p8298_p11 = pnand %p8296_p9, %p10144_p13  ;;  %p8304_p3 = scmp.lt.s32.totalorder %s8302_s17, %s8295_s15 }
  0x4b   : > { %p8299_p0 = pneg %p8298_p11  ;;  %p8305_p7 = por %p8304_p3, %p8303_p8 }
  0x4d   : > { %p8306_p4 = pnand %p8305_p7, %p8299_p0 }
  0x4f   : > { %8309 = shalt.err (!%p8306_p4)
}
  0x50   : > { %s8504_s24 = smov 512   ;;  %s8505_s18 = smov 32  }
  0x51   : > { %8190 = dma.hbm_to_vmem [thread:$0]  (!%p8653_p10), %s8651_s22, 32768, %s8657_s13, %s8659_s23, %s8504_s24, %s8504_s24, %s8505_s18  }
  0x52   : > { %s7063_s19 = sshll.u32 %s269_s16, 12  ;;  %s8506_s21 = smov [#allocation5]  }
  0x53   : > { %s220_s15 = sshll.u32 %s8506_s21, 4  ;;  %s292_s9 = scalar_lea.vmem [#allocation13], %s7063_s19  ;;  %s221_s15 = int_to_ptr.vmem [resolvable:$true] %s220_s15 }
  0x54   : > { %s8692_s8 = sshll.u32 %s292_s9, 4  ;;  %s8310_s3 = scalar_lea.hbm %s10129_s0, 512  ;;  %s8758_s8 = int_to_ptr.vmem [resolvable:$true] %s8692_s8 }
  0x55   : > { %p8311_p8 = scmp.ne.s32.totalorder %s10129_s0, %s8310_s3  ;;  %p8317_p5 = scmp.lt.u32.totalorder %s8310_s3, %s10129_s0 }
  0x57   : > { %p8313_p2 = pnand %p8311_p8, %p8617_p12 }
  0x59   : > { %p8314_p1 = pneg %p8313_p2 }
  0x5b   : > { %p8319_p6 = pnand %p8317_p5, %p8314_p1 }
  0x5d   : > { %8322 = shalt.err (!%p8319_p6)
}
  0x5e   : > { %s8323_s16 = scalar_lea.vmem %s221_s15, 512  ;;  %p8331_p3 = scmp.lt.s32.totalorder %s221_s15, %s221_s15 }
  0x5f   : > { %p8324_p9 = scmp.ne.s32.totalorder %s221_s15, %s8323_s16  ;;  %p8332_p7 = scmp.lt.s32.totalorder %s8323_s16, %s8323_s16 }
  0x61   : > { %p8326_p11 = pnand %p8324_p9, %p8617_p12  ;;  %p8333_p4 = por %p8332_p7, %p8331_p3 }
  0x63   : > { %p8327_p0 = pneg %p8326_p11 }
  0x65   : > { %p8334_p13 = pnand %p8333_p4, %p8327_p0 }
  0x67   : > { %8337 = shalt.err (!%p8334_p13)
}
  0x68   : > { %p10161_p8 = scmp.ne.s32.totalorder %s10152_s11, 0  ;;  %s8507_s3 = smov [#allocation10]  }
  0x69   : > { %s242_s12 = sshll.u32 %s8507_s3, 4  ;;  %s8508_s19 = smov [#allocation14]   ;;  %s243_s12 = int_to_ptr.vmem [resolvable:$true] %s242_s12 }
  0x6a   : > { %8177 = dma.hbm_to_vmem [thread:$0]  (!%p10161_p8), %s10129_s0, 512, %s221_s15, [#allocation6]  }
  0x6b   : > { %s256_s21 = sshll.u32 %s8508_s19, 4  ;;  %s8338_s22 = scalar_lea.hbm %s10131_s2, 128  ;;  %s8712_s21 = int_to_ptr.vmem [resolvable:$true] %s256_s21 }
  0x6c   : > { %p8339_p13 = scmp.ne.s32.totalorder %s10131_s2, %s8338_s22  ;;  %p8345_p5 = scmp.lt.u32.totalorder %s8338_s22, %s10131_s2 }
  0x6e   : > { %p8341_p2 = pnand %p8339_p13, %p8617_p12 }
  0x70   : > { %p8342_p1 = pneg %p8341_p2 }
  0x72   : > { %p8347_p6 = pnand %p8345_p5, %p8342_p1 }
  0x74   : > { %8350 = shalt.err (!%p8347_p6)
}
  0x75   : > { %s8351_s10 = scalar_lea.vmem %s243_s12, 128  ;;  %p8359_p3 = scmp.lt.s32.totalorder %s243_s12, %s243_s12 }
  0x76   : > { %p8352_p9 = scmp.ne.s32.totalorder %s243_s12, %s8351_s10  ;;  %p8360_p7 = scmp.lt.s32.totalorder %s8351_s10, %s8351_s10 }
  0x78   : > { %p8354_p11 = pnand %p8352_p9, %p8617_p12  ;;  %p8361_p4 = por %p8360_p7, %p8359_p3 }
  0x7a   : > { %p8355_p0 = pneg %p8354_p11 }
  0x7c   : > { %p8362_p10 = pnand %p8361_p4, %p8355_p0 }
  0x7e   : > { %8365 = shalt.err (!%p8362_p10)
}
  0x7f   : > { %8183 = dma.hbm_to_vmem [thread:$0]  (!%p10161_p8), %s10131_s2, 128, %s243_s12, [#allocation9]  }
  0x80   : > { %s8366_s22 = scalar_lea.hbm %s10135_s6, 16 }
  0x81   : > { %p8367_p13 = scmp.ne.s32.totalorder %s10135_s6, %s8366_s22  ;;  %p8373_p10 = scmp.lt.u32.totalorder %s8366_s22, %s10135_s6 }
  0x83   : > { %p8369_p2 = pnand %p8367_p13, %p8617_p12 }
  0x85   : > { %p8370_p1 = pneg %p8369_p2 }
  0x87   : > { %p8375_p5 = pnand %p8373_p10, %p8370_p1 }
  0x89   : > { %8378 = shalt.err (!%p8375_p5)
}
  0x8a   : > { %s8379_s12 = scalar_lea.vmem %s8712_s21, 16  ;;  %s8386_s10 = scalar_lea.vmem %s8712_s21, 32 }
  0x8b   : > { %p8380_p6 = scmp.ne.s32.totalorder %s8712_s21, %s8379_s12  ;;  %p8387_p0 = scmp.lt.s32.totalorder %s8712_s21, %s8712_s21 }
  0x8c   : > { %p8388_p3 = scmp.lt.s32.totalorder %s8386_s10, %s8379_s12 }
  0x8d   : > { %p8382_p9 = pnand %p8380_p6, %p8617_p12 }
  0x8e   : > { %p8389_p7 = por %p8388_p3, %p8387_p0 }
  0x8f   : > { %p8383_p11 = pneg %p8382_p9 }
  0x91   : > { %p8390_p4 = pnand %p8389_p7, %p8383_p11 }
  0x93   : > { %8393 = shalt.err (!%p8390_p4)
}
  0x94   : > { %8186 = dma.hbm_to_vmem [thread:$0]  (!%p10161_p8), %s10135_s6, 16, %s8712_s21, [#allocation15]  }
  0x95   : > { %s7863_s20 = sshll.u32 %s8500_s27, 16  ;;  %p10162_p13 = scmp.ne.s32.totalorder %s10160_s14, 0 }
  0x96   : > { %s8763_s22 = scalar_lea.hbm %s10133_s4, %s7863_s20  ;;  %s8399_s27 = scalar_lea.hbm %s10133_s4, 131072 }
  0x97   : > { %s8394_s11 = scalar_lea.hbm %s8763_s22, 65536  ;;  %p10163_p2 = pneg %p10162_p13 }
  0x98   : > { %p8395_p12 = scmp.ne.s32.totalorder %s8763_s22, %s8394_s11  ;;  %p8400_p8 = scmp.lt.u32.totalorder %s8763_s22, %s10133_s4 }
  0x99   : > { %p8401_p5 = scmp.lt.u32.totalorder %s8399_s27, %s8394_s11  ;;  %p8403_p9 = scmp.lt.u32.totalorder %s8394_s11, %s8763_s22 }
  0x9a   : > { %p8397_p1 = pnand %p8395_p12, %p10163_p2 }
  0x9b   : > { %p8402_p6 = por %p8401_p5, %p8400_p8 }
  0x9c   : > { %p8398_p10 = pneg %p8397_p1 }
  0x9d   : > { %p8404_p11 = por %p8403_p9, %p8402_p6 }
  0x9f   : > { %p8405_p0 = pnand %p8404_p11, %p8398_p10 }
  0xa1   : > { %8408 = shalt.err (!%p8405_p0)
}
  0xa2   : > { %s8409_s15 = scalar_lea.vmem %s8758_s8, 65536  ;;  %p10164_p7 = pmov %p10163_p2 }
  0xa3   : > { %p8410_p3 = scmp.ne.s32.totalorder %s8758_s8, %s8409_s15  ;;  %s8509_s12 = smov [#allocation13]  }
  0xa4   : > { %s8414_s10 = sshll.u32 %s8509_s12, 4  ;;  %s8415_s10 = int_to_ptr.vmem [resolvable:$false] %s8414_s10 }
  0xa5   : > { %p8412_p4 = pnand %p8410_p3, %p10164_p7  ;;  %s8416_s3 = scalar_lea.vmem %s8415_s10, 131072 }
  0xa6   : > { %p8417_p2 = scmp.lt.s32.totalorder %s8758_s8, %s8415_s10  ;;  %p8418_p1 = scmp.lt.s32.totalorder %s8416_s3, %s8409_s15 }
  0xa7   : > { %p8413_p12 = pneg %p8412_p4 }
  0xa8   : > { %p8419_p8 = por %p8418_p1, %p8417_p2 }
  0xaa   : > { %p8420_p5 = pnand %p8419_p8, %p8413_p12 }
  0xac   : > { %8423 = shalt.err (!%p8420_p5)
}
  0xad   : > { %8193 = dma.hbm_to_vmem [thread:$0]  (!%p10162_p13), %s8763_s22, 65536, %s8758_s8, %s8659_s23, %s8504_s24, %s8504_s24, %s8505_s18  }
  0xae   : > { %p10165_p10 = scmp.ne.s32.totalorder %s10150_s30, 0 }
  0xaf   : > { %p10166_p6 = scmp.eq.s32.totalorder (!%p10165_p10), %s8572_s28, 0 }
  0xb0   : > { %312 = sbr.rel (%p10165_p10) target bundleno = 2019 (0x7e3), region = 48 }
  0xb7   : > { %8467 = dma.done.wait (%p10166_p6), [#allocation6], 512   ;;  %p10167_p9 = pmov %p10166_p6 }
  0xb8   : > { %p10168_p11 = pmov %p10166_p6 }
  0xb9   : > { %8469 = vsyncadd (%p10167_p9), [#allocation6], 4294966784 }
  0xba   : > { %8471 = dma.done.wait (%p10168_p11), [#allocation9], 256   ;;  %p10169_p0 = pmov %p10166_p6 }
  0xbb   : > { %s326_s14 = sand.u32 1, %s8572_s28   ;;  %s328_s23 = sand.u32 1, %s8492_s25  }
  0xbc   : > { %8473 = vsyncadd (%p10169_p0), [#allocation9], 4294967040  ;;  %s7071_s24 = sshll.u32 %s328_s23, 11  ;;  %s327_s30 = scalar_lea.sflag [#allocation12], %s326_s14 }
  0xbd   : > { %s8804_s18 = scalar_lea.vmem [#allocation11], %s7071_s24  ;;  %p10170_p13 = scmp.ne.s32.totalorder %s10149_s29, 0 }
  0xbf   : > { %8475 = dma.done.wait (%p10170_p13), %s327_s30, 98304  }
  0xc0   : > { %8477 = vsyncadd (%p10170_p13), %s327_s30, 4294868992  ;;  %s7072_s8 = sshll.u32 %s328_s23, 12  ;;  %p10171_p3 = pmov %p10169_p0 }
  0xc1   : > { %s8810_s19 = scalar_lea.vmem [#allocation13], %s7072_s8 }
  0xc2   : > { %8479 = dma.done.wait (%p10171_p3), [#allocation15], 16   ;;  %p10172_p7 = pmov %p10169_p0 }
  0xc3   : > { %p10173_p4 = scmp.ne.s32.totalorder %s8572_s28, 0 }
  0xc4   : > { %8481 = vsyncadd (%p10172_p7), [#allocation15], 4294967280  ;;  %v394_v0 = vld [vmem:[#allocation5 + $0x8] sm:$0xff] (!%p10173_p4)  ;;  %v396_v1 = vld [vmem:[#allocation5 + $0x18] sm:$0xff] (!%p10173_p4)  ;;  %v8510_v3 = vmov (!%p10173_p4), 0.0   ;;  %vm391_vm0 = vcmask (!%p10173_p4), 64512  }
  0xc5   : > { %378 = sbr.rel (%p10173_p4) target bundleno = 419 (0x1a3), region = 76  ;;  %v393_v2 = vld [vmem:[#allocation5] sm:$0xff] (!%p10173_p4)  ;;  %400 = vmatprep.subr.mxu0 (!%p10173_p4), %v394_v0  ;;  %471 = vmatprep.subr.mxu1 (!%p10173_p4), %v396_v1  ;;  %379 = vst [vmem:[#allocation2] sm:$0xff] (!%p10173_p4), %v8510_v3  ;;  %380 = vst [vmem:[#allocation2 + $0x8] sm:$0xff] (!%p10173_p4), %v8510_v3  ;;  %v395_v4 = vld [vmem:[#allocation5 + $0x10] sm:$0xff] (!%p10173_p4) }
  0xc6   : > { %381 = vst [vmem:[#allocation2 + $0x10] sm:$0xff] (!%p10173_p4), %v8510_v3  ;;  %382 = vst [vmem:[#allocation2 + $0x18] sm:$0xff] (!%p10173_p4), %v8510_v3  ;;  %v387_v5 = vld [vmem:[#allocation8] sm:$0xff] (!%p10173_p4)  ;;  %v388_v6 = vld [vmem:[#allocation10] sm:$0xff] (!%p10173_p4)  ;;  %401 = vmatpush1.msra.mxu0 (!%p10173_p4), %v393_v2  ;;  %464 = vmatprep.mubr.f32.mxu0 (!%p10173_p4), %v8510_v3 }
  0xc7   : > { %383 = vst [vmem:[#allocation2 + $0x20] sm:$0xff] (!%p10173_p4), %v8510_v3  ;;  %384 = vst [vmem:[#allocation2 + $0x28] sm:$0xff] (!%p10173_p4), %v8510_v3  ;;  %v389_v7 = vmul.f32 (!%p10173_p4), 0.5, %v388_v6  ;;  %472 = vmatpush1.msra.mxu1 (!%p10173_p4), %v395_v4  ;;  %535 = vmatprep.mubr.f32.mxu1 (!%p10173_p4), %v8510_v3 }
  0xc8   : > { %385 = vst [vmem:[#allocation2 + $0x30] sm:$0xff] (!%p10173_p4), %v8510_v3  ;;  %386 = vst [vmem:[#allocation2 + $0x38] sm:$0xff] (!%p10173_p4), %v8510_v3 }
  0xc9   : > { %v390_v8 = vadd.f32 (!%p10173_p4), %v389_v7, %v387_v5 }
  0xcb   : > { %392 = vst.msk [vmem:[#allocation3] sm:$0xff] (!%p10173_p4), %vm391_vm0, %v390_v8  ;;  %7075 = vmatmul.mubr.msk.f32.vlgmr.msra.gmra.mrb[0].mxu0 (!%p10173_p4), %vm391_vm0, %v390_v8  ;;  %7076 = vmatmul.mubr.msk.f32.vlgmr.msra.gmra.mrb[0].mxu1 (!%p10173_p4), %vm391_vm0, %v390_v8 }
 0x19e   : > { %v466_v9 = vpop.f32.mrb[0].mxu0  ;;  %v537_v10 = vpop.f32.mrb[0].mxu1 }
 0x19f   : > { %v468_v11 = vpop.f32.mrb[1].mxu0  ;;  %v539_v12 = vpop.f32.mrb[1].mxu1 }
 0x1a0   : > { %v7864_v13 = vpack.c.bf16 %v468_v11, %v466_v9  ;;  %v7865_v14 = vpack.c.bf16 %v539_v12, %v537_v10 }
 0x1a2   : > { %558 = vst [vmem:[#allocation4] sm:$0xff] %v7864_v13  ;;  %559 = vst [vmem:[#allocation4 + $0x8] sm:$0xff] %v7865_v14 }
 0x1a3 PF: > { %v563_v15 = vld [vmem:[%s8804_s18] sm:$0xff]  ;;  %v564_v17 = vld [vmem:[%s8804_s18 + $0x8] sm:$0xff]  ;;  %vm2449_vm1 = vcmask 64512   ;;  %p7855_p12 = scmp.ne.s32.totalorder %s8572_s28, 1 }
 0x1a4   : > { %v567_v16 = vld [vmem:[%s8804_s18 + $0x20] sm:$0xff]  ;;  %v568_v19 = vld [vmem:[%s8804_s18 + $0x28] sm:$0xff]  ;;  %vm6933_vm2 = vcmask (!%p7855_p12), 130048  }
 0x1a5   : > { %v7084_v18 = vcombine.high %v563_v15, %v567_v16  ;;  %v7083_v20 = vcombine.low %v563_v15, %v567_v16  ;;  %v571_v21 = vld [vmem:[%s8804_s18 + $0x40] sm:$0xff]  ;;  %v7086_v23 = vcombine.high %v564_v17, %v568_v19  ;;  %v7085_v24 = vcombine.low %v564_v17, %v568_v19  ;;  %v572_v26 = vld [vmem:[%s8804_s18 + $0x48] sm:$0xff] }
 0x1a6   : > { %v575_v22 = vld [vmem:[%s8804_s18 + $0x60] sm:$0xff]  ;;  %v576_v27 = vld [vmem:[%s8804_s18 + $0x68] sm:$0xff] }
 0x1a7   : > { %v7092_v25 = vcombine.high %v571_v21, %v575_v22  ;;  %v579_v28 = vld [vmem:[%s8804_s18 + $0x80] sm:$0xff]  ;;  %2113 = vmatprep.subr.bf16.mxu0 %v7084_v18  ;;  %v7094_v29 = vcombine.high %v572_v26, %v576_v27  ;;  %v580_v31 = vld [vmem:[%s8804_s18 + $0x88] sm:$0xff]  ;;  %2195 = vmatprep.subr.bf16.mxu1 %v7086_v23  ;;  %v7091_v33 = vcombine.low %v571_v21, %v575_v22 }
 0x1a8   : > { %v583_v30 = vld [vmem:[%s8804_s18 + $0xa0] sm:$0xff]  ;;  %v584_v32 = vld [vmem:[%s8804_s18 + $0xa8] sm:$0xff]  ;;  %2114 = vmatpush1.bf16.msra.mxu0 %v7083_v20  ;;  %2196 = vmatpush1.bf16.msra.mxu1 %v7085_v24  ;;  %v7093_v34 = vcombine.low %v572_v26, %v576_v27 }
 0x1a9   : > { %2115 = vmatprep.subr.bf16.mxu0 %v7092_v25  ;;  %v7100_v35 = vcombine.high %v579_v28, %v583_v30  ;;  %2197 = vmatprep.subr.bf16.mxu1 %v7094_v29  ;;  %v7102_v36 = vcombine.high %v580_v31, %v584_v32  ;;  %v587_v37 = vld [vmem:[%s8804_s18 + $0xc0] sm:$0xff]  ;;  %v588_v39 = vld [vmem:[%s8804_s18 + $0xc8] sm:$0xff]  ;;  %v7099_v41 = vcombine.low %v579_v28, %v583_v30 }
 0x1aa   : > { %v591_v38 = vld [vmem:[%s8804_s18 + $0xe0] sm:$0xff]  ;;  %v592_v40 = vld [vmem:[%s8804_s18 + $0xe8] sm:$0xff]  ;;  %v7101_v42 = vcombine.low %v580_v31, %v584_v32 }
 0x1ab   : > { %v7108_v43 = vcombine.high %v587_v37, %v591_v38  ;;  %v7110_v44 = vcombine.high %v588_v39, %v592_v40  ;;  %v595_v45 = vld [vmem:[%s8804_s18 + $0x100] sm:$0xff]  ;;  %v596_v47 = vld [vmem:[%s8804_s18 + $0x108] sm:$0xff]  ;;  %v7107_v49 = vcombine.low %v587_v37, %v591_v38  ;;  %v7109_v50 = vcombine.low %v588_v39, %v592_v40 }
 0x1ac   : > { %2116 = vmatpush1.bf16.msra.mxu0 %v7091_v33  ;;  %2198 = vmatpush1.bf16.msra.mxu1 %v7093_v34  ;;  %v599_v46 = vld [vmem:[%s8804_s18 + $0x120] sm:$0xff]  ;;  %v600_v48 = vld [vmem:[%s8804_s18 + $0x128] sm:$0xff] }
 0x1ad   : > { %2117 = vmatprep.subr.bf16.mxu0 %v7100_v35  ;;  %2199 = vmatprep.subr.bf16.mxu1 %v7102_v36  ;;  %v7116_v51 = vcombine.high %v595_v45, %v599_v46  ;;  %v7118_v52 = vcombine.high %v596_v47, %v600_v48  ;;  %v603_v53 = vld [vmem:[%s8804_s18 + $0x140] sm:$0xff]  ;;  %v604_v55 = vld [vmem:[%s8804_s18 + $0x148] sm:$0xff]  ;;  %v7115_v57 = vcombine.low %v595_v45, %v599_v46 }
 0x1ae   : > { %v607_v54 = vld [vmem:[%s8804_s18 + $0x160] sm:$0xff]  ;;  %v608_v56 = vld [vmem:[%s8804_s18 + $0x168] sm:$0xff]  ;;  %v7117_v58 = vcombine.low %v596_v47, %v600_v48 }
 0x1af   : > { %v7124_v59 = vcombine.high %v603_v53, %v607_v54  ;;  %v7126_v60 = vcombine.high %v604_v55, %v608_v56  ;;  %v611_v61 = vld [vmem:[%s8804_s18 + $0x180] sm:$0xff]  ;;  %v612_v63 = vld [vmem:[%s8804_s18 + $0x188] sm:$0xff]  ;;  %v7123_v1 = vcombine.low %v603_v53, %v607_v54  ;;  %v7125_v2 = vcombine.low %v604_v55, %v608_v56 }
 0x1b0   : > { %2118 = vmatpush1.bf16.msra.mxu0 %v7099_v41  ;;  %2200 = vmatpush1.bf16.msra.mxu1 %v7101_v42  ;;  %v615_v62 = vld [vmem:[%s8804_s18 + $0x1a0] sm:$0xff]  ;;  %v616_v0 = vld [vmem:[%s8804_s18 + $0x1a8] sm:$0xff] }
 0x1b1   : > { %2119 = vmatprep.subr.bf16.mxu0 %v7108_v43  ;;  %2201 = vmatprep.subr.bf16.mxu1 %v7110_v44  ;;  %v7132_v3 = vcombine.high %v611_v61, %v615_v62  ;;  %v8846_v4 = vld [vmem:[#allocation4] sm:$0xff]  ;;  %v7134_v5 = vcombine.high %v612_v63, %v616_v0  ;;  %v620_v9 = vld [vmem:[%s8804_s18 + $0x1c8] sm:$0xff]  ;;  %v7131_v11 = vcombine.low %v611_v61, %v615_v62 }
 0x1b2   : > { %v619_v6 = vld [vmem:[%s8804_s18 + $0x1c0] sm:$0xff]  ;;  %v8852_v8 = vcombine.high %v8846_v4, %v8846_v4  ;;  %v624_v10 = vld [vmem:[%s8804_s18 + $0x1e8] sm:$0xff]  ;;  %v7133_v12 = vcombine.low %v612_v63, %v616_v0 }
 0x1b3   : > { %v623_v7 = vld [vmem:[%s8804_s18 + $0x1e0] sm:$0xff]  ;;  %v7142_v14 = vcombine.high %v620_v9, %v624_v10  ;;  %v628_v17 = vld [vmem:[%s8804_s18 + $0x208] sm:$0xff]  ;;  %v7141_v20 = vcombine.low %v620_v9, %v624_v10 }
 0x1b4   : > { %2120 = vmatpush1.bf16.msra.mxu0 %v7107_v49  ;;  %2202 = vmatpush1.bf16.msra.mxu1 %v7109_v50  ;;  %v7140_v13 = vcombine.high %v619_v6, %v623_v7  ;;  %v627_v15 = vld [vmem:[%s8804_s18 + $0x200] sm:$0xff]  ;;  %v632_v18 = vld [vmem:[%s8804_s18 + $0x228] sm:$0xff]  ;;  %v7139_v19 = vcombine.low %v619_v6, %v623_v7 }
 0x1b5   : > { %2121 = vmatprep.subr.bf16.mxu0 %v7116_v51  ;;  %2203 = vmatprep.subr.bf16.mxu1 %v7118_v52  ;;  %v631_v16 = vld [vmem:[%s8804_s18 + $0x220] sm:$0xff]  ;;  %v7150_v22 = vcombine.high %v628_v17, %v632_v18  ;;  %v636_v25 = vld [vmem:[%s8804_s18 + $0x248] sm:$0xff]  ;;  %v7149_v28 = vcombine.low %v628_v17, %v632_v18 }
 0x1b6   : > { %2145 = vmatprep.mubr.bf16.mxu0 %v8852_v8  ;;  %2227 = vmatprep.mubr.bf16.mxu1 %v8852_v8  ;;  %v7148_v21 = vcombine.high %v627_v15, %v631_v16  ;;  %v635_v23 = vld [vmem:[%s8804_s18 + $0x240] sm:$0xff]  ;;  %v640_v26 = vld [vmem:[%s8804_s18 + $0x268] sm:$0xff]  ;;  %v7147_v27 = vcombine.low %v627_v15, %v631_v16 }
 0x1b7   : > { %v639_v24 = vld [vmem:[%s8804_s18 + $0x260] sm:$0xff]  ;;  %v7158_v30 = vcombine.high %v636_v25, %v640_v26  ;;  %v644_v33 = vld [vmem:[%s8804_s18 + $0x288] sm:$0xff]  ;;  %v7157_v36 = vcombine.low %v636_v25, %v640_v26 }
 0x1b8   : > { %2122 = vmatpush1.bf16.msra.mxu0 %v7115_v57  ;;  %2204 = vmatpush1.bf16.msra.mxu1 %v7117_v58  ;;  %v7156_v29 = vcombine.high %v635_v23, %v639_v24  ;;  %v643_v31 = vld [vmem:[%s8804_s18 + $0x280] sm:$0xff]  ;;  %v648_v34 = vld [vmem:[%s8804_s18 + $0x2a8] sm:$0xff]  ;;  %v7155_v35 = vcombine.low %v635_v23, %v639_v24 }
 0x1b9   : > { %2123 = vmatprep.subr.bf16.mxu0 %v7124_v59  ;;  %2205 = vmatprep.subr.bf16.mxu1 %v7126_v60  ;;  %v647_v32 = vld [vmem:[%s8804_s18 + $0x2a0] sm:$0xff]  ;;  %v7166_v38 = vcombine.high %v644_v33, %v648_v34  ;;  %v652_v41 = vld [vmem:[%s8804_s18 + $0x2c8] sm:$0xff]  ;;  %v7165_v44 = vcombine.low %v644_v33, %v648_v34 }
 0x1ba   : > { %v7164_v37 = vcombine.high %v643_v31, %v647_v32  ;;  %v651_v39 = vld [vmem:[%s8804_s18 + $0x2c0] sm:$0xff]  ;;  %v656_v42 = vld [vmem:[%s8804_s18 + $0x2e8] sm:$0xff]  ;;  %v7163_v43 = vcombine.low %v643_v31, %v647_v32 }
 0x1bb   : > { %v655_v40 = vld [vmem:[%s8804_s18 + $0x2e0] sm:$0xff]  ;;  %v7174_v46 = vcombine.high %v652_v41, %v656_v42  ;;  %v660_v49 = vld [vmem:[%s8804_s18 + $0x308] sm:$0xff]  ;;  %v7173_v52 = vcombine.low %v652_v41, %v656_v42 }
 0x1bc   : > { %2124 = vmatpush1.bf16.msra.mxu0 %v7123_v1  ;;  %2206 = vmatpush1.bf16.msra.mxu1 %v7125_v2  ;;  %v7172_v45 = vcombine.high %v651_v39, %v655_v40  ;;  %v659_v47 = vld [vmem:[%s8804_s18 + $0x300] sm:$0xff]  ;;  %v664_v50 = vld [vmem:[%s8804_s18 + $0x328] sm:$0xff]  ;;  %v7171_v51 = vcombine.low %v651_v39, %v655_v40 }
 0x1bd   : > { %2125 = vmatprep.subr.bf16.mxu0 %v7132_v3  ;;  %2207 = vmatprep.subr.bf16.mxu1 %v7134_v5  ;;  %v663_v48 = vld [vmem:[%s8804_s18 + $0x320] sm:$0xff]  ;;  %v7182_v54 = vcombine.high %v660_v49, %v664_v50  ;;  %v668_v57 = vld [vmem:[%s8804_s18 + $0x348] sm:$0xff]  ;;  %v7181_v60 = vcombine.low %v660_v49, %v664_v50 }
 0x1be   : > { %v7180_v53 = vcombine.high %v659_v47, %v663_v48  ;;  %v667_v55 = vld [vmem:[%s8804_s18 + $0x340] sm:$0xff]  ;;  %v672_v58 = vld [vmem:[%s8804_s18 + $0x368] sm:$0xff]  ;;  %v7179_v59 = vcombine.low %v659_v47, %v663_v48 }
 0x1bf   : > { %v671_v56 = vld [vmem:[%s8804_s18 + $0x360] sm:$0xff]  ;;  %v7190_v62 = vcombine.high %v668_v57, %v672_v58  ;;  %v676_v1 = vld [vmem:[%s8804_s18 + $0x388] sm:$0xff]  ;;  %v7189_v5 = vcombine.low %v668_v57, %v672_v58 }
 0x1c0   : > { %2126 = vmatpush1.bf16.msra.mxu0 %v7131_v11  ;;  %2208 = vmatpush1.bf16.msra.mxu1 %v7133_v12  ;;  %v7188_v61 = vcombine.high %v667_v55, %v671_v56  ;;  %v675_v63 = vld [vmem:[%s8804_s18 + $0x380] sm:$0xff]  ;;  %v680_v2 = vld [vmem:[%s8804_s18 + $0x3a8] sm:$0xff]  ;;  %v7187_v3 = vcombine.low %v667_v55, %v671_v56 }
 0x1c1   : > { %2127 = vmatprep.subr.bf16.mxu0 %v7140_v13  ;;  %2209 = vmatprep.subr.bf16.mxu1 %v7142_v14  ;;  %v679_v0 = vld [vmem:[%s8804_s18 + $0x3a0] sm:$0xff]  ;;  %v7198_v7 = vcombine.high %v676_v1, %v680_v2  ;;  %v684_v11 = vld [vmem:[%s8804_s18 + $0x3c8] sm:$0xff]  ;;  %v7197_v14 = vcombine.low %v676_v1, %v680_v2 }
 0x1c2   : > { %v7196_v6 = vcombine.high %v675_v63, %v679_v0  ;;  %v683_v9 = vld [vmem:[%s8804_s18 + $0x3c0] sm:$0xff]  ;;  %v688_v12 = vld [vmem:[%s8804_s18 + $0x3e8] sm:$0xff]  ;;  %v7195_v13 = vcombine.low %v675_v63, %v679_v0 }
 0x1c3   : > { %v687_v10 = vld [vmem:[%s8804_s18 + $0x3e0] sm:$0xff]  ;;  %v7206_v16 = vcombine.high %v684_v11, %v688_v12 }
 0x1c4   : > { %2128 = vmatpush1.bf16.msra.mxu0 %v7139_v19  ;;  %2210 = vmatpush1.bf16.msra.mxu1 %v7141_v20  ;;  %v7204_v15 = vcombine.high %v683_v9, %v687_v10  ;;  %v691_v17 = vld [vmem:[%s8804_s18 + $0x400] sm:$0xff]  ;;  %v692_v19 = vld [vmem:[%s8804_s18 + $0x408] sm:$0xff] }
 0x1c5   : > { %2129 = vmatprep.subr.bf16.mxu0 %v7148_v21  ;;  %2211 = vmatprep.subr.bf16.mxu1 %v7150_v22  ;;  %v695_v18 = vld [vmem:[%s8804_s18 + $0x420] sm:$0xff]  ;;  %v696_v20 = vld [vmem:[%s8804_s18 + $0x428] sm:$0xff]  ;;  %v7203_v21 = vcombine.low %v683_v9, %v687_v10  ;;  %v7205_v22 = vcombine.low %v684_v11, %v688_v12 }
 0x1c6   : > { %v7212_v23 = vcombine.high %v691_v17, %v695_v18  ;;  %v7214_v24 = vcombine.high %v692_v19, %v696_v20  ;;  %v699_v25 = vld [vmem:[%s8804_s18 + $0x440] sm:$0xff]  ;;  %v7211_v31 = vcombine.low %v691_v17, %v695_v18  ;;  %v7213_v32 = vcombine.low %v692_v19, %v696_v20 }
 0x1c7   : > { %v703_v26 = vld [vmem:[%s8804_s18 + $0x460] sm:$0xff] }
 0x1c8   : > { %2130 = vmatpush1.bf16.msra.mxu0 %v7147_v27  ;;  %2212 = vmatpush1.bf16.msra.mxu1 %v7149_v28  ;;  %v8898_v27 = vcombine.low %v8846_v4, %v8846_v4  ;;  %v700_v28 = vld [vmem:[%s8804_s18 + $0x448] sm:$0xff]  ;;  %v7220_v33 = vcombine.high %v699_v25, %v703_v26  ;;  %v7219_v39 = vcombine.low %v699_v25, %v703_v26 }
 0x1c9   : > { %2131 = vmatprep.subr.bf16.mxu0 %v7156_v29  ;;  %2213 = vmatprep.subr.bf16.mxu1 %v7158_v30  ;;  %v704_v29 = vld [vmem:[%s8804_s18 + $0x468] sm:$0xff] }
 0x1ca   : > { %v8902_v30 = vld [vmem:[#allocation4 + $0x8] sm:$0xff]  ;;  %v7222_v34 = vcombine.high %v700_v28, %v704_v29  ;;  %v7221_v40 = vcombine.low %v700_v28, %v704_v29 }
 0x1cb   : > { %v8908_v4 = vcombine.high %v8902_v30, %v8902_v30 }
 0x1cc   : > { %2132 = vmatpush1.bf16.msra.mxu0 %v7155_v35  ;;  %2214 = vmatpush1.bf16.msra.mxu1 %v7157_v36  ;;  %v707_v35 = vld [vmem:[%s8804_s18 + $0x480] sm:$0xff] }
 0x1cd   : > { %2133 = vmatprep.subr.bf16.mxu0 %v7164_v37  ;;  %2215 = vmatprep.subr.bf16.mxu1 %v7166_v38  ;;  %v711_v36 = vld [vmem:[%s8804_s18 + $0x4a0] sm:$0xff]  ;;  %v708_v37 = vld [vmem:[%s8804_s18 + $0x488] sm:$0xff] }
 0x1ce   : > { %v712_v38 = vld [vmem:[%s8804_s18 + $0x4a8] sm:$0xff]  ;;  %v7228_v41 = vcombine.high %v707_v35, %v711_v36  ;;  %v7227_v47 = vcombine.low %v707_v35, %v711_v36 }
 0x1cf   : > { %v7230_v42 = vcombine.high %v708_v37, %v712_v38  ;;  %v7229_v48 = vcombine.low %v708_v37, %v712_v38 }
 0x1d0   : > { %2134 = vmatpush1.bf16.msra.mxu0 %v7163_v43  ;;  %2216 = vmatpush1.bf16.msra.mxu1 %v7165_v44  ;;  %v715_v43 = vld [vmem:[%s8804_s18 + $0x4c0] sm:$0xff] }
 0x1d1   : > { %2135 = vmatprep.subr.bf16.mxu0 %v7172_v45  ;;  %2217 = vmatprep.subr.bf16.mxu1 %v7174_v46  ;;  %v719_v44 = vld [vmem:[%s8804_s18 + $0x4e0] sm:$0xff]  ;;  %v716_v45 = vld [vmem:[%s8804_s18 + $0x4c8] sm:$0xff] }
 0x1d2   : > { %v720_v46 = vld [vmem:[%s8804_s18 + $0x4e8] sm:$0xff]  ;;  %v7236_v49 = vcombine.high %v715_v43, %v719_v44  ;;  %v7235_v55 = vcombine.low %v715_v43, %v719_v44 }
 0x1d3   : > { %v7238_v50 = vcombine.high %v716_v45, %v720_v46  ;;  %v7237_v56 = vcombine.low %v716_v45, %v720_v46 }
 0x1d4   : > { %2136 = vmatpush1.bf16.msra.mxu0 %v7171_v51  ;;  %2218 = vmatpush1.bf16.msra.mxu1 %v7173_v52  ;;  %v723_v51 = vld [vmem:[%s8804_s18 + $0x500] sm:$0xff] }
 0x1d5   : > { %2137 = vmatprep.subr.bf16.mxu0 %v7180_v53  ;;  %2219 = vmatprep.subr.bf16.mxu1 %v7182_v54  ;;  %v727_v52 = vld [vmem:[%s8804_s18 + $0x520] sm:$0xff]  ;;  %v724_v53 = vld [vmem:[%s8804_s18 + $0x508] sm:$0xff] }
 0x1d6   : > { %v728_v54 = vld [vmem:[%s8804_s18 + $0x528] sm:$0xff]  ;;  %v7244_v57 = vcombine.high %v723_v51, %v727_v52  ;;  %v7243_v63 = vcombine.low %v723_v51, %v727_v52 }
 0x1d7   : > { %v7246_v58 = vcombine.high %v724_v53, %v728_v54  ;;  %v7245_v0 = vcombine.low %v724_v53, %v728_v54 }
 0x1d8   : > { %2138 = vmatpush1.bf16.msra.mxu0 %v7179_v59  ;;  %2220 = vmatpush1.bf16.msra.mxu1 %v7181_v60  ;;  %v731_v59 = vld [vmem:[%s8804_s18 + $0x540] sm:$0xff] }
 0x1d9   : > { %2139 = vmatprep.subr.bf16.mxu0 %v7188_v61  ;;  %2221 = vmatprep.subr.bf16.mxu1 %v7190_v62  ;;  %v735_v60 = vld [vmem:[%s8804_s18 + $0x560] sm:$0xff]  ;;  %v732_v61 = vld [vmem:[%s8804_s18 + $0x548] sm:$0xff] }
 0x1da   : > { %v736_v62 = vld [vmem:[%s8804_s18 + $0x568] sm:$0xff]  ;;  %v7252_v1 = vcombine.high %v731_v59, %v735_v60  ;;  %v7251_v9 = vcombine.low %v731_v59, %v735_v60 }
 0x1db   : > { %v7254_v2 = vcombine.high %v732_v61, %v736_v62  ;;  %v7253_v10 = vcombine.low %v732_v61, %v736_v62 }
 0x1dc   : > { %2140 = vmatpush1.bf16.msra.mxu0 %v7187_v3  ;;  %2222 = vmatpush1.bf16.msra.mxu1 %v7189_v5  ;;  %v739_v3 = vld [vmem:[%s8804_s18 + $0x580] sm:$0xff] }
 0x1dd   : > { %2141 = vmatprep.subr.bf16.mxu0 %v7196_v6  ;;  %2223 = vmatprep.subr.bf16.mxu1 %v7198_v7  ;;  %v743_v5 = vld [vmem:[%s8804_s18 + $0x5a0] sm:$0xff]  ;;  %v740_v6 = vld [vmem:[%s8804_s18 + $0x588] sm:$0xff] }
 0x1de   : > { %v744_v7 = vld [vmem:[%s8804_s18 + $0x5a8] sm:$0xff]  ;;  %v7260_v11 = vcombine.high %v739_v3, %v743_v5  ;;  %v7259_v17 = vcombine.low %v739_v3, %v743_v5 }
 0x1df   : > { %v7262_v12 = vcombine.high %v740_v6, %v744_v7  ;;  %v7261_v18 = vcombine.low %v740_v6, %v744_v7 }
 0x1e0   : > { %2142 = vmatpush1.bf16.msra.mxu0 %v7195_v13  ;;  %2224 = vmatpush1.bf16.msra.mxu1 %v7197_v14  ;;  %v747_v13 = vld [vmem:[%s8804_s18 + $0x5c0] sm:$0xff] }
 0x1e1   : > { %2143 = vmatprep.subr.bf16.mxu0 %v7204_v15  ;;  %2225 = vmatprep.subr.bf16.mxu1 %v7206_v16  ;;  %v751_v14 = vld [vmem:[%s8804_s18 + $0x5e0] sm:$0xff]  ;;  %v748_v15 = vld [vmem:[%s8804_s18 + $0x5c8] sm:$0xff] }
 0x1e2   : > { %v752_v16 = vld [vmem:[%s8804_s18 + $0x5e8] sm:$0xff]  ;;  %v7268_v19 = vcombine.high %v747_v13, %v751_v14  ;;  %v7267_v25 = vcombine.low %v747_v13, %v751_v14 }
 0x1e3   : > { %v7270_v20 = vcombine.high %v748_v15, %v752_v16  ;;  %v7269_v26 = vcombine.low %v748_v15, %v752_v16 }
 0x1e4   : > { %2144 = vmatpush1.bf16.msra.mxu0 %v7203_v21  ;;  %2226 = vmatpush1.bf16.msra.mxu1 %v7205_v22  ;;  %v755_v21 = vld [vmem:[%s8804_s18 + $0x600] sm:$0xff] }
 0x1e5   : > { %2154 = vmatprep.subr.bf16.mxu0 %v7212_v23  ;;  %2236 = vmatprep.subr.bf16.mxu1 %v7214_v24  ;;  %v759_v22 = vld [vmem:[%s8804_s18 + $0x620] sm:$0xff]  ;;  %v756_v23 = vld [vmem:[%s8804_s18 + $0x608] sm:$0xff] }
 0x1e6   : > { %v760_v24 = vld [vmem:[%s8804_s18 + $0x628] sm:$0xff]  ;;  %v7276_v28 = vcombine.high %v755_v21, %v759_v22  ;;  %v7275_v35 = vcombine.low %v755_v21, %v759_v22 }
 0x1e7   : > { %2146 = vmatmul.mubr.bf16.vlgmr.msra.gmra.mrb[0].mxu0 %v8898_v27  ;;  %2228 = vmatmul.mubr.bf16.vlgmr.msra.gmra.mrb[0].mxu1 %v8898_v27  ;;  %v7278_v29 = vcombine.high %v756_v23, %v760_v24  ;;  %v7277_v36 = vcombine.low %v756_v23, %v760_v24 }
 0x1e8   : > { %2155 = vmatpush1.bf16.msra.mxu0 %v7211_v31  ;;  %2237 = vmatpush1.bf16.msra.mxu1 %v7213_v32  ;;  %v763_v31 = vld [vmem:[%s8804_s18 + $0x640] sm:$0xff] }
 0x1e9   : > { %2156 = vmatprep.subr.bf16.mxu0 %v7220_v33  ;;  %2238 = vmatprep.subr.bf16.mxu1 %v7222_v34  ;;  %v767_v32 = vld [vmem:[%s8804_s18 + $0x660] sm:$0xff]  ;;  %v764_v33 = vld [vmem:[%s8804_s18 + $0x648] sm:$0xff] }
 0x1ea   : > { %2186 = vmatprep.mubr.bf16.mxu0 %v8908_v4  ;;  %2268 = vmatprep.mubr.bf16.mxu1 %v8908_v4  ;;  %v768_v34 = vld [vmem:[%s8804_s18 + $0x668] sm:$0xff]  ;;  %v7284_v37 = vcombine.high %v763_v31, %v767_v32  ;;  %v7283_v43 = vcombine.low %v763_v31, %v767_v32 }
 0x1eb   : > { %v7286_v38 = vcombine.high %v764_v33, %v768_v34  ;;  %v7285_v44 = vcombine.low %v764_v33, %v768_v34 }
 0x1ec   : > { %2157 = vmatpush1.bf16.msra.mxu0 %v7219_v39  ;;  %2239 = vmatpush1.bf16.msra.mxu1 %v7221_v40  ;;  %v771_v39 = vld [vmem:[%s8804_s18 + $0x680] sm:$0xff] }
 0x1ed   : > { %2158 = vmatprep.subr.bf16.mxu0 %v7228_v41  ;;  %2240 = vmatprep.subr.bf16.mxu1 %v7230_v42  ;;  %v775_v40 = vld [vmem:[%s8804_s18 + $0x6a0] sm:$0xff]  ;;  %v772_v41 = vld [vmem:[%s8804_s18 + $0x688] sm:$0xff] }
 0x1ee   : > { %v776_v42 = vld [vmem:[%s8804_s18 + $0x6a8] sm:$0xff]  ;;  %v7292_v45 = vcombine.high %v771_v39, %v775_v40  ;;  %v7291_v51 = vcombine.low %v771_v39, %v775_v40  ;;  %v578_v39 = vld [vmem:[%s8804_s18 + $0x78] sm:$0xff] }
 0x1ef   : > { %v7294_v46 = vcombine.high %v772_v41, %v776_v42  ;;  %v7293_v52 = vcombine.low %v772_v41, %v776_v42 }
 0x1f0   : > { %2159 = vmatpush1.bf16.msra.mxu0 %v7227_v47  ;;  %2241 = vmatpush1.bf16.msra.mxu1 %v7229_v48  ;;  %v779_v47 = vld [vmem:[%s8804_s18 + $0x6c0] sm:$0xff] }
 0x1f1   : > { %2160 = vmatprep.subr.bf16.mxu0 %v7236_v49  ;;  %2242 = vmatprep.subr.bf16.mxu1 %v7238_v50  ;;  %v783_v48 = vld [vmem:[%s8804_s18 + $0x6e0] sm:$0xff]  ;;  %v780_v49 = vld [vmem:[%s8804_s18 + $0x6c8] sm:$0xff] }
 0x1f2   : > { %v784_v50 = vld [vmem:[%s8804_s18 + $0x6e8] sm:$0xff]  ;;  %v7300_v53 = vcombine.high %v779_v47, %v783_v48  ;;  %v7299_v59 = vcombine.low %v779_v47, %v783_v48 }
 0x1f3   : > { %v7302_v54 = vcombine.high %v780_v49, %v784_v50  ;;  %v7301_v60 = vcombine.low %v780_v49, %v784_v50 }
 0x1f4   : > { %2161 = vmatpush1.bf16.msra.mxu0 %v7235_v55  ;;  %2243 = vmatpush1.bf16.msra.mxu1 %v7237_v56  ;;  %v787_v55 = vld [vmem:[%s8804_s18 + $0x700] sm:$0xff] }
 0x1f5   : > { %2162 = vmatprep.subr.bf16.mxu0 %v7244_v57  ;;  %2244 = vmatprep.subr.bf16.mxu1 %v7246_v58  ;;  %v791_v56 = vld [vmem:[%s8804_s18 + $0x720] sm:$0xff]  ;;  %v788_v57 = vld [vmem:[%s8804_s18 + $0x708] sm:$0xff] }
 0x1f6   : > { %v792_v58 = vld [vmem:[%s8804_s18 + $0x728] sm:$0xff]  ;;  %v7308_v61 = vcombine.high %v787_v55, %v791_v56  ;;  %v7307_v3 = vcombine.low %v787_v55, %v791_v56 }
 0x1f7   : > { %v7310_v62 = vcombine.high %v788_v57, %v792_v58  ;;  %v7309_v5 = vcombine.low %v788_v57, %v792_v58 }
 0x1f8   : > { %2163 = vmatpush1.bf16.msra.mxu0 %v7243_v63  ;;  %2245 = vmatpush1.bf16.msra.mxu1 %v7245_v0  ;;  %v795_v63 = vld [vmem:[%s8804_s18 + $0x740] sm:$0xff] }
 0x1f9   : > { %2164 = vmatprep.subr.bf16.mxu0 %v7252_v1  ;;  %2246 = vmatprep.subr.bf16.mxu1 %v7254_v2  ;;  %v799_v0 = vld [vmem:[%s8804_s18 + $0x760] sm:$0xff]  ;;  %v796_v1 = vld [vmem:[%s8804_s18 + $0x748] sm:$0xff] }
 0x1fa   : > { %v800_v2 = vld [vmem:[%s8804_s18 + $0x768] sm:$0xff]  ;;  %v7316_v6 = vcombine.high %v795_v63, %v799_v0  ;;  %v7315_v13 = vcombine.low %v795_v63, %v799_v0 }
 0x1fb   : > { %v7318_v7 = vcombine.high %v796_v1, %v800_v2  ;;  %v7317_v14 = vcombine.low %v796_v1, %v800_v2  ;;  %v605_v2 = vld [vmem:[%s8804_s18 + $0x150] sm:$0xff] }
 0x1fc   : > { %2165 = vmatpush1.bf16.msra.mxu0 %v7251_v9  ;;  %2247 = vmatpush1.bf16.msra.mxu1 %v7253_v10  ;;  %v803_v9 = vld [vmem:[%s8804_s18 + $0x780] sm:$0xff] }
 0x1fd   : > { %2166 = vmatprep.subr.bf16.mxu0 %v7260_v11  ;;  %2248 = vmatprep.subr.bf16.mxu1 %v7262_v12  ;;  %v807_v10 = vld [vmem:[%s8804_s18 + $0x7a0] sm:$0xff]  ;;  %v804_v11 = vld [vmem:[%s8804_s18 + $0x788] sm:$0xff] }
 0x1fe   : > { %v808_v12 = vld [vmem:[%s8804_s18 + $0x7a8] sm:$0xff]  ;;  %v7324_v15 = vcombine.high %v803_v9, %v807_v10  ;;  %v7323_v21 = vcombine.low %v803_v9, %v807_v10 }
 0x1ff   : > { %v7326_v16 = vcombine.high %v804_v11, %v808_v12  ;;  %v7325_v22 = vcombine.low %v804_v11, %v808_v12  ;;  %v613_v12 = vld [vmem:[%s8804_s18 + $0x190] sm:$0xff] }
 0x200   : > { %2167 = vmatpush1.bf16.msra.mxu0 %v7259_v17  ;;  %2249 = vmatpush1.bf16.msra.mxu1 %v7261_v18  ;;  %v811_v17 = vld [vmem:[%s8804_s18 + $0x7c0] sm:$0xff] }
 0x201   : > { %2168 = vmatprep.subr.bf16.mxu0 %v7268_v19  ;;  %2250 = vmatprep.subr.bf16.mxu1 %v7270_v20  ;;  %v815_v18 = vld [vmem:[%s8804_s18 + $0x7e0] sm:$0xff]  ;;  %v812_v19 = vld [vmem:[%s8804_s18 + $0x7c8] sm:$0xff] }
 0x202   : > { %v816_v20 = vld [vmem:[%s8804_s18 + $0x7e8] sm:$0xff]  ;;  %v7332_v23 = vcombine.high %v811_v17, %v815_v18  ;;  %v7331_v31 = vcombine.low %v811_v17, %v815_v18 }
 0x203   : > { %v7334_v24 = vcombine.high %v812_v19, %v816_v20  ;;  %v7333_v32 = vcombine.low %v812_v19, %v816_v20  ;;  %v621_v20 = vld [vmem:[%s8804_s18 + $0x1d0] sm:$0xff] }
 0x204   : > { %2169 = vmatpush1.bf16.msra.mxu0 %v7267_v25  ;;  %2251 = vmatpush1.bf16.msra.mxu1 %v7269_v26  ;;  %v565_v25 = vld [vmem:[%s8804_s18 + $0x10] sm:$0xff] }
 0x205   : > { %2170 = vmatprep.subr.bf16.mxu0 %v7276_v28  ;;  %2252 = vmatprep.subr.bf16.mxu1 %v7278_v29  ;;  %v569_v26 = vld [vmem:[%s8804_s18 + $0x30] sm:$0xff]  ;;  %v566_v28 = vld [vmem:[%s8804_s18 + $0x18] sm:$0xff] }
 0x206   : > { %v570_v29 = vld [vmem:[%s8804_s18 + $0x38] sm:$0xff]  ;;  %v7088_v33 = vcombine.high %v565_v25, %v569_v26  ;;  %v7087_v40 = vcombine.low %v565_v25, %v569_v26 }
 0x207   : > { %v7090_v34 = vcombine.high %v566_v28, %v570_v29  ;;  %v7089_v41 = vcombine.low %v566_v28, %v570_v29  ;;  %v629_v29 = vld [vmem:[%s8804_s18 + $0x210] sm:$0xff] }
 0x208   : > { %2171 = vmatpush1.bf16.msra.mxu0 %v7275_v35  ;;  %2253 = vmatpush1.bf16.msra.mxu1 %v7277_v36  ;;  %v573_v35 = vld [vmem:[%s8804_s18 + $0x50] sm:$0xff] }
 0x209   : > { %2172 = vmatprep.subr.bf16.mxu0 %v7284_v37  ;;  %2254 = vmatprep.subr.bf16.mxu1 %v7286_v38  ;;  %v577_v36 = vld [vmem:[%s8804_s18 + $0x70] sm:$0xff]  ;;  %v8976_v37 = vcombine.low %v8902_v30, %v8902_v30  ;;  %v574_v38 = vld [vmem:[%s8804_s18 + $0x58] sm:$0xff] }
 0x20a   : > { %v7096_v42 = vcombine.high %v573_v35, %v577_v36  ;;  %v582_v30 = vld [vmem:[%s8804_s18 + $0x98] sm:$0xff]  ;;  %v7095_v47 = vcombine.low %v573_v35, %v577_v36  ;;  %v7097_v48 = vcombine.low %v574_v38, %v578_v39 }
 0x20c   : > { %2173 = vmatpush1.bf16.msra.mxu0 %v7283_v43  ;;  %2255 = vmatpush1.bf16.msra.mxu1 %v7285_v44  ;;  %v7098_v43 = vcombine.high %v574_v38, %v578_v39  ;;  %v581_v44 = vld [vmem:[%s8804_s18 + $0x90] sm:$0xff] }
 0x20d   : > { %2174 = vmatprep.subr.bf16.mxu0 %v7292_v45  ;;  %2256 = vmatprep.subr.bf16.mxu1 %v7294_v46  ;;  %v585_v45 = vld [vmem:[%s8804_s18 + $0xb0] sm:$0xff]  ;;  %v586_v46 = vld [vmem:[%s8804_s18 + $0xb8] sm:$0xff] }
 0x20e   : > { %v7104_v49 = vcombine.high %v581_v44, %v585_v45  ;;  %v7106_v50 = vcombine.high %v582_v30, %v586_v46  ;;  %v7103_v55 = vcombine.low %v581_v44, %v585_v45  ;;  %v7105_v56 = vcombine.low %v582_v30, %v586_v46  ;;  %v637_v39 = vld [vmem:[%s8804_s18 + $0x250] sm:$0xff] }
 0x20f   : > { %v645_v46 = vld [vmem:[%s8804_s18 + $0x290] sm:$0xff] }
 0x210   : > { %2175 = vmatpush1.bf16.msra.mxu0 %v7291_v51  ;;  %2257 = vmatpush1.bf16.msra.mxu1 %v7293_v52  ;;  %v589_v51 = vld [vmem:[%s8804_s18 + $0xd0] sm:$0xff] }
 0x211   : > { %2176 = vmatprep.subr.bf16.mxu0 %v7300_v53  ;;  %2258 = vmatprep.subr.bf16.mxu1 %v7302_v54  ;;  %v593_v52 = vld [vmem:[%s8804_s18 + $0xf0] sm:$0xff]  ;;  %v590_v53 = vld [vmem:[%s8804_s18 + $0xd8] sm:$0xff] }
 0x212   : > { %v594_v54 = vld [vmem:[%s8804_s18 + $0xf8] sm:$0xff]  ;;  %v7112_v57 = vcombine.high %v589_v51, %v593_v52  ;;  %v7111_v63 = vcombine.low %v589_v51, %v593_v52 }
 0x213   : > { %v7114_v58 = vcombine.high %v590_v53, %v594_v54 }
 0x214   : > { %2177 = vmatpush1.bf16.msra.mxu0 %v7299_v59  ;;  %2259 = vmatpush1.bf16.msra.mxu1 %v7301_v60  ;;  %v597_v59 = vld [vmem:[%s8804_s18 + $0x110] sm:$0xff] }
 0x215   : > { %2178 = vmatprep.subr.bf16.mxu0 %v7308_v61  ;;  %2260 = vmatprep.subr.bf16.mxu1 %v7310_v62  ;;  %v601_v60 = vld [vmem:[%s8804_s18 + $0x130] sm:$0xff]  ;;  %v598_v61 = vld [vmem:[%s8804_s18 + $0x118] sm:$0xff] }
 0x216   : > { %v602_v62 = vld [vmem:[%s8804_s18 + $0x138] sm:$0xff]  ;;  %v7120_v0 = vcombine.high %v597_v59, %v601_v60 }
 0x217   : > { %v7122_v1 = vcombine.high %v598_v61, %v602_v62  ;;  %v7121_v9 = vcombine.low %v598_v61, %v602_v62  ;;  %v661_v62 = vld [vmem:[%s8804_s18 + $0x310] sm:$0xff] }
 0x218   : > { %2179 = vmatpush1.bf16.msra.mxu0 %v7307_v3  ;;  %2261 = vmatpush1.bf16.msra.mxu1 %v7309_v5  ;;  %v609_v3 = vld [vmem:[%s8804_s18 + $0x170] sm:$0xff]  ;;  %v606_v5 = vld [vmem:[%s8804_s18 + $0x158] sm:$0xff] }
 0x219   : > { %2180 = vmatprep.subr.bf16.mxu0 %v7316_v6  ;;  %2262 = vmatprep.subr.bf16.mxu1 %v7318_v7  ;;  %v610_v6 = vld [vmem:[%s8804_s18 + $0x178] sm:$0xff]  ;;  %v7119_v7 = vcombine.low %v597_v59, %v601_v60  ;;  %v7128_v10 = vcombine.high %v605_v2, %v609_v3 }
 0x21a   : > { %v7130_v11 = vcombine.high %v606_v5, %v610_v6  ;;  %v7129_v17 = vcombine.low %v606_v5, %v610_v6  ;;  %v669_v6 = vld [vmem:[%s8804_s18 + $0x350] sm:$0xff] }
 0x21c   : > { %2181 = vmatpush1.bf16.msra.mxu0 %v7315_v13  ;;  %2263 = vmatpush1.bf16.msra.mxu1 %v7317_v14  ;;  %v617_v13 = vld [vmem:[%s8804_s18 + $0x1b0] sm:$0xff]  ;;  %v614_v14 = vld [vmem:[%s8804_s18 + $0x198] sm:$0xff] }
 0x21d   : > { %2182 = vmatprep.subr.bf16.mxu0 %v7324_v15  ;;  %2264 = vmatprep.subr.bf16.mxu1 %v7326_v16  ;;  %v618_v15 = vld [vmem:[%s8804_s18 + $0x1b8] sm:$0xff]  ;;  %v7127_v16 = vcombine.low %v605_v2, %v609_v3  ;;  %v7136_v18 = vcombine.high %v613_v12, %v617_v13 }
 0x21e   : > { %v7138_v19 = vcombine.high %v614_v14, %v618_v15  ;;  %v7137_v25 = vcombine.low %v614_v14, %v618_v15  ;;  %v677_v15 = vld [vmem:[%s8804_s18 + $0x390] sm:$0xff] }
 0x220   : > { %2183 = vmatpush1.bf16.msra.mxu0 %v7323_v21  ;;  %2265 = vmatpush1.bf16.msra.mxu1 %v7325_v22  ;;  %v625_v21 = vld [vmem:[%s8804_s18 + $0x1f0] sm:$0xff]  ;;  %v622_v22 = vld [vmem:[%s8804_s18 + $0x1d8] sm:$0xff] }
 0x221   : > { %2184 = vmatprep.subr.bf16.mxu0 %v7332_v23  ;;  %2266 = vmatprep.subr.bf16.mxu1 %v7334_v24  ;;  %v626_v23 = vld [vmem:[%s8804_s18 + $0x1f8] sm:$0xff]  ;;  %v7135_v24 = vcombine.low %v613_v12, %v617_v13  ;;  %v7144_v26 = vcombine.high %v621_v20, %v625_v21 }
 0x222   : > { %v7146_v28 = vcombine.high %v622_v22, %v626_v23  ;;  %v7145_v35 = vcombine.low %v622_v22, %v626_v23  ;;  %v685_v23 = vld [vmem:[%s8804_s18 + $0x3d0] sm:$0xff] }
 0x224   : > { %2185 = vmatpush1.bf16.msra.mxu0 %v7331_v31  ;;  %2267 = vmatpush1.bf16.msra.mxu1 %v7333_v32  ;;  %v633_v31 = vld [vmem:[%s8804_s18 + $0x230] sm:$0xff]  ;;  %v630_v32 = vld [vmem:[%s8804_s18 + $0x218] sm:$0xff] }
 0x225   : > { %2277 = vmatprep.subr.bf16.mxu0 %v7088_v33  ;;  %2359 = vmatprep.subr.bf16.mxu1 %v7090_v34  ;;  %v634_v33 = vld [vmem:[%s8804_s18 + $0x238] sm:$0xff]  ;;  %v7143_v34 = vcombine.low %v621_v20, %v625_v21  ;;  %v7152_v36 = vcombine.high %v629_v29, %v633_v31 }
 0x226   : > { %v7154_v38 = vcombine.high %v630_v32, %v634_v33  ;;  %v7153_v44 = vcombine.low %v630_v32, %v634_v33  ;;  %v693_v33 = vld [vmem:[%s8804_s18 + $0x410] sm:$0xff] }
 0x227   : > { %2187 = vmatmul.mubr.bf16.vlgmr.msra.gmra.mrb[0].mxu0 %v8976_v37  ;;  %2269 = vmatmul.mubr.bf16.vlgmr.msra.gmra.mrb[0].mxu1 %v8976_v37 }
 0x228   : > { %2278 = vmatpush1.bf16.msra.mxu0 %v7087_v40  ;;  %2360 = vmatpush1.bf16.msra.mxu1 %v7089_v41  ;;  %v641_v40 = vld [vmem:[%s8804_s18 + $0x270] sm:$0xff]  ;;  %v638_v41 = vld [vmem:[%s8804_s18 + $0x258] sm:$0xff] }
 0x229   : > { %2279 = vmatprep.subr.bf16.mxu0 %v7096_v42  ;;  %2361 = vmatprep.subr.bf16.mxu1 %v7098_v43  ;;  %v642_v42 = vld [vmem:[%s8804_s18 + $0x278] sm:$0xff]  ;;  %v7151_v43 = vcombine.low %v629_v29, %v633_v31  ;;  %v7160_v45 = vcombine.high %v637_v39, %v641_v40 }
 0x22a   : > { %2309 = vmatprep.mubr.bf16.mxu0 %v8852_v8  ;;  %2391 = vmatprep.mubr.bf16.mxu1 %v8852_v8  ;;  %v7113_v8 = vcombine.low %v590_v53, %v594_v54  ;;  %v7162_v30 = vcombine.high %v638_v41, %v642_v42  ;;  %v7161_v51 = vcombine.low %v638_v41, %v642_v42  ;;  %v653_v54 = vld [vmem:[%s8804_s18 + $0x2d0] sm:$0xff] }
 0x22b   : > { %v701_v42 = vld [vmem:[%s8804_s18 + $0x450] sm:$0xff] }
 0x22c   : > { %2280 = vmatpush1.bf16.msra.mxu0 %v7095_v47  ;;  %2362 = vmatpush1.bf16.msra.mxu1 %v7097_v48  ;;  %v649_v47 = vld [vmem:[%s8804_s18 + $0x2b0] sm:$0xff]  ;;  %v646_v48 = vld [vmem:[%s8804_s18 + $0x298] sm:$0xff] }
 0x22d   : > { %2281 = vmatprep.subr.bf16.mxu0 %v7104_v49  ;;  %2363 = vmatprep.subr.bf16.mxu1 %v7106_v50  ;;  %v650_v49 = vld [vmem:[%s8804_s18 + $0x2b8] sm:$0xff]  ;;  %v7159_v50 = vcombine.low %v637_v39, %v641_v40  ;;  %v7168_v52 = vcombine.high %v645_v46, %v649_v47 }
 0x22e   : > { %v7170_v53 = vcombine.high %v646_v48, %v650_v49  ;;  %v7169_v59 = vcombine.low %v646_v48, %v650_v49  ;;  %v709_v49 = vld [vmem:[%s8804_s18 + $0x490] sm:$0xff] }
 0x230   : > { %2282 = vmatpush1.bf16.msra.mxu0 %v7103_v55  ;;  %2364 = vmatpush1.bf16.msra.mxu1 %v7105_v56  ;;  %v657_v55 = vld [vmem:[%s8804_s18 + $0x2f0] sm:$0xff]  ;;  %v654_v56 = vld [vmem:[%s8804_s18 + $0x2d8] sm:$0xff] }
 0x231   : > { %2283 = vmatprep.subr.bf16.mxu0 %v7112_v57  ;;  %2365 = vmatprep.subr.bf16.mxu1 %v7114_v58  ;;  %v658_v57 = vld [vmem:[%s8804_s18 + $0x2f8] sm:$0xff]  ;;  %v7167_v58 = vcombine.low %v645_v46, %v649_v47  ;;  %v7176_v60 = vcombine.high %v653_v54, %v657_v55 }
 0x232   : > { %v7178_v61 = vcombine.high %v654_v56, %v658_v57  ;;  %v7177_v2 = vcombine.low %v654_v56, %v658_v57  ;;  %v717_v57 = vld [vmem:[%s8804_s18 + $0x4d0] sm:$0xff] }
 0x234   : > { %2284 = vmatpush1.bf16.msra.mxu0 %v7111_v63  ;;  %2366 = vmatpush1.bf16.msra.mxu1 %v7113_v8  ;;  %v665_v63 = vld [vmem:[%s8804_s18 + $0x330] sm:$0xff]  ;;  %v662_v8 = vld [vmem:[%s8804_s18 + $0x318] sm:$0xff] }
 0x235   : > { %2285 = vmatprep.subr.bf16.mxu0 %v7120_v0  ;;  %2367 = vmatprep.subr.bf16.mxu1 %v7122_v1  ;;  %v666_v0 = vld [vmem:[%s8804_s18 + $0x338] sm:$0xff]  ;;  %v7175_v1 = vcombine.low %v653_v54, %v657_v55  ;;  %v7184_v3 = vcombine.high %v661_v62, %v665_v63 }
 0x236   : > { %v7186_v5 = vcombine.high %v662_v8, %v666_v0  ;;  %v7185_v12 = vcombine.low %v662_v8, %v666_v0  ;;  %v725_v8 = vld [vmem:[%s8804_s18 + $0x510] sm:$0xff] }
 0x237   : > { %v729_v0 = vld [vmem:[%s8804_s18 + $0x530] sm:$0xff] }
 0x238   : > { %2286 = vmatpush1.bf16.msra.mxu0 %v7119_v7  ;;  %2368 = vmatpush1.bf16.msra.mxu1 %v7121_v9  ;;  %v673_v7 = vld [vmem:[%s8804_s18 + $0x370] sm:$0xff]  ;;  %v670_v9 = vld [vmem:[%s8804_s18 + $0x358] sm:$0xff] }
 0x239   : > { %2287 = vmatprep.subr.bf16.mxu0 %v7128_v10  ;;  %2369 = vmatprep.subr.bf16.mxu1 %v7130_v11  ;;  %v674_v10 = vld [vmem:[%s8804_s18 + $0x378] sm:$0xff]  ;;  %v7183_v11 = vcombine.low %v661_v62, %v665_v63  ;;  %v7192_v13 = vcombine.high %v669_v6, %v673_v7 }
 0x23a   : > { %v7194_v14 = vcombine.high %v670_v9, %v674_v10  ;;  %v7193_v20 = vcombine.low %v670_v9, %v674_v10  ;;  %v737_v9 = vld [vmem:[%s8804_s18 + $0x570] sm:$0xff]  ;;  %v734_v10 = vld [vmem:[%s8804_s18 + $0x558] sm:$0xff] }
 0x23c   : > { %2288 = vmatpush1.bf16.msra.mxu0 %v7127_v16  ;;  %2370 = vmatpush1.bf16.msra.mxu1 %v7129_v17  ;;  %v681_v16 = vld [vmem:[%s8804_s18 + $0x3b0] sm:$0xff]  ;;  %v678_v17 = vld [vmem:[%s8804_s18 + $0x398] sm:$0xff] }
 0x23d   : > { %2289 = vmatprep.subr.bf16.mxu0 %v7136_v18  ;;  %2371 = vmatprep.subr.bf16.mxu1 %v7138_v19  ;;  %v682_v18 = vld [vmem:[%s8804_s18 + $0x3b8] sm:$0xff]  ;;  %v7191_v19 = vcombine.low %v669_v6, %v673_v7  ;;  %v7200_v21 = vcombine.high %v677_v15, %v681_v16  ;;  %v733_v7 = vld [vmem:[%s8804_s18 + $0x550] sm:$0xff] }
 0x23e   : > { %v7202_v22 = vcombine.high %v678_v17, %v682_v18  ;;  %v7201_v29 = vcombine.low %v678_v17, %v682_v18  ;;  %v745_v17 = vld [vmem:[%s8804_s18 + $0x5b0] sm:$0xff]  ;;  %v742_v18 = vld [vmem:[%s8804_s18 + $0x598] sm:$0xff] }
 0x240   : > { %2290 = vmatpush1.bf16.msra.mxu0 %v7135_v24  ;;  %2372 = vmatpush1.bf16.msra.mxu1 %v7137_v25  ;;  %v689_v24 = vld [vmem:[%s8804_s18 + $0x3f0] sm:$0xff]  ;;  %v686_v25 = vld [vmem:[%s8804_s18 + $0x3d8] sm:$0xff] }
 0x241   : > { %2291 = vmatprep.subr.bf16.mxu0 %v7144_v26  ;;  %2373 = vmatprep.subr.bf16.mxu1 %v7146_v28  ;;  %v690_v26 = vld [vmem:[%s8804_s18 + $0x3f8] sm:$0xff]  ;;  %v7199_v28 = vcombine.low %v677_v15, %v681_v16  ;;  %v7208_v31 = vcombine.high %v685_v23, %v689_v24  ;;  %v741_v16 = vld [vmem:[%s8804_s18 + $0x590] sm:$0xff] }
 0x242   : > { %v7210_v32 = vcombine.high %v686_v25, %v690_v26  ;;  %v7209_v39 = vcombine.low %v686_v25, %v690_v26  ;;  %v753_v25 = vld [vmem:[%s8804_s18 + $0x5f0] sm:$0xff]  ;;  %v750_v26 = vld [vmem:[%s8804_s18 + $0x5d8] sm:$0xff] }
 0x244   : > { %2292 = vmatpush1.bf16.msra.mxu0 %v7143_v34  ;;  %2374 = vmatpush1.bf16.msra.mxu1 %v7145_v35  ;;  %v697_v34 = vld [vmem:[%s8804_s18 + $0x430] sm:$0xff]  ;;  %v694_v35 = vld [vmem:[%s8804_s18 + $0x418] sm:$0xff] }
 0x245   : > { %2293 = vmatprep.subr.bf16.mxu0 %v7152_v36  ;;  %2375 = vmatprep.subr.bf16.mxu1 %v7154_v38  ;;  %v698_v36 = vld [vmem:[%s8804_s18 + $0x438] sm:$0xff]  ;;  %v7207_v38 = vcombine.low %v685_v23, %v689_v24  ;;  %v7216_v40 = vcombine.high %v693_v33, %v697_v34  ;;  %v749_v24 = vld [vmem:[%s8804_s18 + $0x5d0] sm:$0xff] }
 0x246   : > { %v7218_v41 = vcombine.high %v694_v35, %v698_v36  ;;  %v7217_v46 = vcombine.low %v694_v35, %v698_v36  ;;  %v761_v35 = vld [vmem:[%s8804_s18 + $0x630] sm:$0xff]  ;;  %v758_v36 = vld [vmem:[%s8804_s18 + $0x618] sm:$0xff] }
 0x248   : > { %2294 = vmatpush1.bf16.msra.mxu0 %v7151_v43  ;;  %2376 = vmatpush1.bf16.msra.mxu1 %v7153_v44  ;;  %v705_v43 = vld [vmem:[%s8804_s18 + $0x470] sm:$0xff]  ;;  %v702_v44 = vld [vmem:[%s8804_s18 + $0x458] sm:$0xff] }
 0x249   : > { %2295 = vmatprep.subr.bf16.mxu0 %v7160_v45  ;;  %2377 = vmatprep.subr.bf16.mxu1 %v7162_v30  ;;  %v706_v45 = vld [vmem:[%s8804_s18 + $0x478] sm:$0xff]  ;;  %v7215_v30 = vcombine.low %v693_v33, %v697_v34  ;;  %v7224_v47 = vcombine.high %v701_v42, %v705_v43  ;;  %v757_v34 = vld [vmem:[%s8804_s18 + $0x610] sm:$0xff] }
 0x24a   : > { %v7226_v48 = vcombine.high %v702_v44, %v706_v45  ;;  %v7225_v54 = vcombine.low %v702_v44, %v706_v45  ;;  %v769_v44 = vld [vmem:[%s8804_s18 + $0x670] sm:$0xff]  ;;  %v766_v45 = vld [vmem:[%s8804_s18 + $0x658] sm:$0xff] }
 0x24c   : > { %2296 = vmatpush1.bf16.msra.mxu0 %v7159_v50  ;;  %2378 = vmatpush1.bf16.msra.mxu1 %v7161_v51  ;;  %v713_v50 = vld [vmem:[%s8804_s18 + $0x4b0] sm:$0xff]  ;;  %v710_v51 = vld [vmem:[%s8804_s18 + $0x498] sm:$0xff] }
 0x24d   : > { %2297 = vmatprep.subr.bf16.mxu0 %v7168_v52  ;;  %2379 = vmatprep.subr.bf16.mxu1 %v7170_v53  ;;  %v714_v52 = vld [vmem:[%s8804_s18 + $0x4b8] sm:$0xff]  ;;  %v7223_v53 = vcombine.low %v701_v42, %v705_v43  ;;  %v7232_v55 = vcombine.high %v709_v49, %v713_v50  ;;  %v765_v43 = vld [vmem:[%s8804_s18 + $0x650] sm:$0xff] }
 0x24e   : > { %v7234_v56 = vcombine.high %v710_v51, %v714_v52 }
 0x250   : > { %2298 = vmatpush1.bf16.msra.mxu0 %v7167_v58  ;;  %2380 = vmatpush1.bf16.msra.mxu1 %v7169_v59  ;;  %v721_v58 = vld [vmem:[%s8804_s18 + $0x4f0] sm:$0xff]  ;;  %v718_v59 = vld [vmem:[%s8804_s18 + $0x4d8] sm:$0xff] }
 0x251   : > { %2299 = vmatprep.subr.bf16.mxu0 %v7176_v60  ;;  %2381 = vmatprep.subr.bf16.mxu1 %v7178_v61  ;;  %v722_v60 = vld [vmem:[%s8804_s18 + $0x4f8] sm:$0xff]  ;;  %v7233_v61 = vcombine.low %v710_v51, %v714_v52  ;;  %v7240_v62 = vcombine.high %v717_v57, %v721_v58  ;;  %v777_v51 = vld [vmem:[%s8804_s18 + $0x6b0] sm:$0xff] }
 0x252   : > { %v7242_v63 = vcombine.high %v718_v59, %v722_v60  ;;  %v774_v52 = vld [vmem:[%s8804_s18 + $0x698] sm:$0xff] }
 0x254   : > { %2300 = vmatpush1.bf16.msra.mxu0 %v7175_v1  ;;  %2382 = vmatpush1.bf16.msra.mxu1 %v7177_v2  ;;  %v726_v1 = vld [vmem:[%s8804_s18 + $0x518] sm:$0xff] }
 0x255   : > { %2301 = vmatprep.subr.bf16.mxu0 %v7184_v3  ;;  %2383 = vmatprep.subr.bf16.mxu1 %v7186_v5  ;;  %v730_v2 = vld [vmem:[%s8804_s18 + $0x538] sm:$0xff]  ;;  %v7239_v3 = vcombine.low %v717_v57, %v721_v58  ;;  %v7248_v5 = vcombine.high %v725_v8, %v729_v0  ;;  %v781_v58 = vld [vmem:[%s8804_s18 + $0x6d0] sm:$0xff] }
 0x256   : > { %v7250_v6 = vcombine.high %v726_v1, %v730_v2 }
 0x258   : > { %2302 = vmatpush1.bf16.msra.mxu0 %v7183_v11  ;;  %2384 = vmatpush1.bf16.msra.mxu1 %v7185_v12  ;;  %v738_v11 = vld [vmem:[%s8804_s18 + $0x578] sm:$0xff]  ;;  %v7247_v12 = vcombine.low %v725_v8, %v729_v0  ;;  %v789_v0 = vld [vmem:[%s8804_s18 + $0x710] sm:$0xff] }
 0x259   : > { %2303 = vmatprep.subr.bf16.mxu0 %v7192_v13  ;;  %2385 = vmatprep.subr.bf16.mxu1 %v7194_v14  ;;  %v7249_v13 = vcombine.low %v726_v1, %v730_v2  ;;  %v7256_v14 = vcombine.high %v733_v7, %v737_v9  ;;  %v7258_v15 = vcombine.high %v734_v10, %v738_v11  ;;  %v793_v1 = vld [vmem:[%s8804_s18 + $0x730] sm:$0xff]  ;;  %v790_v2 = vld [vmem:[%s8804_s18 + $0x718] sm:$0xff] }
 0x25c   : > { %2304 = vmatpush1.bf16.msra.mxu0 %v7191_v19  ;;  %2386 = vmatpush1.bf16.msra.mxu1 %v7193_v20  ;;  %v746_v19 = vld [vmem:[%s8804_s18 + $0x5b8] sm:$0xff]  ;;  %v7255_v20 = vcombine.low %v733_v7, %v737_v9  ;;  %v797_v9 = vld [vmem:[%s8804_s18 + $0x750] sm:$0xff] }
 0x25d   : > { %2305 = vmatprep.subr.bf16.mxu0 %v7200_v21  ;;  %2387 = vmatprep.subr.bf16.mxu1 %v7202_v22  ;;  %v7257_v21 = vcombine.low %v734_v10, %v738_v11  ;;  %v7264_v22 = vcombine.high %v741_v16, %v745_v17  ;;  %v7266_v23 = vcombine.high %v742_v18, %v746_v19  ;;  %v801_v10 = vld [vmem:[%s8804_s18 + $0x770] sm:$0xff]  ;;  %v798_v11 = vld [vmem:[%s8804_s18 + $0x758] sm:$0xff] }
 0x260   : > { %2306 = vmatpush1.bf16.msra.mxu0 %v7199_v28  ;;  %2388 = vmatpush1.bf16.msra.mxu1 %v7201_v29  ;;  %v754_v28 = vld [vmem:[%s8804_s18 + $0x5f8] sm:$0xff]  ;;  %v7263_v29 = vcombine.low %v741_v16, %v745_v17  ;;  %v805_v17 = vld [vmem:[%s8804_s18 + $0x790] sm:$0xff] }
 0x261   : > { %2307 = vmatprep.subr.bf16.mxu0 %v7208_v31  ;;  %2389 = vmatprep.subr.bf16.mxu1 %v7210_v32  ;;  %v7265_v31 = vcombine.low %v742_v18, %v746_v19  ;;  %v7272_v32 = vcombine.high %v749_v24, %v753_v25  ;;  %v7274_v33 = vcombine.high %v750_v26, %v754_v28  ;;  %v809_v18 = vld [vmem:[%s8804_s18 + $0x7b0] sm:$0xff]  ;;  %v806_v19 = vld [vmem:[%s8804_s18 + $0x798] sm:$0xff] }
 0x264   : > { %2308 = vmatpush1.bf16.msra.mxu0 %v7207_v38  ;;  %2390 = vmatpush1.bf16.msra.mxu1 %v7209_v39  ;;  %v762_v38 = vld [vmem:[%s8804_s18 + $0x638] sm:$0xff]  ;;  %v7271_v39 = vcombine.low %v749_v24, %v753_v25  ;;  %v813_v25 = vld [vmem:[%s8804_s18 + $0x7d0] sm:$0xff] }
 0x265   : > { %2318 = vmatprep.subr.bf16.mxu0 %v7216_v40  ;;  %2400 = vmatprep.subr.bf16.mxu1 %v7218_v41  ;;  %v7273_v40 = vcombine.low %v750_v26, %v754_v28  ;;  %v7280_v41 = vcombine.high %v757_v34, %v761_v35  ;;  %v7282_v42 = vcombine.high %v758_v36, %v762_v38  ;;  %v817_v26 = vld [vmem:[%s8804_s18 + $0x7f0] sm:$0xff]  ;;  %v814_v28 = vld [vmem:[%s8804_s18 + $0x7d8] sm:$0xff] }
 0x267   : > { %2310 = vmatmul.mubr.bf16.vlgmr.msra.gmra.mrb[4].mxu0 %v8898_v27  ;;  %2392 = vmatmul.mubr.bf16.vlgmr.msra.gmra.mrb[4].mxu1 %v8898_v27  ;;  %v7231_v27 = vcombine.low %v709_v49, %v713_v50  ;;  %v773_v50 = vld [vmem:[%s8804_s18 + $0x690] sm:$0xff] }
 0x268   : > { %2319 = vmatpush1.bf16.msra.mxu0 %v7215_v30  ;;  %2401 = vmatpush1.bf16.msra.mxu1 %v7217_v46  ;;  %v770_v30 = vld [vmem:[%s8804_s18 + $0x678] sm:$0xff]  ;;  %v7279_v46 = vcombine.low %v757_v34, %v761_v35  ;;  %v7335_v35 = vcombine.low %v813_v25, %v817_v26 }
 0x269   : > { %2320 = vmatprep.subr.bf16.mxu0 %v7224_v47  ;;  %2402 = vmatprep.subr.bf16.mxu1 %v7226_v48  ;;  %v7281_v47 = vcombine.low %v758_v36, %v762_v38  ;;  %v7288_v48 = vcombine.high %v765_v43, %v769_v44  ;;  %v7290_v49 = vcombine.high %v766_v45, %v770_v30  ;;  %v8511_v38 = vmov 0.0  }
 0x26a   : > { %2350 = vmatprep.mubr.bf16.mxu0 %v8908_v4  ;;  %2432 = vmatprep.mubr.bf16.mxu1 %v8908_v4  ;;  %v7241_v4 = vcombine.low %v718_v59, %v722_v60  ;;  %v785_v59 = vld [vmem:[%s8804_s18 + $0x6f0] sm:$0xff]  ;;  %v782_v60 = vld [vmem:[%s8804_s18 + $0x6d8] sm:$0xff] }
 0x26c   : > { %2321 = vmatpush1.bf16.msra.mxu0 %v7223_v53  ;;  %2403 = vmatpush1.bf16.msra.mxu1 %v7225_v54  ;;  %v778_v53 = vld [vmem:[%s8804_s18 + $0x6b8] sm:$0xff]  ;;  %v7287_v54 = vcombine.low %v765_v43, %v769_v44 }
 0x26d   : > { %2322 = vmatprep.subr.bf16.mxu0 %v7232_v55  ;;  %2404 = vmatprep.subr.bf16.mxu1 %v7234_v56  ;;  %v7289_v55 = vcombine.low %v766_v45, %v770_v30  ;;  %v7296_v56 = vcombine.high %v773_v50, %v777_v51  ;;  %v7298_v57 = vcombine.high %v774_v52, %v778_v53 }
 0x270   : > { %2323 = vmatpush1.bf16.msra.mxu0 %v7231_v27  ;;  %2405 = vmatpush1.bf16.msra.mxu1 %v7233_v61  ;;  %v786_v27 = vld [vmem:[%s8804_s18 + $0x6f8] sm:$0xff]  ;;  %v7295_v61 = vcombine.low %v773_v50, %v777_v51  ;;  %v2753_v51 = vld [vmem:[%s8810_s19] sm:$0xff] }
 0x271   : > { %2324 = vmatprep.subr.bf16.mxu0 %v7240_v62  ;;  %2406 = vmatprep.subr.bf16.mxu1 %v7242_v63  ;;  %v7297_v62 = vcombine.low %v774_v52, %v778_v53  ;;  %v7304_v63 = vcombine.high %v781_v58, %v785_v59  ;;  %v7306_v8 = vcombine.high %v782_v60, %v786_v27  ;;  %v2757_v52 = vld [vmem:[%s8810_s19 + $0x20] sm:$0xff] }
 0x274   : > { %2325 = vmatpush1.bf16.msra.mxu0 %v7239_v3  ;;  %2407 = vmatpush1.bf16.msra.mxu1 %v7241_v4  ;;  %v794_v3 = vld [vmem:[%s8804_s18 + $0x738] sm:$0xff]  ;;  %v7303_v4 = vcombine.low %v781_v58, %v785_v59 }
 0x275   : > { %2326 = vmatprep.subr.bf16.mxu0 %v7248_v5  ;;  %2408 = vmatprep.subr.bf16.mxu1 %v7250_v6  ;;  %v7305_v5 = vcombine.low %v782_v60, %v786_v27  ;;  %v7312_v6 = vcombine.high %v789_v0, %v793_v1  ;;  %v7314_v7 = vcombine.high %v790_v2, %v794_v3  ;;  %v2761_v60 = vld [vmem:[%s8810_s19 + $0x40] sm:$0xff] }
 0x276   : > { %v2765_v27 = vld [vmem:[%s8810_s19 + $0x60] sm:$0xff] }
 0x278   : > { %2327 = vmatpush1.bf16.msra.mxu0 %v7247_v12  ;;  %2409 = vmatpush1.bf16.msra.mxu1 %v7249_v13  ;;  %v802_v12 = vld [vmem:[%s8804_s18 + $0x778] sm:$0xff]  ;;  %v7311_v13 = vcombine.low %v789_v0, %v793_v1  ;;  %v7344_v0 = vcombine.high %v2753_v51, %v2757_v52  ;;  %v2889_v1 = vld [vmem:[%s8810_s19 + $0x440] sm:$0xff] }
 0x279   : > { %2328 = vmatprep.subr.bf16.mxu0 %v7256_v14  ;;  %2410 = vmatprep.subr.bf16.mxu1 %v7258_v15  ;;  %v7313_v14 = vcombine.low %v790_v2, %v794_v3  ;;  %v7320_v15 = vcombine.high %v797_v9, %v801_v10  ;;  %v7322_v16 = vcombine.high %v798_v11, %v802_v12  ;;  %v2893_v2 = vld [vmem:[%s8810_s19 + $0x460] sm:$0xff] }
 0x27c   : > { %2329 = vmatpush1.bf16.msra.mxu0 %v7255_v20  ;;  %2411 = vmatpush1.bf16.msra.mxu1 %v7257_v21  ;;  %v810_v20 = vld [vmem:[%s8804_s18 + $0x7b8] sm:$0xff]  ;;  %v7319_v21 = vcombine.low %v797_v9, %v801_v10  ;;  %v7352_v9 = vcombine.high %v2761_v60, %v2765_v27  ;;  %v7480_v10 = vcombine.high %v2889_v1, %v2893_v2 }
 0x27d   : > { %2330 = vmatprep.subr.bf16.mxu0 %v7264_v22  ;;  %2412 = vmatprep.subr.bf16.mxu1 %v7266_v23  ;;  %v7321_v22 = vcombine.low %v798_v11, %v802_v12  ;;  %v7328_v23 = vcombine.high %v805_v17, %v809_v18  ;;  %v7330_v24 = vcombine.high %v806_v19, %v810_v20  ;;  %v2769_v11 = vld [vmem:[%s8810_s19 + $0x80] sm:$0xff] }
 0x27e   : > { %v2773_v12 = vld [vmem:[%s8810_s19 + $0xa0] sm:$0xff] }
 0x280   : > { %2331 = vmatpush1.bf16.msra.mxu0 %v7263_v29  ;;  %2413 = vmatpush1.bf16.msra.mxu1 %v7265_v31  ;;  %v818_v29 = vld [vmem:[%s8804_s18 + $0x7f8] sm:$0xff]  ;;  %v7327_v31 = vcombine.low %v805_v17, %v809_v18  ;;  %v7360_v17 = vcombine.high %v2769_v11, %v2773_v12 }
 0x281   : > { %2332 = vmatprep.subr.bf16.mxu0 %v7272_v32  ;;  %2414 = vmatprep.subr.bf16.mxu1 %v7274_v33  ;;  %v7329_v32 = vcombine.low %v806_v19, %v810_v20  ;;  %v7336_v33 = vcombine.high %v813_v25, %v817_v26  ;;  %v7338_v34 = vcombine.high %v814_v28, %v818_v29  ;;  %v2777_v19 = vld [vmem:[%s8810_s19 + $0xc0] sm:$0xff] }
 0x282   : > { %v7337_v36 = vcombine.low %v814_v28, %v818_v29  ;;  %v2781_v20 = vld [vmem:[%s8810_s19 + $0xe0] sm:$0xff] }
 0x283   : > { %v7368_v25 = vcombine.high %v2777_v19, %v2781_v20  ;;  %v2785_v28 = vld [vmem:[%s8810_s19 + $0x100] sm:$0xff] }
 0x284   : > { %2333 = vmatpush1.bf16.msra.mxu0 %v7271_v39  ;;  %2415 = vmatpush1.bf16.msra.mxu1 %v7273_v40  ;;  %v2789_v29 = vld [vmem:[%s8810_s19 + $0x120] sm:$0xff] }
 0x285   : > { %2334 = vmatprep.subr.bf16.mxu0 %v7280_v41  ;;  %2416 = vmatprep.subr.bf16.mxu1 %v7282_v42 }
 0x288   : > { %2335 = vmatpush1.bf16.msra.mxu0 %v7279_v46  ;;  %2417 = vmatpush1.bf16.msra.mxu1 %v7281_v47 }
 0x289   : > { %2336 = vmatprep.subr.bf16.mxu0 %v7288_v48  ;;  %2418 = vmatprep.subr.bf16.mxu1 %v7290_v49  ;;  %v560_v48 = vld [vmem:[#allocation3] sm:$0xff] }
 0x28c   : > { %2337 = vmatpush1.bf16.msra.mxu0 %v7287_v54  ;;  %2419 = vmatpush1.bf16.msra.mxu1 %v7289_v55  ;;  %v2881_v55 = vld [vmem:[%s8810_s19 + $0x400] sm:$0xff] }
 0x28d   : > { %2338 = vmatprep.subr.bf16.mxu0 %v7296_v56  ;;  %2420 = vmatprep.subr.bf16.mxu1 %v7298_v57  ;;  %v2885_v56 = vld [vmem:[%s8810_s19 + $0x420] sm:$0xff] }
 0x290   : > { %2339 = vmatpush1.bf16.msra.mxu0 %v7295_v61  ;;  %2421 = vmatpush1.bf16.msra.mxu1 %v7297_v62 }
 0x291   : > { %2340 = vmatprep.subr.bf16.mxu0 %v7304_v63  ;;  %2422 = vmatprep.subr.bf16.mxu1 %v7306_v8 }
 0x294   : > { %2341 = vmatpush1.bf16.msra.mxu0 %v7303_v4  ;;  %2423 = vmatpush1.bf16.msra.mxu1 %v7305_v5  ;;  %v7343_v5 = vcombine.low %v2753_v51, %v2757_v52  ;;  %v2809_v52 = vld [vmem:[%s8810_s19 + $0x1c0] sm:$0xff] }
 0x295   : > { %2342 = vmatprep.subr.bf16.mxu0 %v7312_v6  ;;  %2424 = vmatprep.subr.bf16.mxu1 %v7314_v7  ;;  %v7472_v6 = vcombine.high %v2881_v55, %v2885_v56  ;;  %v7471_v7 = vcombine.low %v2881_v55, %v2885_v56  ;;  %v2941_v55 = vld [vmem:[%s8810_s19 + $0x5e0] sm:$0xff] }
 0x298   : > { %2343 = vmatpush1.bf16.msra.mxu0 %v7311_v13  ;;  %2425 = vmatpush1.bf16.msra.mxu1 %v7313_v14  ;;  %v2897_v13 = vld [vmem:[%s8810_s19 + $0x480] sm:$0xff] }
 0x299   : > { %2344 = vmatprep.subr.bf16.mxu0 %v7320_v15  ;;  %2426 = vmatprep.subr.bf16.mxu1 %v7322_v16  ;;  %v2901_v14 = vld [vmem:[%s8810_s19 + $0x4a0] sm:$0xff]  ;;  %v7351_v15 = vcombine.low %v2761_v60, %v2765_v27  ;;  %v7479_v16 = vcombine.low %v2889_v1, %v2893_v2 }
 0x29a   : > { %v7488_v18 = vcombine.high %v2897_v13, %v2901_v14  ;;  %v2817_v60 = vld [vmem:[%s8810_s19 + $0x200] sm:$0xff] }
 0x29b   : > { %v2821_v27 = vld [vmem:[%s8810_s19 + $0x220] sm:$0xff] }
 0x29c   : > { %2345 = vmatpush1.bf16.msra.mxu0 %v7319_v21  ;;  %2427 = vmatpush1.bf16.msra.mxu1 %v7321_v22  ;;  %v2905_v21 = vld [vmem:[%s8810_s19 + $0x4c0] sm:$0xff] }
 0x29d   : > { %2346 = vmatprep.subr.bf16.mxu0 %v7328_v23  ;;  %2428 = vmatprep.subr.bf16.mxu1 %v7330_v24  ;;  %v2909_v22 = vld [vmem:[%s8810_s19 + $0x4e0] sm:$0xff]  ;;  %v7359_v23 = vcombine.low %v2769_v11, %v2773_v12  ;;  %v7487_v24 = vcombine.low %v2897_v13, %v2901_v14 }
 0x29e   : > { %v7496_v26 = vcombine.high %v2905_v21, %v2909_v22  ;;  %v2825_v2 = vld [vmem:[%s8810_s19 + $0x240] sm:$0xff] }
 0x29f   : > { %v2833_v11 = vld [vmem:[%s8810_s19 + $0x280] sm:$0xff] }
 0x2a0   : > { %2347 = vmatpush1.bf16.msra.mxu0 %v7327_v31  ;;  %2429 = vmatpush1.bf16.msra.mxu1 %v7329_v32  ;;  %v2913_v31 = vld [vmem:[%s8810_s19 + $0x500] sm:$0xff] }
 0x2a1   : > { %2348 = vmatprep.subr.bf16.mxu0 %v7336_v33  ;;  %2430 = vmatprep.subr.bf16.mxu1 %v7338_v34  ;;  %v2917_v32 = vld [vmem:[%s8810_s19 + $0x520] sm:$0xff]  ;;  %v7367_v33 = vcombine.low %v2777_v19, %v2781_v20  ;;  %v7495_v34 = vcombine.low %v2905_v21, %v2909_v22 }
 0x2a2   : > { %v2837_v12 = vld [vmem:[%s8810_s19 + $0x2a0] sm:$0xff] }
 0x2a3   : > { %v2961_v13 = vld [vmem:[%s8810_s19 + $0x680] sm:$0xff] }
 0x2a4   : > { %2349 = vmatpush1.bf16.msra.mxu0 %v7335_v35  ;;  %2431 = vmatpush1.bf16.msra.mxu1 %v7337_v36  ;;  %v7376_v35 = vcombine.high %v2785_v28, %v2789_v29  ;;  %v7504_v36 = vcombine.high %v2913_v31, %v2917_v32  ;;  %v2965_v14 = vld [vmem:[%s8810_s19 + $0x6a0] sm:$0xff] }
 0x2a5   : > { %v2841_v19 = vld [vmem:[%s8810_s19 + $0x2c0] sm:$0xff] }
 0x2a6   : > { %v2845_v20 = vld [vmem:[%s8810_s19 + $0x2e0] sm:$0xff] }
 0x2a7   : > { %2351 = vmatmul.mubr.bf16.vlgmr.msra.gmra.mrb[4].mxu0 %v8976_v37  ;;  %2433 = vmatmul.mubr.bf16.vlgmr.msra.gmra.mrb[4].mxu1 %v8976_v37  ;;  %v2969_v21 = vld [vmem:[%s8810_s19 + $0x6c0] sm:$0xff] }
 0x2a8   : > { %2517 = vmatprep.mubr.f32.mxu0 %v8511_v38  ;;  %2588 = vmatprep.mubr.f32.mxu1 %v8511_v38  ;;  %v2973_v22 = vld [vmem:[%s8810_s19 + $0x6e0] sm:$0xff] }
 0x2fa   : > { %v2188_v39 = vpop.f32.mrb[0].mxu0  ;;  %v2270_v40 = vpop.f32.mrb[0].mxu1 }
 0x2fb   : > { %v2190_v41 = vpop.f32.mrb[1].mxu0  ;;  %v2272_v43 = vpop.f32.mrb[1].mxu1  ;;  %v2441_v45 = vmax.f32 %v2188_v39, 0.0  ;;  %v2443_v49 = vmax.f32 %v2270_v40, 0.0  ;;  %v2797_v39 = vld [vmem:[%s8810_s19 + $0x160] sm:$0xff] }
 0x2fc   : > { %v2442_v42 = vmax.f32 %v2190_v41, 0.0  ;;  %v2192_v44 = vpop.f32.mrb[2].mxu0  ;;  %v2444_v30 = vmax.f32 %v2272_v43, 0.0  ;;  %v2274_v46 = vpop.f32.mrb[2].mxu1  ;;  %v2921_v40 = vld [vmem:[%s8810_s19 + $0x540] sm:$0xff]  ;;  %v7503_v43 = vcombine.low %v2913_v31, %v2917_v32 }
 0x2fd   : > { %v2193_v47 = vpop.f32.mrb[3].mxu0  ;;  %v2275_v37 = vpop.f32.mrb[3].mxu1  ;;  %v2925_v41 = vld [vmem:[%s8810_s19 + $0x560] sm:$0xff] }
 0x2fe   : > { %2453 = vmatprep.subr.mxu0 %v2442_v42  ;;  %2524 = vmatprep.subr.mxu1 %v2444_v30  ;;  %v7375_v42 = vcombine.low %v2785_v28, %v2789_v29  ;;  %v2801_v30 = vld [vmem:[%s8810_s19 + $0x180] sm:$0xff]  ;;  %v7511_v37 = vcombine.low %v2921_v40, %v2925_v41 }
 0x2ff   : > { %2454 = vmatpush1.msra.mxu0 %v2441_v45  ;;  %2525 = vmatpush1.msra.mxu1 %v2443_v49  ;;  %v7512_v45 = vcombine.high %v2921_v40, %v2925_v41  ;;  %v2805_v46 = vld [vmem:[%s8810_s19 + $0x1a0] sm:$0xff] }
 0x300   : > { %7339 = vmatmul.mubr.msk.f32.vlgmr.msra.gmra.mrb[8].mxu0 %vm2449_vm1, %v560_v48  ;;  %7340 = vmatmul.mubr.msk.f32.vlgmr.msra.gmra.mrb[8].mxu1 %vm2449_vm1, %v560_v48  ;;  %v2929_v47 = vld [vmem:[%s8810_s19 + $0x580] sm:$0xff]  ;;  %v7391_v56 = vcombine.low %v2801_v30, %v2805_v46 }
 0x301   : > { %2659 = vmatprep.mubr.f32.mxu0 %v8511_v38  ;;  %2730 = vmatprep.mubr.f32.mxu1 %v8511_v38  ;;  %v2793_v38 = vld [vmem:[%s8810_s19 + $0x140] sm:$0xff] }
 0x302   : > { %v7384_v44 = vcombine.high %v2793_v38, %v2797_v39  ;;  %v7383_v49 = vcombine.low %v2793_v38, %v2797_v39  ;;  %v2849_v28 = vld [vmem:[%s8810_s19 + $0x300] sm:$0xff] }
 0x303   : > { %v2853_v29 = vld [vmem:[%s8810_s19 + $0x320] sm:$0xff] }
 0x304   : > { %v2977_v31 = vld [vmem:[%s8810_s19 + $0x700] sm:$0xff] }
 0x305   : > { %v2981_v32 = vld [vmem:[%s8810_s19 + $0x720] sm:$0xff] }
 0x306   : > { %v2857_v38 = vld [vmem:[%s8810_s19 + $0x340] sm:$0xff] }
 0x307   : > { %v2861_v39 = vld [vmem:[%s8810_s19 + $0x360] sm:$0xff] }
 0x308   : > { %v2985_v40 = vld [vmem:[%s8810_s19 + $0x740] sm:$0xff] }
 0x309   : > { %v2989_v41 = vld [vmem:[%s8810_s19 + $0x760] sm:$0xff] }
 0x37a   : > { %v2352_v50 = vpop.f32.mrb[4].mxu0  ;;  %v2434_v53 = vpop.f32.mrb[4].mxu1 }
 0x37b   : > { %v2354_v54 = vpop.f32.mrb[5].mxu0  ;;  %v2436_v58 = vpop.f32.mrb[5].mxu1  ;;  %v2445_v61 = vmax.f32 %v2352_v50, 0.0  ;;  %v2447_v3 = vmax.f32 %v2434_v53, 0.0  ;;  %v7392_v50 = vcombine.high %v2801_v30, %v2805_v46  ;;  %v2813_v53 = vld [vmem:[%s8810_s19 + $0x1e0] sm:$0xff] }
 0x37c   : > { %v2446_v57 = vmax.f32 %v2354_v54, 0.0  ;;  %v2356_v59 = vpop.f32.mrb[6].mxu0  ;;  %v2448_v62 = vmax.f32 %v2436_v58, 0.0  ;;  %v2438_v63 = vpop.f32.mrb[6].mxu1  ;;  %v2937_v54 = vld [vmem:[%s8810_s19 + $0x5c0] sm:$0xff]  ;;  %v7400_v58 = vcombine.high %v2809_v52, %v2813_v53 }
 0x37d   : > { %v2357_v8 = vpop.f32.mrb[7].mxu0  ;;  %v2439_v4 = vpop.f32.mrb[7].mxu1  ;;  %v7528_v59 = vcombine.high %v2937_v54, %v2941_v55  ;;  %v7399_v63 = vcombine.low %v2809_v52, %v2813_v53  ;;  %v2865_v30 = vld [vmem:[%s8810_s19 + $0x380] sm:$0xff] }
 0x37e   : > { %2595 = vmatprep.subr.mxu0 %v2446_v57  ;;  %2666 = vmatprep.subr.mxu1 %v2448_v62  ;;  %v2949_v62 = vld [vmem:[%s8810_s19 + $0x620] sm:$0xff]  ;;  %v7527_v8 = vcombine.low %v2937_v54, %v2941_v55 }
 0x37f   : > { %2596 = vmatpush1.msra.mxu0 %v2445_v61  ;;  %2667 = vmatpush1.msra.mxu1 %v2447_v3  ;;  %v2945_v61 = vld [vmem:[%s8810_s19 + $0x600] sm:$0xff] }
 0x380   : > { %7341 = vmatmul.mubr.msk.f32.vlgmr.msra.gmra.mrb[10].mxu0 %vm2449_vm1, %v560_v48  ;;  %7342 = vmatmul.mubr.msk.f32.vlgmr.msra.gmra.mrb[10].mxu1 %vm2449_vm1, %v560_v48  ;;  %v2933_v48 = vld [vmem:[%s8810_s19 + $0x5a0] sm:$0xff]  ;;  %v7536_v1 = vcombine.high %v2945_v61, %v2949_v62 }
 0x381   : > { %5825 = vmatprep.subr.bf16.mxu0 %v7344_v0  ;;  %5866 = vmatprep.subr.bf16.mxu1 %v7472_v6  ;;  %v7520_v51 = vcombine.high %v2929_v47, %v2933_v48  ;;  %v7519_v57 = vcombine.low %v2929_v47, %v2933_v48  ;;  %v7408_v0 = vcombine.high %v2817_v60, %v2821_v27  ;;  %v2829_v3 = vld [vmem:[%s8810_s19 + $0x260] sm:$0xff] }
 0x382   : > { %5826 = vmatpush1.bf16.msra.mxu0 %v7343_v5  ;;  %5867 = vmatpush1.bf16.msra.mxu1 %v7471_v7  ;;  %v2953_v4 = vld [vmem:[%s8810_s19 + $0x640] sm:$0xff]  ;;  %v7407_v6 = vcombine.low %v2817_v60, %v2821_v27  ;;  %v7535_v7 = vcombine.low %v2945_v61, %v2949_v62 }
 0x383   : > { %5827 = vmatprep.subr.bf16.mxu0 %v7352_v9  ;;  %5868 = vmatprep.subr.bf16.mxu1 %v7480_v10  ;;  %v2957_v5 = vld [vmem:[%s8810_s19 + $0x660] sm:$0xff]  ;;  %v7416_v9 = vcombine.high %v2825_v2, %v2829_v3 }
 0x384   : > { %v7544_v10 = vcombine.high %v2953_v4, %v2957_v5  ;;  %v2869_v46 = vld [vmem:[%s8810_s19 + $0x3a0] sm:$0xff] }
 0x385   : > { %v2993_v47 = vld [vmem:[%s8810_s19 + $0x780] sm:$0xff] }
 0x386   : > { %5828 = vmatpush1.bf16.msra.mxu0 %v7351_v15  ;;  %5869 = vmatpush1.bf16.msra.mxu1 %v7479_v16  ;;  %v7415_v15 = vcombine.low %v2825_v2, %v2829_v3  ;;  %v7543_v16 = vcombine.low %v2953_v4, %v2957_v5  ;;  %v2997_v48 = vld [vmem:[%s8810_s19 + $0x7a0] sm:$0xff] }
 0x387   : > { %5829 = vmatprep.subr.bf16.mxu0 %v7360_v17  ;;  %5870 = vmatprep.subr.bf16.mxu1 %v7488_v18  ;;  %v7424_v17 = vcombine.high %v2833_v11, %v2837_v12  ;;  %v7552_v18 = vcombine.high %v2961_v13, %v2965_v14  ;;  %v2873_v52 = vld [vmem:[%s8810_s19 + $0x3c0] sm:$0xff] }
 0x388   : > { %v2877_v53 = vld [vmem:[%s8810_s19 + $0x3e0] sm:$0xff] }
 0x389   : > { %v3001_v54 = vld [vmem:[%s8810_s19 + $0x7c0] sm:$0xff] }
 0x38a   : > { %5830 = vmatpush1.bf16.msra.mxu0 %v7359_v23  ;;  %5871 = vmatpush1.bf16.msra.mxu1 %v7487_v24  ;;  %v7423_v23 = vcombine.low %v2833_v11, %v2837_v12  ;;  %v7551_v24 = vcombine.low %v2961_v13, %v2965_v14  ;;  %v3005_v55 = vld [vmem:[%s8810_s19 + $0x7e0] sm:$0xff] }
 0x38b   : > { %5831 = vmatprep.subr.bf16.mxu0 %v7368_v25  ;;  %5872 = vmatprep.subr.bf16.mxu1 %v7496_v26  ;;  %v7432_v25 = vcombine.high %v2841_v19, %v2845_v20  ;;  %v7560_v26 = vcombine.high %v2969_v21, %v2973_v22  ;;  %v3009_v60 = vld [vmem:[%s8810_s19 + $0x800] sm:$0xff] }
 0x38c   : > { %v3013_v27 = vld [vmem:[%s8810_s19 + $0x820] sm:$0xff] }
 0x38d   : > { %v3137_v61 = vld [vmem:[%s8810_s19 + $0xc00] sm:$0xff]  ;;  %v7599_v14 = vcombine.low %v3009_v60, %v3013_v27 }
 0x38e   : > { %5832 = vmatpush1.bf16.msra.mxu0 %v7367_v33  ;;  %5873 = vmatpush1.bf16.msra.mxu1 %v7495_v34  ;;  %v7431_v33 = vcombine.low %v2841_v19, %v2845_v20  ;;  %v7559_v34 = vcombine.low %v2969_v21, %v2973_v22  ;;  %v3141_v62 = vld [vmem:[%s8810_s19 + $0xc20] sm:$0xff]  ;;  %v9204_v21 = vld [vmem:[%s8810_s19 + $0x428] sm:$0xff] }
 0x38f   : > { %5833 = vmatprep.subr.bf16.mxu0 %v7376_v35  ;;  %5874 = vmatprep.subr.bf16.mxu1 %v7504_v36  ;;  %v7440_v35 = vcombine.high %v2849_v28, %v2853_v29  ;;  %v7568_v36 = vcombine.high %v2977_v31, %v2981_v32  ;;  %v3017_v3 = vld [vmem:[%s8810_s19 + $0x840] sm:$0xff]  ;;  %v7727_v19 = vcombine.low %v3137_v61, %v3141_v62 }
 0x390   : > { %v3021_v4 = vld [vmem:[%s8810_s19 + $0x860] sm:$0xff] }
 0x391   : > { %v7608_v20 = vcombine.high %v3017_v3, %v3021_v4 }
 0x392   : > { %5834 = vmatpush1.bf16.msra.mxu0 %v7375_v42  ;;  %5875 = vmatpush1.bf16.msra.mxu1 %v7503_v43  ;;  %v7439_v42 = vcombine.low %v2849_v28, %v2853_v29  ;;  %v7567_v43 = vcombine.low %v2977_v31, %v2981_v32  ;;  %v3153_v28 = vld [vmem:[%s8810_s19 + $0xc80] sm:$0xff]  ;;  %v7607_v31 = vcombine.low %v3017_v3, %v3021_v4 }
 0x393   : > { %5835 = vmatprep.subr.bf16.mxu0 %v7384_v44  ;;  %5876 = vmatprep.subr.bf16.mxu1 %v7512_v45  ;;  %v7448_v44 = vcombine.high %v2857_v38, %v2861_v39  ;;  %v7576_v45 = vcombine.high %v2985_v40, %v2989_v41  ;;  %v3157_v29 = vld [vmem:[%s8810_s19 + $0xca0] sm:$0xff] }
 0x394   : > { %v3197_v3 = vld [vmem:[%s8810_s19 + $0xde0] sm:$0xff] }
 0x396   : > { %5836 = vmatpush1.bf16.msra.mxu0 %v7383_v49  ;;  %5877 = vmatpush1.bf16.msra.mxu1 %v7511_v37  ;;  %v7447_v49 = vcombine.low %v2857_v38, %v2861_v39  ;;  %v7575_v37 = vcombine.low %v2985_v40, %v2989_v41  ;;  %v3161_v38 = vld [vmem:[%s8810_s19 + $0xcc0] sm:$0xff]  ;;  %v7743_v41 = vcombine.low %v3153_v28, %v3157_v29 }
 0x397   : > { %5837 = vmatprep.subr.bf16.mxu0 %v7392_v50  ;;  %5878 = vmatprep.subr.bf16.mxu1 %v7520_v51  ;;  %v7456_v50 = vcombine.high %v2865_v30, %v2869_v46  ;;  %v7584_v51 = vcombine.high %v2993_v47, %v2997_v48  ;;  %v3165_v39 = vld [vmem:[%s8810_s19 + $0xce0] sm:$0xff] }
 0x39a   : > { %5838 = vmatpush1.bf16.msra.mxu0 %v7391_v56  ;;  %5879 = vmatpush1.bf16.msra.mxu1 %v7519_v57  ;;  %v7455_v56 = vcombine.low %v2865_v30, %v2869_v46  ;;  %v7583_v57 = vcombine.low %v2993_v47, %v2997_v48  ;;  %v3169_v30 = vld [vmem:[%s8810_s19 + $0xd00] sm:$0xff]  ;;  %v7751_v48 = vcombine.low %v3161_v38, %v3165_v39 }
 0x39b   : > { %5839 = vmatprep.subr.bf16.mxu0 %v7400_v58  ;;  %5880 = vmatprep.subr.bf16.mxu1 %v7528_v59  ;;  %v7464_v58 = vcombine.high %v2873_v52, %v2877_v53  ;;  %v7592_v59 = vcombine.high %v3001_v54, %v3005_v55  ;;  %v3173_v46 = vld [vmem:[%s8810_s19 + $0xd20] sm:$0xff] }
 0x39e   : > { %5840 = vmatpush1.bf16.msra.mxu0 %v7399_v63  ;;  %5881 = vmatpush1.bf16.msra.mxu1 %v7527_v8  ;;  %v7463_v63 = vcombine.low %v2873_v52, %v2877_v53  ;;  %v7591_v8 = vcombine.low %v3001_v54, %v3005_v55  ;;  %v3177_v52 = vld [vmem:[%s8810_s19 + $0xd40] sm:$0xff]  ;;  %v7759_v55 = vcombine.low %v3169_v30, %v3173_v46 }
 0x39f   : > { %5841 = vmatprep.subr.bf16.mxu0 %v7408_v0  ;;  %5882 = vmatprep.subr.bf16.mxu1 %v7536_v1  ;;  %v7600_v0 = vcombine.high %v3009_v60, %v3013_v27  ;;  %v7728_v1 = vcombine.high %v3137_v61, %v3141_v62  ;;  %v3181_v53 = vld [vmem:[%s8810_s19 + $0xd60] sm:$0xff] }
 0x3a0   : > { %v3185_v60 = vld [vmem:[%s8810_s19 + $0xd80] sm:$0xff]  ;;  %v7767_v62 = vcombine.low %v3177_v52, %v3181_v53 }
 0x3a1   : > { %v3189_v27 = vld [vmem:[%s8810_s19 + $0xda0] sm:$0xff] }
 0x3a2   : > { %5842 = vmatpush1.bf16.msra.mxu0 %v7407_v6  ;;  %5883 = vmatpush1.bf16.msra.mxu1 %v7535_v7 }
 0x3a3   : > { %5843 = vmatprep.subr.bf16.mxu0 %v7416_v9  ;;  %5884 = vmatprep.subr.bf16.mxu1 %v7544_v10  ;;  %v3145_v9 = vld [vmem:[%s8810_s19 + $0xc40] sm:$0xff] }
 0x3a4   : > { %v3149_v10 = vld [vmem:[%s8810_s19 + $0xc60] sm:$0xff] }
 0x3a5   : > { %v7736_v22 = vcombine.high %v3145_v9, %v3149_v10  ;;  %v7735_v32 = vcombine.low %v3145_v9, %v3149_v10  ;;  %v3073_v10 = vld [vmem:[%s8810_s19 + $0xa00] sm:$0xff] }
 0x3a6   : > { %5844 = vmatpush1.bf16.msra.mxu0 %v7415_v15  ;;  %5885 = vmatpush1.bf16.msra.mxu1 %v7543_v16  ;;  %v9193_v15 = vld [vmem:[%s8810_s19 + $0x8] sm:$0xff] }
 0x3a7   : > { %5845 = vmatprep.subr.bf16.mxu0 %v7424_v17  ;;  %5886 = vmatprep.subr.bf16.mxu1 %v7552_v18  ;;  %v9196_v16 = vld [vmem:[%s8810_s19 + $0x28] sm:$0xff] }
 0x3a8   : > { %v9199_v17 = vld [vmem:[%s8810_s19 + $0x408] sm:$0xff] }
 0x3aa   : > { %5846 = vmatpush1.bf16.msra.mxu0 %v7423_v23  ;;  %5887 = vmatpush1.bf16.msra.mxu1 %v7551_v24  ;;  %v3025_v23 = vld [vmem:[%s8810_s19 + $0x880] sm:$0xff] }
 0x3ab   : > { %5847 = vmatprep.subr.bf16.mxu0 %v7432_v25  ;;  %5888 = vmatprep.subr.bf16.mxu1 %v7560_v26  ;;  %v3029_v24 = vld [vmem:[%s8810_s19 + $0x8a0] sm:$0xff]  ;;  %v7345_v25 = vcombine.low %v9193_v15, %v9196_v16  ;;  %v7473_v26 = vcombine.low %v9199_v17, %v9204_v21 }
 0x3ac   : > { %v7615_v40 = vcombine.low %v3025_v23, %v3029_v24 }
 0x3ae   : > { %5848 = vmatpush1.bf16.msra.mxu0 %v7431_v33  ;;  %5889 = vmatpush1.bf16.msra.mxu1 %v7559_v34  ;;  %v7616_v33 = vcombine.high %v3025_v23, %v3029_v24  ;;  %v7744_v34 = vcombine.high %v3153_v28, %v3157_v29  ;;  %v3081_v28 = vld [vmem:[%s8810_s19 + $0xa40] sm:$0xff] }
 0x3af   : > { %5849 = vmatprep.subr.bf16.mxu0 %v7440_v35  ;;  %5890 = vmatprep.subr.bf16.mxu1 %v7568_v36  ;;  %v3033_v35 = vld [vmem:[%s8810_s19 + $0x8c0] sm:$0xff] }
 0x3b0   : > { %v3037_v36 = vld [vmem:[%s8810_s19 + $0x8e0] sm:$0xff] }
 0x3b1   : > { %v7623_v47 = vcombine.low %v3033_v35, %v3037_v36  ;;  %v3085_v29 = vld [vmem:[%s8810_s19 + $0xa60] sm:$0xff] }
 0x3b2   : > { %5850 = vmatpush1.bf16.msra.mxu0 %v7439_v42  ;;  %5891 = vmatpush1.bf16.msra.mxu1 %v7567_v43  ;;  %v7624_v42 = vcombine.high %v3033_v35, %v3037_v36  ;;  %v7752_v43 = vcombine.high %v3161_v38, %v3165_v39  ;;  %v7672_v35 = vcombine.high %v3081_v28, %v3085_v29  ;;  %v3089_v38 = vld [vmem:[%s8810_s19 + $0xa80] sm:$0xff] }
 0x3b3   : > { %5851 = vmatprep.subr.bf16.mxu0 %v7448_v44  ;;  %5892 = vmatprep.subr.bf16.mxu1 %v7576_v45  ;;  %v3041_v44 = vld [vmem:[%s8810_s19 + $0x900] sm:$0xff] }
 0x3b4   : > { %v3045_v45 = vld [vmem:[%s8810_s19 + $0x920] sm:$0xff] }
 0x3b5   : > { %v7631_v54 = vcombine.low %v3041_v44, %v3045_v45  ;;  %v3093_v39 = vld [vmem:[%s8810_s19 + $0xaa0] sm:$0xff] }
 0x3b6   : > { %5852 = vmatpush1.bf16.msra.mxu0 %v7447_v49  ;;  %5893 = vmatpush1.bf16.msra.mxu1 %v7575_v37  ;;  %v7632_v49 = vcombine.high %v3041_v44, %v3045_v45  ;;  %v7760_v37 = vcombine.high %v3169_v30, %v3173_v46  ;;  %v7680_v44 = vcombine.high %v3089_v38, %v3093_v39  ;;  %v3097_v30 = vld [vmem:[%s8810_s19 + $0xac0] sm:$0xff] }
 0x3b7   : > { %5853 = vmatprep.subr.bf16.mxu0 %v7456_v50  ;;  %5894 = vmatprep.subr.bf16.mxu1 %v7584_v51  ;;  %v3049_v50 = vld [vmem:[%s8810_s19 + $0x940] sm:$0xff] }
 0x3b8   : > { %v3053_v51 = vld [vmem:[%s8810_s19 + $0x960] sm:$0xff] }
 0x3b9   : > { %v7639_v61 = vcombine.low %v3049_v50, %v3053_v51  ;;  %v3101_v46 = vld [vmem:[%s8810_s19 + $0xae0] sm:$0xff] }
 0x3ba   : > { %5854 = vmatpush1.bf16.msra.mxu0 %v7455_v56  ;;  %5895 = vmatpush1.bf16.msra.mxu1 %v7583_v57  ;;  %v7640_v56 = vcombine.high %v3049_v50, %v3053_v51  ;;  %v7768_v57 = vcombine.high %v3177_v52, %v3181_v53  ;;  %v7688_v50 = vcombine.high %v3097_v30, %v3101_v46  ;;  %v3105_v52 = vld [vmem:[%s8810_s19 + $0xb00] sm:$0xff] }
 0x3bb   : > { %5855 = vmatprep.subr.bf16.mxu0 %v7464_v58  ;;  %5896 = vmatprep.subr.bf16.mxu1 %v7592_v59  ;;  %v3057_v58 = vld [vmem:[%s8810_s19 + $0x980] sm:$0xff] }
 0x3bc   : > { %v3061_v59 = vld [vmem:[%s8810_s19 + $0x9a0] sm:$0xff] }
 0x3bd   : > { %v7647_v4 = vcombine.low %v3057_v58, %v3061_v59  ;;  %v3109_v53 = vld [vmem:[%s8810_s19 + $0xb20] sm:$0xff] }
 0x3be   : > { %5856 = vmatpush1.bf16.msra.mxu0 %v7463_v63  ;;  %5897 = vmatpush1.bf16.msra.mxu1 %v7591_v8  ;;  %v7648_v63 = vcombine.high %v3057_v58, %v3061_v59  ;;  %v7776_v8 = vcombine.high %v3185_v60, %v3189_v27  ;;  %v7696_v58 = vcombine.high %v3105_v52, %v3109_v53 }
 0x3bf   : > { %5907 = vmatprep.subr.bf16.mxu0 %v7600_v0  ;;  %5948 = vmatprep.subr.bf16.mxu1 %v7728_v1  ;;  %v3065_v0 = vld [vmem:[%s8810_s19 + $0x9c0] sm:$0xff] }
 0x3c0   : > { %v3069_v1 = vld [vmem:[%s8810_s19 + $0x9e0] sm:$0xff] }
 0x3d3   : > { %v2519_v2 = vpop.f32.mrb[8].mxu0  ;;  %v2590_v7 = vpop.f32.mrb[8].mxu1 }
 0x3d4   : > { %v9184_v5 = vpack.c.bf16 %v2519_v2, %v2519_v2  ;;  %v2521_v6 = vpop.f32.mrb[9].mxu0  ;;  %v9190_v12 = vpack.c.bf16 %v2590_v7, %v2590_v7  ;;  %v2592_v13 = vpop.f32.mrb[9].mxu1  ;;  %v3193_v2 = vld [vmem:[%s8810_s19 + $0xdc0] sm:$0xff]  ;;  %v7656_v7 = vcombine.high %v3065_v0, %v3069_v1 }
 0x3d5   : > { %v9188_v11 = vpack.c.bf16 %v2521_v6, %v2521_v6  ;;  %v9201_v18 = vpack.c.bf16 %v2592_v13, %v2592_v13  ;;  %v7775_v6 = vcombine.low %v3185_v60, %v3189_v27  ;;  %v7784_v9 = vcombine.high %v3193_v2, %v3197_v3  ;;  %v3077_v13 = vld [vmem:[%s8810_s19 + $0xa20] sm:$0xff] }
 0x3d6   : > { %v7664_v23 = vcombine.high %v3073_v10, %v3077_v13  ;;  %v3113_v60 = vld [vmem:[%s8810_s19 + $0xb40] sm:$0xff] }
 0x3d7   : > { %5857 = vmatprep.mubr.bf16.mxu0 %v9188_v11  ;;  %5898 = vmatprep.mubr.bf16.mxu1 %v9201_v18  ;;  %v3117_v27 = vld [vmem:[%s8810_s19 + $0xb60] sm:$0xff] }
 0x3d8   : > { %5858 = vmatmul.mubr.bf16.vlgmr.msra.gmra.mrb[12].mxu0 %v9184_v5  ;;  %5899 = vmatmul.mubr.bf16.vlgmr.msra.gmra.mrb[12].mxu1 %v9190_v12 }
 0x3d9   : > { %5908 = vmatpush1.bf16.msra.mxu0 %v7599_v14  ;;  %5949 = vmatpush1.bf16.msra.mxu1 %v7727_v19  ;;  %v3201_v14 = vld [vmem:[%s8810_s19 + $0xe00] sm:$0xff] }
 0x3da   : > { %5909 = vmatprep.subr.bf16.mxu0 %v7608_v20  ;;  %5950 = vmatprep.subr.bf16.mxu1 %v7736_v22  ;;  %v3205_v19 = vld [vmem:[%s8810_s19 + $0xe20] sm:$0xff]  ;;  %v7655_v20 = vcombine.low %v3065_v0, %v3069_v1  ;;  %v7783_v22 = vcombine.low %v3193_v2, %v3197_v3  ;;  %v7704_v0 = vcombine.high %v3113_v60, %v3117_v27 }
 0x3db   : > { %v7792_v24 = vcombine.high %v3201_v14, %v3205_v19  ;;  %v3121_v2 = vld [vmem:[%s8810_s19 + $0xb80] sm:$0xff] }
 0x3dc   : > { %v3125_v3 = vld [vmem:[%s8810_s19 + $0xba0] sm:$0xff] }
 0x3dd   : > { %5910 = vmatpush1.bf16.msra.mxu0 %v7607_v31  ;;  %5951 = vmatpush1.bf16.msra.mxu1 %v7735_v32  ;;  %v3209_v31 = vld [vmem:[%s8810_s19 + $0xe40] sm:$0xff] }
 0x3de   : > { %5911 = vmatprep.subr.bf16.mxu0 %v7616_v33  ;;  %5952 = vmatprep.subr.bf16.mxu1 %v7744_v34  ;;  %v3213_v32 = vld [vmem:[%s8810_s19 + $0xe60] sm:$0xff]  ;;  %v7663_v33 = vcombine.low %v3073_v10, %v3077_v13  ;;  %v7791_v34 = vcombine.low %v3201_v14, %v3205_v19  ;;  %v7712_v10 = vcombine.high %v3121_v2, %v3125_v3 }
 0x3df   : > { %v7800_v36 = vcombine.high %v3209_v31, %v3213_v32  ;;  %v3129_v14 = vld [vmem:[%s8810_s19 + $0xbc0] sm:$0xff] }
 0x3e0   : > { %v3133_v19 = vld [vmem:[%s8810_s19 + $0xbe0] sm:$0xff] }
 0x3e1   : > { %5912 = vmatpush1.bf16.msra.mxu0 %v7615_v40  ;;  %5953 = vmatpush1.bf16.msra.mxu1 %v7743_v41  ;;  %v3217_v40 = vld [vmem:[%s8810_s19 + $0xe80] sm:$0xff] }
 0x3e2   : > { %5913 = vmatprep.subr.bf16.mxu0 %v7624_v42  ;;  %5954 = vmatprep.subr.bf16.mxu1 %v7752_v43  ;;  %v3221_v41 = vld [vmem:[%s8810_s19 + $0xea0] sm:$0xff]  ;;  %v7671_v42 = vcombine.low %v3081_v28, %v3085_v29  ;;  %v7799_v43 = vcombine.low %v3209_v31, %v3213_v32  ;;  %v7720_v28 = vcombine.high %v3129_v14, %v3133_v19 }
 0x3e3   : > { %v7808_v45 = vcombine.high %v3217_v40, %v3221_v41  ;;  %v7719_v31 = vcombine.low %v3129_v14, %v3133_v19  ;;  %v2930_v14 = vld [vmem:[%s8810_s19 + $0x588] sm:$0xff] }
 0x3e4   : > { %v2934_v19 = vld [vmem:[%s8810_s19 + $0x5a8] sm:$0xff] }
 0x3e5   : > { %5914 = vmatpush1.bf16.msra.mxu0 %v7623_v47  ;;  %5955 = vmatpush1.bf16.msra.mxu1 %v7751_v48  ;;  %v3225_v47 = vld [vmem:[%s8810_s19 + $0xec0] sm:$0xff] }
 0x3e6   : > { %5915 = vmatprep.subr.bf16.mxu0 %v7632_v49  ;;  %5956 = vmatprep.subr.bf16.mxu1 %v7760_v37  ;;  %v3229_v48 = vld [vmem:[%s8810_s19 + $0xee0] sm:$0xff]  ;;  %v7679_v49 = vcombine.low %v3089_v38, %v3093_v39  ;;  %v7807_v37 = vcombine.low %v3217_v40, %v3221_v41  ;;  %v2762_v39 = vld [vmem:[%s8810_s19 + $0x48] sm:$0xff] }
 0x3e7   : > { %v7816_v51 = vcombine.high %v3225_v47, %v3229_v48  ;;  %v2766_v40 = vld [vmem:[%s8810_s19 + $0x68] sm:$0xff] }
 0x3e9   : > { %5916 = vmatpush1.bf16.msra.mxu0 %v7631_v54  ;;  %5957 = vmatpush1.bf16.msra.mxu1 %v7759_v55  ;;  %v3233_v54 = vld [vmem:[%s8810_s19 + $0xf00] sm:$0xff] }
 0x3ea   : > { %5917 = vmatprep.subr.bf16.mxu0 %v7640_v56  ;;  %5958 = vmatprep.subr.bf16.mxu1 %v7768_v57  ;;  %v3237_v55 = vld [vmem:[%s8810_s19 + $0xf20] sm:$0xff]  ;;  %v7687_v56 = vcombine.low %v3097_v30, %v3101_v46  ;;  %v7815_v57 = vcombine.low %v3225_v47, %v3229_v48  ;;  %v7354_v47 = vcombine.high %v2762_v39, %v2766_v40  ;;  %v2770_v48 = vld [vmem:[%s8810_s19 + $0x88] sm:$0xff] }
 0x3eb   : > { %v7824_v59 = vcombine.high %v3233_v54, %v3237_v55 }
 0x3ed   : > { %5918 = vmatpush1.bf16.msra.mxu0 %v7639_v61  ;;  %5959 = vmatpush1.bf16.msra.mxu1 %v7767_v62  ;;  %v3241_v61 = vld [vmem:[%s8810_s19 + $0xf40] sm:$0xff] }
 0x3ee   : > { %5919 = vmatprep.subr.bf16.mxu0 %v7648_v63  ;;  %5960 = vmatprep.subr.bf16.mxu1 %v7776_v8  ;;  %v3245_v62 = vld [vmem:[%s8810_s19 + $0xf60] sm:$0xff]  ;;  %v7695_v63 = vcombine.low %v3105_v52, %v3109_v53  ;;  %v7823_v8 = vcombine.low %v3233_v54, %v3237_v55  ;;  %v7353_v52 = vcombine.low %v2762_v39, %v2766_v40  ;;  %v2822_v39 = vld [vmem:[%s8810_s19 + $0x228] sm:$0xff] }
 0x3ef   : > { %v7832_v1 = vcombine.high %v3241_v61, %v3245_v62  ;;  %v2946_v40 = vld [vmem:[%s8810_s19 + $0x608] sm:$0xff] }
 0x3f1   : > { %5920 = vmatpush1.bf16.msra.mxu0 %v7647_v4  ;;  %5961 = vmatpush1.bf16.msra.mxu1 %v7775_v6  ;;  %v3249_v4 = vld [vmem:[%s8810_s19 + $0xf80] sm:$0xff] }
 0x3f2   : > { %5921 = vmatprep.subr.bf16.mxu0 %v7656_v7  ;;  %5962 = vmatprep.subr.bf16.mxu1 %v7784_v9  ;;  %v3253_v6 = vld [vmem:[%s8810_s19 + $0xfa0] sm:$0xff]  ;;  %v7703_v7 = vcombine.low %v3113_v60, %v3117_v27  ;;  %v7831_v9 = vcombine.low %v3241_v61, %v3245_v62  ;;  %v2914_v60 = vld [vmem:[%s8810_s19 + $0x508] sm:$0xff] }
 0x3f3   : > { %v7840_v13 = vcombine.high %v3249_v4, %v3253_v6  ;;  %v2918_v27 = vld [vmem:[%s8810_s19 + $0x528] sm:$0xff] }
 0x3f5   : > { %5922 = vmatpush1.bf16.msra.mxu0 %v7655_v20  ;;  %5963 = vmatpush1.bf16.msra.mxu1 %v7783_v22  ;;  %v3257_v20 = vld [vmem:[%s8810_s19 + $0xfc0] sm:$0xff] }
 0x3f6   : > { %5923 = vmatprep.subr.bf16.mxu0 %v7664_v23  ;;  %5964 = vmatprep.subr.bf16.mxu1 %v7792_v24  ;;  %v3261_v22 = vld [vmem:[%s8810_s19 + $0xfe0] sm:$0xff]  ;;  %v7711_v23 = vcombine.low %v3121_v2, %v3125_v3  ;;  %v7839_v24 = vcombine.low %v3249_v4, %v3253_v6  ;;  %v2922_v2 = vld [vmem:[%s8810_s19 + $0x548] sm:$0xff]  ;;  %v7505_v6 = vcombine.low %v2914_v60, %v2918_v27 }
 0x3f7   : > { %v7848_v29 = vcombine.high %v3257_v20, %v3261_v22  ;;  %v7847_v32 = vcombine.low %v3257_v20, %v3261_v22  ;;  %v2926_v3 = vld [vmem:[%s8810_s19 + $0x568] sm:$0xff] }
 0x3f8   : > { %v7513_v22 = vcombine.low %v2922_v2, %v2926_v3 }
 0x3f9   : > { %5924 = vmatpush1.bf16.msra.mxu0 %v7663_v33  ;;  %5965 = vmatpush1.bf16.msra.mxu1 %v7791_v34  ;;  %v7346_v33 = vcombine.high %v9193_v15, %v9196_v16  ;;  %v7474_v34 = vcombine.high %v9199_v17, %v9204_v21  ;;  %v2782_v15 = vld [vmem:[%s8810_s19 + $0xe8] sm:$0xff] }
 0x3fa   : > { %5925 = vmatprep.subr.bf16.mxu0 %v7672_v35  ;;  %5966 = vmatprep.subr.bf16.mxu1 %v7800_v36  ;;  %v2906_v16 = vld [vmem:[%s8810_s19 + $0x4c8] sm:$0xff] }
 0x3fd   : > { %5926 = vmatpush1.bf16.msra.mxu0 %v7671_v42  ;;  %5967 = vmatpush1.bf16.msra.mxu1 %v7799_v43 }
 0x3fe   : > { %5927 = vmatprep.subr.bf16.mxu0 %v7680_v44  ;;  %5968 = vmatprep.subr.bf16.mxu1 %v7808_v45  ;;  %v2890_v44 = vld [vmem:[%s8810_s19 + $0x448] sm:$0xff] }
 0x3ff   : > { %v2894_v45 = vld [vmem:[%s8810_s19 + $0x468] sm:$0xff] }
 0x400   : > { %v7481_v53 = vcombine.low %v2890_v44, %v2894_v45 }
 0x401   : > { %5928 = vmatpush1.bf16.msra.mxu0 %v7679_v49  ;;  %5969 = vmatpush1.bf16.msra.mxu1 %v7807_v37  ;;  %v2774_v49 = vld [vmem:[%s8810_s19 + $0xa8] sm:$0xff]  ;;  %v7482_v37 = vcombine.high %v2890_v44, %v2894_v45 }
 0x402   : > { %5929 = vmatprep.subr.bf16.mxu0 %v7688_v50  ;;  %5970 = vmatprep.subr.bf16.mxu1 %v7816_v51  ;;  %v2898_v50 = vld [vmem:[%s8810_s19 + $0x488] sm:$0xff]  ;;  %v7362_v54 = vcombine.high %v2770_v48, %v2774_v49  ;;  %v7361_v17 = vcombine.low %v2770_v48, %v2774_v49 }
 0x403   : > { %v2902_v51 = vld [vmem:[%s8810_s19 + $0x4a8] sm:$0xff] }
 0x404   : > { %v7490_v55 = vcombine.high %v2898_v50, %v2902_v51  ;;  %v7489_v21 = vcombine.low %v2898_v50, %v2902_v51  ;;  %v2826_v49 = vld [vmem:[%s8810_s19 + $0x248] sm:$0xff] }
 0x405   : > { %5930 = vmatpush1.bf16.msra.mxu0 %v7687_v56  ;;  %5971 = vmatpush1.bf16.msra.mxu1 %v7815_v57  ;;  %v2778_v56 = vld [vmem:[%s8810_s19 + $0xc8] sm:$0xff] }
 0x406   : > { %5931 = vmatprep.subr.bf16.mxu0 %v7696_v58  ;;  %5972 = vmatprep.subr.bf16.mxu1 %v7824_v59  ;;  %v2786_v58 = vld [vmem:[%s8810_s19 + $0x108] sm:$0xff]  ;;  %v7369_v61 = vcombine.low %v2778_v56, %v2782_v15 }
 0x407   : > { %v2790_v59 = vld [vmem:[%s8810_s19 + $0x128] sm:$0xff] }
 0x408   : > { %v7377_v4 = vcombine.low %v2786_v58, %v2790_v59  ;;  %v2954_v50 = vld [vmem:[%s8810_s19 + $0x648] sm:$0xff] }
 0x409   : > { %5932 = vmatpush1.bf16.msra.mxu0 %v7695_v63  ;;  %5973 = vmatpush1.bf16.msra.mxu1 %v7823_v8  ;;  %v7378_v63 = vcombine.high %v2786_v58, %v2790_v59  ;;  %v7506_v8 = vcombine.high %v2914_v60, %v2918_v27  ;;  %v2958_v51 = vld [vmem:[%s8810_s19 + $0x668] sm:$0xff] }
 0x40a   : > { %5933 = vmatprep.subr.bf16.mxu0 %v7704_v0  ;;  %5974 = vmatprep.subr.bf16.mxu1 %v7832_v1  ;;  %v2794_v0 = vld [vmem:[%s8810_s19 + $0x148] sm:$0xff] }
 0x40b   : > { %v2798_v1 = vld [vmem:[%s8810_s19 + $0x168] sm:$0xff] }
 0x40c   : > { %v7385_v20 = vcombine.low %v2794_v0, %v2798_v1  ;;  %v2842_v58 = vld [vmem:[%s8810_s19 + $0x2c8] sm:$0xff] }
 0x40d   : > { %5934 = vmatpush1.bf16.msra.mxu0 %v7703_v7  ;;  %5975 = vmatpush1.bf16.msra.mxu1 %v7831_v9  ;;  %v7386_v7 = vcombine.high %v2794_v0, %v2798_v1  ;;  %v7514_v9 = vcombine.high %v2922_v2, %v2926_v3  ;;  %v2846_v59 = vld [vmem:[%s8810_s19 + $0x2e8] sm:$0xff] }
 0x40e   : > { %5935 = vmatprep.subr.bf16.mxu0 %v7712_v10  ;;  %5976 = vmatprep.subr.bf16.mxu1 %v7840_v13  ;;  %v2802_v10 = vld [vmem:[%s8810_s19 + $0x188] sm:$0xff] }
 0x40f   : > { %v2806_v13 = vld [vmem:[%s8810_s19 + $0x1a8] sm:$0xff] }
 0x410   : > { %v2970_v60 = vld [vmem:[%s8810_s19 + $0x6c8] sm:$0xff] }
 0x411   : > { %5936 = vmatpush1.bf16.msra.mxu0 %v7711_v23  ;;  %5977 = vmatpush1.bf16.msra.mxu1 %v7839_v24  ;;  %v7394_v23 = vcombine.high %v2802_v10, %v2806_v13  ;;  %v7522_v24 = vcombine.high %v2930_v14, %v2934_v19  ;;  %v2974_v27 = vld [vmem:[%s8810_s19 + $0x6e8] sm:$0xff] }
 0x412   : > { %5937 = vmatprep.subr.bf16.mxu0 %v7720_v28  ;;  %5978 = vmatprep.subr.bf16.mxu1 %v7848_v29  ;;  %v2810_v28 = vld [vmem:[%s8810_s19 + $0x1c8] sm:$0xff] }
 0x413   : > { %v2814_v29 = vld [vmem:[%s8810_s19 + $0x1e8] sm:$0xff] }
 0x414   : > { %v7401_v44 = vcombine.low %v2810_v28, %v2814_v29  ;;  %v2850_v0 = vld [vmem:[%s8810_s19 + $0x308] sm:$0xff] }
 0x415   : > { %5938 = vmatpush1.bf16.msra.mxu0 %v7719_v31  ;;  %5979 = vmatpush1.bf16.msra.mxu1 %v7847_v32  ;;  %v2938_v31 = vld [vmem:[%s8810_s19 + $0x5c8] sm:$0xff] }
 0x416   : > { %5989 = vmatprep.subr.bf16.mxu0 %v7346_v33  ;;  %6030 = vmatprep.subr.bf16.mxu1 %v7474_v34  ;;  %v2942_v32 = vld [vmem:[%s8810_s19 + $0x5e8] sm:$0xff]  ;;  %v7393_v33 = vcombine.low %v2802_v10, %v2806_v13  ;;  %v7521_v34 = vcombine.low %v2930_v14, %v2934_v19 }
 0x417   : > { %v7529_v45 = vcombine.low %v2938_v31, %v2942_v32  ;;  %v2854_v1 = vld [vmem:[%s8810_s19 + $0x328] sm:$0xff] }
 0x418   : > { %v2978_v2 = vld [vmem:[%s8810_s19 + $0x708] sm:$0xff] }
 0x419   : > { %v2982_v3 = vld [vmem:[%s8810_s19 + $0x728] sm:$0xff] }
 0x41a   : > { %v2858_v10 = vld [vmem:[%s8810_s19 + $0x348] sm:$0xff] }
 0x41b   : > { %v2862_v13 = vld [vmem:[%s8810_s19 + $0x368] sm:$0xff] }
 0x41c   : > { %v2986_v14 = vld [vmem:[%s8810_s19 + $0x748] sm:$0xff] }
 0x41d   : > { %v2990_v19 = vld [vmem:[%s8810_s19 + $0x768] sm:$0xff] }
 0x453   : > { %v2661_v35 = vpop.f32.mrb[10].mxu0  ;;  %v2732_v36 = vpop.f32.mrb[10].mxu1 }
 0x454   : > { %v2663_v38 = vpop.f32.mrb[11].mxu0  ;;  %v9276_v41 = vpack.c.bf16 %v2732_v36, %v2732_v36  ;;  %v2734_v43 = vpop.f32.mrb[11].mxu1  ;;  %v9282_v30 = vpack.c.bf16 %v2661_v35, %v2661_v35  ;;  %v7402_v35 = vcombine.high %v2810_v28, %v2814_v29  ;;  %v7530_v36 = vcombine.high %v2938_v31, %v2942_v32  ;;  %v2866_v28 = vld [vmem:[%s8810_s19 + $0x388] sm:$0xff] }
 0x455   : > { %v9278_v42 = vpack.c.bf16 %v2663_v38, %v2663_v38  ;;  %v9284_v46 = vpack.c.bf16 %v2734_v43, %v2734_v43  ;;  %v2818_v38 = vld [vmem:[%s8810_s19 + $0x208] sm:$0xff] }
 0x456   : > { %v2950_v43 = vld [vmem:[%s8810_s19 + $0x628] sm:$0xff] }
 0x457   : > { %5939 = vmatprep.mubr.bf16.mxu0 %v9278_v42  ;;  %5980 = vmatprep.mubr.bf16.mxu1 %v9284_v46  ;;  %v7538_v48 = vcombine.high %v2946_v40, %v2950_v43  ;;  %v2870_v29 = vld [vmem:[%s8810_s19 + $0x3a8] sm:$0xff] }
 0x458   : > { %5940 = vmatmul.mubr.bf16.vlgmr.msra.gmra.mrb[16].mxu0 %v9282_v30  ;;  %5981 = vmatmul.mubr.bf16.vlgmr.msra.gmra.mrb[16].mxu1 %v9276_v41  ;;  %v2994_v31 = vld [vmem:[%s8810_s19 + $0x788] sm:$0xff] }
 0x459   : > { %5990 = vmatpush1.bf16.msra.mxu0 %v7345_v25  ;;  %6031 = vmatpush1.bf16.msra.mxu1 %v7473_v26  ;;  %v2910_v25 = vld [vmem:[%s8810_s19 + $0x4e8] sm:$0xff]  ;;  %v7370_v26 = vcombine.high %v2778_v56, %v2782_v15 }
 0x45a   : > { %6021 = vmatprep.mubr.bf16.mxu0 %v9188_v11  ;;  %6062 = vmatprep.mubr.bf16.mxu1 %v9201_v18  ;;  %v7498_v57 = vcombine.high %v2906_v16, %v2910_v25  ;;  %v7497_v62 = vcombine.low %v2906_v16, %v2910_v25  ;;  %v2834_v56 = vld [vmem:[%s8810_s19 + $0x288] sm:$0xff] }
 0x45b   : > { %5991 = vmatprep.subr.bf16.mxu0 %v7354_v47  ;;  %6032 = vmatprep.subr.bf16.mxu1 %v7482_v37  ;;  %v7410_v47 = vcombine.high %v2818_v38, %v2822_v39  ;;  %v2830_v37 = vld [vmem:[%s8810_s19 + $0x268] sm:$0xff] }
 0x45c   : > { %v2838_v15 = vld [vmem:[%s8810_s19 + $0x2a8] sm:$0xff] }
 0x45d   : > { %5992 = vmatpush1.bf16.msra.mxu0 %v7353_v52  ;;  %6033 = vmatpush1.bf16.msra.mxu1 %v7481_v53  ;;  %v7409_v52 = vcombine.low %v2818_v38, %v2822_v39  ;;  %v7537_v53 = vcombine.low %v2946_v40, %v2950_v43  ;;  %v2962_v16 = vld [vmem:[%s8810_s19 + $0x688] sm:$0xff] }
 0x45e   : > { %5993 = vmatprep.subr.bf16.mxu0 %v7362_v54  ;;  %6034 = vmatprep.subr.bf16.mxu1 %v7490_v55  ;;  %v7418_v54 = vcombine.high %v2826_v49, %v2830_v37  ;;  %v7546_v55 = vcombine.high %v2954_v50, %v2958_v51  ;;  %v2966_v25 = vld [vmem:[%s8810_s19 + $0x6a8] sm:$0xff] }
 0x45f   : > { %v2998_v32 = vld [vmem:[%s8810_s19 + $0x7a8] sm:$0xff] }
 0x460   : > { %v2874_v38 = vld [vmem:[%s8810_s19 + $0x3c8] sm:$0xff] }
 0x461   : > { %5994 = vmatpush1.bf16.msra.mxu0 %v7361_v17  ;;  %6035 = vmatpush1.bf16.msra.mxu1 %v7489_v21  ;;  %v7417_v17 = vcombine.low %v2826_v49, %v2830_v37  ;;  %v7545_v21 = vcombine.low %v2954_v50, %v2958_v51  ;;  %v2878_v39 = vld [vmem:[%s8810_s19 + $0x3e8] sm:$0xff] }
 0x462   : > { %5995 = vmatprep.subr.bf16.mxu0 %v7370_v26  ;;  %6036 = vmatprep.subr.bf16.mxu1 %v7498_v57  ;;  %v7426_v26 = vcombine.high %v2834_v56, %v2838_v15  ;;  %v7554_v57 = vcombine.high %v2962_v16, %v2966_v25  ;;  %v3002_v40 = vld [vmem:[%s8810_s19 + $0x7c8] sm:$0xff] }
 0x463   : > { %v3006_v43 = vld [vmem:[%s8810_s19 + $0x7e8] sm:$0xff] }
 0x464   : > { %v3010_v49 = vld [vmem:[%s8810_s19 + $0x808] sm:$0xff] }
 0x465   : > { %5996 = vmatpush1.bf16.msra.mxu0 %v7369_v61  ;;  %6037 = vmatpush1.bf16.msra.mxu1 %v7497_v62  ;;  %v7425_v61 = vcombine.low %v2834_v56, %v2838_v15  ;;  %v7553_v62 = vcombine.low %v2962_v16, %v2966_v25  ;;  %v3014_v37 = vld [vmem:[%s8810_s19 + $0x828] sm:$0xff] }
 0x466   : > { %5997 = vmatprep.subr.bf16.mxu0 %v7378_v63  ;;  %6038 = vmatprep.subr.bf16.mxu1 %v7506_v8  ;;  %v7434_v63 = vcombine.high %v2842_v58, %v2846_v59  ;;  %v7562_v8 = vcombine.high %v2970_v60, %v2974_v27  ;;  %v3138_v50 = vld [vmem:[%s8810_s19 + $0xc08] sm:$0xff]  ;;  %v7601_v16 = vcombine.low %v3010_v49, %v3014_v37 }
 0x467   : > { %v3142_v51 = vld [vmem:[%s8810_s19 + $0xc28] sm:$0xff] }
 0x468   : > { %v3018_v56 = vld [vmem:[%s8810_s19 + $0x848] sm:$0xff] }
 0x469   : > { %5998 = vmatpush1.bf16.msra.mxu0 %v7377_v4  ;;  %6039 = vmatpush1.bf16.msra.mxu1 %v7505_v6  ;;  %v7433_v4 = vcombine.low %v2842_v58, %v2846_v59  ;;  %v7561_v6 = vcombine.low %v2970_v60, %v2974_v27  ;;  %v3022_v15 = vld [vmem:[%s8810_s19 + $0x868] sm:$0xff] }
 0x46a   : > { %5999 = vmatprep.subr.bf16.mxu0 %v7386_v7  ;;  %6040 = vmatprep.subr.bf16.mxu1 %v7514_v9  ;;  %v7442_v7 = vcombine.high %v2850_v0, %v2854_v1  ;;  %v7570_v9 = vcombine.high %v2978_v2, %v2982_v3  ;;  %v3146_v25 = vld [vmem:[%s8810_s19 + $0xc48] sm:$0xff] }
 0x46b   : > { %v3030_v58 = vld [vmem:[%s8810_s19 + $0x8a8] sm:$0xff] }
 0x46c   : > { %v3154_v60 = vld [vmem:[%s8810_s19 + $0xc88] sm:$0xff] }
 0x46d   : > { %6000 = vmatpush1.bf16.msra.mxu0 %v7385_v20  ;;  %6041 = vmatpush1.bf16.msra.mxu1 %v7513_v22  ;;  %v7441_v20 = vcombine.low %v2850_v0, %v2854_v1  ;;  %v7569_v22 = vcombine.low %v2978_v2, %v2982_v3  ;;  %v3158_v27 = vld [vmem:[%s8810_s19 + $0xca8] sm:$0xff] }
 0x46e   : > { %6001 = vmatprep.subr.bf16.mxu0 %v7394_v23  ;;  %6042 = vmatprep.subr.bf16.mxu1 %v7522_v24  ;;  %v7450_v23 = vcombine.high %v2858_v10, %v2862_v13  ;;  %v7578_v24 = vcombine.high %v2986_v14, %v2990_v19  ;;  %v3034_v0 = vld [vmem:[%s8810_s19 + $0x8c8] sm:$0xff] }
 0x46f   : > { %v3038_v1 = vld [vmem:[%s8810_s19 + $0x8e8] sm:$0xff] }
 0x470   : > { %v3162_v2 = vld [vmem:[%s8810_s19 + $0xcc8] sm:$0xff] }
 0x471   : > { %6002 = vmatpush1.bf16.msra.mxu0 %v7393_v33  ;;  %6043 = vmatpush1.bf16.msra.mxu1 %v7521_v34  ;;  %v7449_v33 = vcombine.low %v2858_v10, %v2862_v13  ;;  %v7577_v34 = vcombine.low %v2986_v14, %v2990_v19  ;;  %v3166_v3 = vld [vmem:[%s8810_s19 + $0xce8] sm:$0xff] }
 0x472   : > { %6003 = vmatprep.subr.bf16.mxu0 %v7402_v35  ;;  %6044 = vmatprep.subr.bf16.mxu1 %v7530_v36  ;;  %v7458_v35 = vcombine.high %v2866_v28, %v2870_v29  ;;  %v7586_v36 = vcombine.high %v2994_v31, %v2998_v32  ;;  %v3042_v10 = vld [vmem:[%s8810_s19 + $0x908] sm:$0xff] }
 0x473   : > { %v3046_v13 = vld [vmem:[%s8810_s19 + $0x928] sm:$0xff] }
 0x474   : > { %v3170_v14 = vld [vmem:[%s8810_s19 + $0xd08] sm:$0xff] }
 0x475   : > { %6004 = vmatpush1.bf16.msra.mxu0 %v7401_v44  ;;  %6045 = vmatpush1.bf16.msra.mxu1 %v7529_v45  ;;  %v7457_v44 = vcombine.low %v2866_v28, %v2870_v29  ;;  %v7585_v45 = vcombine.low %v2994_v31, %v2998_v32  ;;  %v3174_v19 = vld [vmem:[%s8810_s19 + $0xd28] sm:$0xff] }
 0x476   : > { %6005 = vmatprep.subr.bf16.mxu0 %v7410_v47  ;;  %6046 = vmatprep.subr.bf16.mxu1 %v7538_v48  ;;  %v7466_v47 = vcombine.high %v2874_v38, %v2878_v39  ;;  %v7594_v48 = vcombine.high %v3002_v40, %v3006_v43  ;;  %v3050_v28 = vld [vmem:[%s8810_s19 + $0x948] sm:$0xff] }
 0x477   : > { %v3054_v29 = vld [vmem:[%s8810_s19 + $0x968] sm:$0xff] }
 0x478   : > { %v3178_v31 = vld [vmem:[%s8810_s19 + $0xd48] sm:$0xff] }
 0x479   : > { %6006 = vmatpush1.bf16.msra.mxu0 %v7409_v52  ;;  %6047 = vmatpush1.bf16.msra.mxu1 %v7537_v53  ;;  %v7465_v52 = vcombine.low %v2874_v38, %v2878_v39  ;;  %v7593_v53 = vcombine.low %v3002_v40, %v3006_v43  ;;  %v3182_v32 = vld [vmem:[%s8810_s19 + $0xd68] sm:$0xff] }
 0x47a   : > { %6007 = vmatprep.subr.bf16.mxu0 %v7418_v54  ;;  %6048 = vmatprep.subr.bf16.mxu1 %v7546_v55  ;;  %v7602_v54 = vcombine.high %v3010_v49, %v3014_v37  ;;  %v7730_v55 = vcombine.high %v3138_v50, %v3142_v51  ;;  %v3058_v38 = vld [vmem:[%s8810_s19 + $0x988] sm:$0xff] }
 0x47b   : > { %v3062_v39 = vld [vmem:[%s8810_s19 + $0x9a8] sm:$0xff] }
 0x47c   : > { %v3186_v40 = vld [vmem:[%s8810_s19 + $0xd88] sm:$0xff] }
 0x47d   : > { %6008 = vmatpush1.bf16.msra.mxu0 %v7417_v17  ;;  %6049 = vmatpush1.bf16.msra.mxu1 %v7545_v21  ;;  %v3150_v17 = vld [vmem:[%s8810_s19 + $0xc68] sm:$0xff]  ;;  %v7729_v21 = vcombine.low %v3138_v50, %v3142_v51 }
 0x47e   : > { %6009 = vmatprep.subr.bf16.mxu0 %v7426_v26  ;;  %6050 = vmatprep.subr.bf16.mxu1 %v7554_v57  ;;  %v7610_v26 = vcombine.high %v3018_v56, %v3022_v15  ;;  %v3026_v57 = vld [vmem:[%s8810_s19 + $0x888] sm:$0xff]  ;;  %v7738_v59 = vcombine.high %v3146_v25, %v3150_v17 }
 0x47f   : > { %v3190_v43 = vld [vmem:[%s8810_s19 + $0xda8] sm:$0xff] }
 0x480   : > { %v3066_v49 = vld [vmem:[%s8810_s19 + $0x9c8] sm:$0xff] }
 0x481   : > { %6010 = vmatpush1.bf16.msra.mxu0 %v7425_v61  ;;  %6051 = vmatpush1.bf16.msra.mxu1 %v7553_v62  ;;  %v7609_v61 = vcombine.low %v3018_v56, %v3022_v15  ;;  %v7737_v62 = vcombine.low %v3146_v25, %v3150_v17  ;;  %v3070_v37 = vld [vmem:[%s8810_s19 + $0x9e8] sm:$0xff]  ;;  %v7777_v25 = vcombine.low %v3186_v40, %v3190_v43 }
 0x482   : > { %6011 = vmatprep.subr.bf16.mxu0 %v7434_v63  ;;  %6052 = vmatprep.subr.bf16.mxu1 %v7562_v8  ;;  %v7618_v63 = vcombine.high %v3026_v57, %v3030_v58  ;;  %v7746_v8 = vcombine.high %v3154_v60, %v3158_v27  ;;  %v3194_v51 = vld [vmem:[%s8810_s19 + $0xdc8] sm:$0xff]  ;;  %v7658_v17 = vcombine.high %v3066_v49, %v3070_v37 }
 0x485   : > { %6012 = vmatpush1.bf16.msra.mxu0 %v7433_v4  ;;  %6053 = vmatpush1.bf16.msra.mxu1 %v7561_v6  ;;  %v7617_v4 = vcombine.low %v3026_v57, %v3030_v58  ;;  %v7745_v6 = vcombine.low %v3154_v60, %v3158_v27  ;;  %v3078_v60 = vld [vmem:[%s8810_s19 + $0xa28] sm:$0xff] }
 0x486   : > { %6013 = vmatprep.subr.bf16.mxu0 %v7442_v7  ;;  %6054 = vmatprep.subr.bf16.mxu1 %v7570_v9  ;;  %v7626_v7 = vcombine.high %v3034_v0, %v3038_v1  ;;  %v7754_v9 = vcombine.high %v3162_v2, %v3166_v3 }
 0x489   : > { %6014 = vmatpush1.bf16.msra.mxu0 %v7441_v20  ;;  %6055 = vmatpush1.bf16.msra.mxu1 %v7569_v22  ;;  %v7625_v20 = vcombine.low %v3034_v0, %v3038_v1  ;;  %v7753_v22 = vcombine.low %v3162_v2, %v3166_v3  ;;  %v3082_v2 = vld [vmem:[%s8810_s19 + $0xa48] sm:$0xff] }
 0x48a   : > { %6015 = vmatprep.subr.bf16.mxu0 %v7450_v23  ;;  %6056 = vmatprep.subr.bf16.mxu1 %v7578_v24  ;;  %v7634_v23 = vcombine.high %v3042_v10, %v3046_v13  ;;  %v7762_v24 = vcombine.high %v3170_v14, %v3174_v19  ;;  %v3086_v3 = vld [vmem:[%s8810_s19 + $0xa68] sm:$0xff] }
 0x48d   : > { %6016 = vmatpush1.bf16.msra.mxu0 %v7449_v33  ;;  %6057 = vmatpush1.bf16.msra.mxu1 %v7577_v34  ;;  %v7633_v33 = vcombine.low %v3042_v10, %v3046_v13  ;;  %v7761_v34 = vcombine.low %v3170_v14, %v3174_v19  ;;  %v7674_v10 = vcombine.high %v3082_v2, %v3086_v3  ;;  %v3090_v14 = vld [vmem:[%s8810_s19 + $0xa88] sm:$0xff] }
 0x48e   : > { %6017 = vmatprep.subr.bf16.mxu0 %v7458_v35  ;;  %6058 = vmatprep.subr.bf16.mxu1 %v7586_v36  ;;  %v7642_v35 = vcombine.high %v3050_v28, %v3054_v29  ;;  %v7770_v36 = vcombine.high %v3178_v31, %v3182_v32  ;;  %v3094_v19 = vld [vmem:[%s8810_s19 + $0xaa8] sm:$0xff] }
 0x491   : > { %6018 = vmatpush1.bf16.msra.mxu0 %v7457_v44  ;;  %6059 = vmatpush1.bf16.msra.mxu1 %v7585_v45  ;;  %v7641_v44 = vcombine.low %v3050_v28, %v3054_v29  ;;  %v7769_v45 = vcombine.low %v3178_v31, %v3182_v32  ;;  %v7682_v28 = vcombine.high %v3090_v14, %v3094_v19  ;;  %v3098_v31 = vld [vmem:[%s8810_s19 + $0xac8] sm:$0xff] }
 0x492   : > { %6019 = vmatprep.subr.bf16.mxu0 %v7466_v47  ;;  %6060 = vmatprep.subr.bf16.mxu1 %v7594_v48  ;;  %v7650_v47 = vcombine.high %v3058_v38, %v3062_v39  ;;  %v7778_v48 = vcombine.high %v3186_v40, %v3190_v43  ;;  %v3102_v32 = vld [vmem:[%s8810_s19 + $0xae8] sm:$0xff] }
 0x493   : > { %v3106_v40 = vld [vmem:[%s8810_s19 + $0xb08] sm:$0xff] }
 0x494   : > { %v3110_v43 = vld [vmem:[%s8810_s19 + $0xb28] sm:$0xff] }
 0x495   : > { %6020 = vmatpush1.bf16.msra.mxu0 %v7465_v52  ;;  %6061 = vmatpush1.bf16.msra.mxu1 %v7593_v53  ;;  %v3198_v52 = vld [vmem:[%s8810_s19 + $0xde8] sm:$0xff] }
 0x496   : > { %6071 = vmatprep.subr.bf16.mxu0 %v7602_v54  ;;  %6112 = vmatprep.subr.bf16.mxu1 %v7730_v55  ;;  %v7649_v55 = vcombine.low %v3058_v38, %v3062_v39  ;;  %v7786_v58 = vcombine.high %v3194_v51, %v3198_v52  ;;  %v7690_v38 = vcombine.high %v3098_v31, %v3102_v32 }
 0x498   : > { %6022 = vmatmul.mubr.bf16.vlgmr.msra.gmra.mrb[20].mxu0 %v9184_v5  ;;  %6063 = vmatmul.mubr.bf16.vlgmr.msra.gmra.mrb[20].mxu1 %v9190_v12 }
 0x499   : > { %6072 = vmatpush1.bf16.msra.mxu0 %v7601_v16  ;;  %6103 = vmatprep.mubr.bf16.mxu0 %v9278_v42 }
 0x49a   : > { %6113 = vmatpush1.bf16.msra.mxu1 %v7729_v21  ;;  %6144 = vmatprep.mubr.bf16.mxu1 %v9284_v46 }
 0x49b   : > { %6073 = vmatprep.subr.bf16.mxu0 %v7610_v26  ;;  %6114 = vmatprep.subr.bf16.mxu1 %v7738_v59  ;;  %v3074_v59 = vld [vmem:[%s8810_s19 + $0xa08] sm:$0xff] }
 0x49c   : > { %v7666_v0 = vcombine.high %v3074_v59, %v3078_v60 }
 0x49d   : > { %6074 = vmatpush1.bf16.msra.mxu0 %v7609_v61  ;;  %v3202_v61 = vld [vmem:[%s8810_s19 + $0xe08] sm:$0xff] }
 0x49e   : > { %6115 = vmatpush1.bf16.msra.mxu1 %v7737_v62  ;;  %6075 = vmatprep.subr.bf16.mxu0 %v7618_v63  ;;  %v3206_v62 = vld [vmem:[%s8810_s19 + $0xe28] sm:$0xff]  ;;  %v7657_v63 = vcombine.low %v3066_v49, %v3070_v37  ;;  %v7698_v49 = vcombine.high %v3106_v40, %v3110_v43 }
 0x49f   : > { %6116 = vmatprep.subr.bf16.mxu1 %v7746_v8  ;;  %v7785_v8 = vcombine.low %v3194_v51, %v3198_v52  ;;  %v7794_v1 = vcombine.high %v3202_v61, %v3206_v62  ;;  %v3118_v51 = vld [vmem:[%s8810_s19 + $0xb68] sm:$0xff] }
 0x4a0   : > { %v3242_v52 = vld [vmem:[%s8810_s19 + $0xf48] sm:$0xff] }
 0x4a1   : > { %6076 = vmatpush1.bf16.msra.mxu0 %v7617_v4  ;;  %v3210_v4 = vld [vmem:[%s8810_s19 + $0xe48] sm:$0xff] }
 0x4a2   : > { %6117 = vmatpush1.bf16.msra.mxu1 %v7745_v6  ;;  %6077 = vmatprep.subr.bf16.mxu0 %v7626_v7  ;;  %v3214_v6 = vld [vmem:[%s8810_s19 + $0xe68] sm:$0xff]  ;;  %v7665_v7 = vcombine.low %v3074_v59, %v3078_v60 }
 0x4a3   : > { %6118 = vmatprep.subr.bf16.mxu1 %v7754_v9  ;;  %v7793_v9 = vcombine.low %v3202_v61, %v3206_v62  ;;  %v7802_v13 = vcombine.high %v3210_v4, %v3214_v6  ;;  %v3130_v61 = vld [vmem:[%s8810_s19 + $0xbc8] sm:$0xff] }
 0x4a4   : > { %v3134_v62 = vld [vmem:[%s8810_s19 + $0xbe8] sm:$0xff] }
 0x4a5   : > { %6078 = vmatpush1.bf16.msra.mxu0 %v7625_v20  ;;  %v3218_v20 = vld [vmem:[%s8810_s19 + $0xe88] sm:$0xff] }
 0x4a6   : > { %6119 = vmatpush1.bf16.msra.mxu1 %v7753_v22  ;;  %6079 = vmatprep.subr.bf16.mxu0 %v7634_v23  ;;  %v3222_v22 = vld [vmem:[%s8810_s19 + $0xea8] sm:$0xff]  ;;  %v7673_v23 = vcombine.low %v3082_v2, %v3086_v3  ;;  %v7722_v2 = vcombine.high %v3130_v61, %v3134_v62 }
 0x4a7   : > { %6120 = vmatprep.subr.bf16.mxu1 %v7762_v24  ;;  %v7801_v24 = vcombine.low %v3210_v4, %v3214_v6  ;;  %v7810_v29 = vcombine.high %v3218_v20, %v3222_v22  ;;  %v2755_v4 = vld [vmem:[%s8810_s19 + $0x10] sm:$0xff] }
 0x4a8   : > { %v2759_v6 = vld [vmem:[%s8810_s19 + $0x30] sm:$0xff] }
 0x4a9   : > { %6080 = vmatpush1.bf16.msra.mxu0 %v7633_v33  ;;  %v3226_v33 = vld [vmem:[%s8810_s19 + $0xec8] sm:$0xff] }
 0x4aa   : > { %6121 = vmatpush1.bf16.msra.mxu1 %v7761_v34  ;;  %6081 = vmatprep.subr.bf16.mxu0 %v7642_v35  ;;  %v3230_v34 = vld [vmem:[%s8810_s19 + $0xee8] sm:$0xff]  ;;  %v7681_v35 = vcombine.low %v3090_v14, %v3094_v19  ;;  %v7348_v14 = vcombine.high %v2755_v4, %v2759_v6 }
 0x4ab   : > { %6122 = vmatprep.subr.bf16.mxu1 %v7770_v36  ;;  %v5859_v50 = vpop.f32.mrb[12].mxu0  ;;  %v5900_v54 = vpop.f32.mrb[12].mxu1  ;;  %v7809_v36 = vcombine.low %v3218_v20, %v3222_v22  ;;  %v7818_v39 = vcombine.high %v3226_v33, %v3230_v34  ;;  %v2763_v20 = vld [vmem:[%s8810_s19 + $0x50] sm:$0xff] }
 0x4ac   : > { %v5861_v53 = vpop.f32.mrb[13].mxu0  ;;  %v9390_v15 = vadd.f32 %v5900_v54, %v5859_v50  ;;  %v5902_v16 = vpop.f32.mrb[13].mxu1  ;;  %v3114_v50 = vld [vmem:[%s8810_s19 + $0xb48] sm:$0xff]  ;;  %v7697_v54 = vcombine.low %v3106_v40, %v3110_v43  ;;  %v2767_v22 = vld [vmem:[%s8810_s19 + $0x70] sm:$0xff] }
 0x4ad   : > { %6082 = vmatpush1.bf16.msra.mxu0 %v7641_v44  ;;  %v5863_v56 = vpop.f32.mrb[14].mxu0  ;;  %v9392_v26 = vadd.f32 %v5902_v16, %v5861_v53  ;;  %v5904_v57 = vpop.f32.mrb[14].mxu1  ;;  %v3234_v44 = vld [vmem:[%s8810_s19 + $0xf08] sm:$0xff] }
 0x4ae   : > { %6123 = vmatpush1.bf16.msra.mxu1 %v7769_v45  ;;  %6083 = vmatprep.subr.bf16.mxu0 %v7650_v47  ;;  %v5864_v21 = vpop.f32.mrb[15].mxu0  ;;  %v5905_v27 = vpop.f32.mrb[15].mxu1  ;;  %v3238_v45 = vld [vmem:[%s8810_s19 + $0xf28] sm:$0xff]  ;;  %v7689_v47 = vcombine.low %v3098_v31, %v3102_v32  ;;  %v7706_v56 = vcombine.high %v3114_v50, %v3118_v51  ;;  %v7356_v31 = vcombine.high %v2763_v20, %v2767_v22  ;;  %v2771_v32 = vld [vmem:[%s8810_s19 + $0x90] sm:$0xff] }
 0x4af   : > { %6124 = vmatprep.subr.bf16.mxu1 %v7778_v48  ;;  %v7817_v48 = vcombine.low %v3226_v33, %v3230_v34  ;;  %v7826_v37 = vcombine.high %v3234_v44, %v3238_v45  ;;  %v3246_v53 = vld [vmem:[%s8810_s19 + $0xf68] sm:$0xff]  ;;  %v2775_v33 = vld [vmem:[%s8810_s19 + $0xb0] sm:$0xff] }
 0x4b0   : > { %v7834_v16 = vcombine.high %v3242_v52, %v3246_v53  ;;  %v3250_v21 = vld [vmem:[%s8810_s19 + $0xf88] sm:$0xff]  ;;  %v7833_v59 = vcombine.low %v3242_v52, %v3246_v53  ;;  %v7364_v40 = vcombine.high %v2771_v32, %v2775_v33  ;;  %v2787_v52 = vld [vmem:[%s8810_s19 + $0x110] sm:$0xff] }
 0x4b1   : > { %6084 = vmatpush1.bf16.msra.mxu0 %v7649_v55  ;;  %v7825_v55 = vcombine.low %v3234_v44, %v3238_v45  ;;  %v3254_v57 = vld [vmem:[%s8810_s19 + $0xfa8] sm:$0xff]  ;;  %v2779_v44 = vld [vmem:[%s8810_s19 + $0xd0] sm:$0xff] }
 0x4b2   : > { %6125 = vmatpush1.bf16.msra.mxu1 %v7777_v25  ;;  %6085 = vmatprep.subr.bf16.mxu0 %v7658_v17  ;;  %v3122_v25 = vld [vmem:[%s8810_s19 + $0xb88] sm:$0xff]  ;;  %v7842_v27 = vcombine.high %v3250_v21, %v3254_v57  ;;  %v2783_v45 = vld [vmem:[%s8810_s19 + $0xf0] sm:$0xff] }
 0x4b3   : > { %6126 = vmatprep.subr.bf16.mxu1 %v7786_v58  ;;  %v3126_v17 = vld [vmem:[%s8810_s19 + $0xba8] sm:$0xff]  ;;  %v7705_v58 = vcombine.low %v3114_v50, %v3118_v51  ;;  %v7372_v50 = vcombine.high %v2779_v44, %v2783_v45  ;;  %v2791_v53 = vld [vmem:[%s8810_s19 + $0x130] sm:$0xff] }
 0x4b4   : > { %v7714_v60 = vcombine.high %v3122_v25, %v3126_v17 }
 0x4b5   : > { %6086 = vmatpush1.bf16.msra.mxu0 %v7657_v63  ;;  %v3258_v63 = vld [vmem:[%s8810_s19 + $0xfc8] sm:$0xff] }
 0x4b6   : > { %6127 = vmatpush1.bf16.msra.mxu1 %v7785_v8  ;;  %6087 = vmatprep.subr.bf16.mxu0 %v7666_v0  ;;  %v3262_v8 = vld [vmem:[%s8810_s19 + $0xfe8] sm:$0xff]  ;;  %v7713_v0 = vcombine.low %v3122_v25, %v3126_v17  ;;  %v7380_v25 = vcombine.high %v2787_v52, %v2791_v53 }
 0x4b7   : > { %6128 = vmatprep.subr.bf16.mxu1 %v7794_v1  ;;  %v7841_v1 = vcombine.low %v3250_v21, %v3254_v57  ;;  %v7850_v3 = vcombine.high %v3258_v63, %v3262_v8  ;;  %v2795_v21 = vld [vmem:[%s8810_s19 + $0x150] sm:$0xff] }
 0x4b8   : > { %v2799_v57 = vld [vmem:[%s8810_s19 + $0x170] sm:$0xff] }
 0x4b9   : > { %6088 = vmatpush1.bf16.msra.mxu0 %v7665_v7  ;;  %v2883_v7 = vld [vmem:[%s8810_s19 + $0x410] sm:$0xff] }
 0x4ba   : > { %6129 = vmatpush1.bf16.msra.mxu1 %v7793_v9  ;;  %6089 = vmatprep.subr.bf16.mxu0 %v7674_v10  ;;  %v2887_v9 = vld [vmem:[%s8810_s19 + $0x430] sm:$0xff]  ;;  %v7721_v10 = vcombine.low %v3130_v61, %v3134_v62  ;;  %v7388_v61 = vcombine.high %v2795_v21, %v2799_v57 }
 0x4bb   : > { %6130 = vmatprep.subr.bf16.mxu1 %v7802_v13  ;;  %v7849_v13 = vcombine.low %v3258_v63, %v3262_v8  ;;  %v7476_v19 = vcombine.high %v2883_v7, %v2887_v9  ;;  %v2803_v63 = vld [vmem:[%s8810_s19 + $0x190] sm:$0xff] }
 0x4bc   : > { %v2807_v8 = vld [vmem:[%s8810_s19 + $0x1b0] sm:$0xff] }
 0x4bd   : > { %6090 = vmatpush1.bf16.msra.mxu0 %v7673_v23  ;;  %v7347_v23 = vcombine.low %v2755_v4, %v2759_v6  ;;  %v7396_v4 = vcombine.high %v2803_v63, %v2807_v8 }
 0x4be   : > { %6131 = vmatpush1.bf16.msra.mxu1 %v7801_v24  ;;  %6091 = vmatprep.subr.bf16.mxu0 %v7682_v28  ;;  %v2891_v24 = vld [vmem:[%s8810_s19 + $0x450] sm:$0xff] }
 0x4bf   : > { %6132 = vmatprep.subr.bf16.mxu1 %v7810_v29  ;;  %v2895_v28 = vld [vmem:[%s8810_s19 + $0x470] sm:$0xff]  ;;  %v7475_v29 = vcombine.low %v2883_v7, %v2887_v9 }
 0x4c0   : > { %v7484_v34 = vcombine.high %v2891_v24, %v2895_v28  ;;  %v2811_v7 = vld [vmem:[%s8810_s19 + $0x1d0] sm:$0xff] }
 0x4c1   : > { %6092 = vmatpush1.bf16.msra.mxu0 %v7681_v35  ;;  %v2899_v35 = vld [vmem:[%s8810_s19 + $0x490] sm:$0xff] }
 0x4c2   : > { %6133 = vmatpush1.bf16.msra.mxu1 %v7809_v36  ;;  %6093 = vmatprep.subr.bf16.mxu0 %v7690_v38  ;;  %v2903_v36 = vld [vmem:[%s8810_s19 + $0x4b0] sm:$0xff]  ;;  %v7355_v38 = vcombine.low %v2763_v20, %v2767_v22 }
 0x4c3   : > { %6134 = vmatprep.subr.bf16.mxu1 %v7818_v39  ;;  %v7483_v39 = vcombine.low %v2891_v24, %v2895_v28  ;;  %v7492_v43 = vcombine.high %v2899_v35, %v2903_v36  ;;  %v2815_v9 = vld [vmem:[%s8810_s19 + $0x1f0] sm:$0xff] }
 0x4c4   : > { %v7404_v20 = vcombine.high %v2811_v7, %v2815_v9  ;;  %v2823_v24 = vld [vmem:[%s8810_s19 + $0x230] sm:$0xff] }
 0x4c5   : > { %6094 = vmatpush1.bf16.msra.mxu0 %v7689_v47  ;;  %v2907_v47 = vld [vmem:[%s8810_s19 + $0x4d0] sm:$0xff] }
 0x4c6   : > { %6135 = vmatpush1.bf16.msra.mxu1 %v7817_v48  ;;  %6095 = vmatprep.subr.bf16.mxu0 %v7698_v49  ;;  %v2911_v48 = vld [vmem:[%s8810_s19 + $0x4f0] sm:$0xff]  ;;  %v7363_v49 = vcombine.low %v2771_v32, %v2775_v33 }
 0x4c7   : > { %6136 = vmatprep.subr.bf16.mxu1 %v7826_v37  ;;  %v7491_v37 = vcombine.low %v2899_v35, %v2903_v36  ;;  %v7500_v51 = vcombine.high %v2907_v47, %v2911_v48  ;;  %v2947_v28 = vld [vmem:[%s8810_s19 + $0x610] sm:$0xff] }
 0x4c8   : > { %v2827_v35 = vld [vmem:[%s8810_s19 + $0x250] sm:$0xff] }
 0x4c9   : > { %6096 = vmatpush1.bf16.msra.mxu0 %v7697_v54  ;;  %v2915_v54 = vld [vmem:[%s8810_s19 + $0x510] sm:$0xff] }
 0x4ca   : > { %6137 = vmatpush1.bf16.msra.mxu1 %v7825_v55  ;;  %6097 = vmatprep.subr.bf16.mxu0 %v7706_v56  ;;  %v2919_v55 = vld [vmem:[%s8810_s19 + $0x530] sm:$0xff]  ;;  %v7371_v56 = vcombine.low %v2779_v44, %v2783_v45 }
 0x4cb   : > { %6138 = vmatprep.subr.bf16.mxu1 %v7834_v16  ;;  %v7499_v16 = vcombine.low %v2907_v47, %v2911_v48  ;;  %v7508_v17 = vcombine.high %v2915_v54, %v2919_v55  ;;  %v2831_v36 = vld [vmem:[%s8810_s19 + $0x270] sm:$0xff] }
 0x4cc   : > { %v7420_v44 = vcombine.high %v2827_v35, %v2831_v36  ;;  %v2835_v47 = vld [vmem:[%s8810_s19 + $0x290] sm:$0xff] }
 0x4cd   : > { %6098 = vmatpush1.bf16.msra.mxu0 %v7705_v58  ;;  %v2923_v58 = vld [vmem:[%s8810_s19 + $0x550] sm:$0xff] }
 0x4ce   : > { %6139 = vmatpush1.bf16.msra.mxu1 %v7833_v59  ;;  %6099 = vmatprep.subr.bf16.mxu0 %v7714_v60  ;;  %v2927_v59 = vld [vmem:[%s8810_s19 + $0x570] sm:$0xff]  ;;  %v7379_v60 = vcombine.low %v2787_v52, %v2791_v53 }
 0x4cf   : > { %6140 = vmatprep.subr.bf16.mxu1 %v7842_v27  ;;  %v7507_v27 = vcombine.low %v2915_v54, %v2919_v55  ;;  %v7516_v62 = vcombine.high %v2923_v58, %v2927_v59  ;;  %v2839_v48 = vld [vmem:[%s8810_s19 + $0x2b0] sm:$0xff] }
 0x4d0   : > { %v7428_v52 = vcombine.high %v2835_v47, %v2839_v48  ;;  %v2843_v54 = vld [vmem:[%s8810_s19 + $0x2d0] sm:$0xff] }
 0x4d1   : > { %6100 = vmatpush1.bf16.msra.mxu0 %v7713_v0  ;;  %v2931_v0 = vld [vmem:[%s8810_s19 + $0x590] sm:$0xff] }
 0x4d2   : > { %6141 = vmatpush1.bf16.msra.mxu1 %v7841_v1  ;;  %6101 = vmatprep.subr.bf16.mxu0 %v7722_v2  ;;  %v2935_v1 = vld [vmem:[%s8810_s19 + $0x5b0] sm:$0xff]  ;;  %v7387_v2 = vcombine.low %v2795_v21, %v2799_v57 }
 0x4d3   : > { %6142 = vmatprep.subr.bf16.mxu1 %v7850_v3  ;;  %v7515_v3 = vcombine.low %v2923_v58, %v2927_v59  ;;  %v7524_v6 = vcombine.high %v2931_v0, %v2935_v1  ;;  %v2847_v55 = vld [vmem:[%s8810_s19 + $0x2f0] sm:$0xff] }
 0x4d4   : > { %v7436_v21 = vcombine.high %v2843_v54, %v2847_v55  ;;  %v2851_v58 = vld [vmem:[%s8810_s19 + $0x310] sm:$0xff] }
 0x4d5   : > { %6102 = vmatpush1.bf16.msra.mxu0 %v7721_v10  ;;  %v2939_v10 = vld [vmem:[%s8810_s19 + $0x5d0] sm:$0xff] }
 0x4d6   : > { %6143 = vmatpush1.bf16.msra.mxu1 %v7849_v13  ;;  %6153 = vmatprep.subr.bf16.mxu0 %v7348_v14  ;;  %v2943_v13 = vld [vmem:[%s8810_s19 + $0x5f0] sm:$0xff]  ;;  %v7395_v14 = vcombine.low %v2803_v63, %v2807_v8 }
 0x4d7   : > { %6194 = vmatprep.subr.bf16.mxu1 %v7476_v19  ;;  %v7523_v19 = vcombine.low %v2931_v0, %v2935_v1  ;;  %v7532_v22 = vcombine.high %v2939_v10, %v2943_v13  ;;  %v7531_v32 = vcombine.low %v2939_v10, %v2943_v13  ;;  %v2855_v59 = vld [vmem:[%s8810_s19 + $0x330] sm:$0xff] }
 0x4d8   : > { %6104 = vmatmul.mubr.bf16.vlgmr.msra.gmra.mrb[24].mxu0 %v9282_v30  ;;  %v7444_v63 = vcombine.high %v2851_v58, %v2855_v59  ;;  %v2859_v0 = vld [vmem:[%s8810_s19 + $0x350] sm:$0xff] }
 0x4d9   : > { %6145 = vmatmul.mubr.bf16.vlgmr.msra.gmra.mrb[24].mxu1 %v9276_v41  ;;  %6154 = vmatpush1.bf16.msra.mxu0 %v7347_v23  ;;  %v2819_v23 = vld [vmem:[%s8810_s19 + $0x210] sm:$0xff] }
 0x4da   : > { %6185 = vmatprep.mubr.bf16.mxu0 %v9188_v11  ;;  %6195 = vmatpush1.bf16.msra.mxu1 %v7475_v29  ;;  %v2951_v29 = vld [vmem:[%s8810_s19 + $0x630] sm:$0xff]  ;;  %v7412_v33 = vcombine.high %v2819_v23, %v2823_v24 }
 0x4db   : > { %6226 = vmatprep.mubr.bf16.mxu1 %v9201_v18  ;;  %6155 = vmatprep.subr.bf16.mxu0 %v7356_v31  ;;  %v7403_v31 = vcombine.low %v2811_v7, %v2815_v9  ;;  %v2863_v1 = vld [vmem:[%s8810_s19 + $0x370] sm:$0xff] }
 0x4dc   : > { %6196 = vmatprep.subr.bf16.mxu1 %v7484_v34  ;;  %v7540_v34 = vcombine.high %v2947_v28, %v2951_v29  ;;  %v7452_v7 = vcombine.high %v2859_v0, %v2863_v1  ;;  %v2867_v10 = vld [vmem:[%s8810_s19 + $0x390] sm:$0xff] }
 0x4dd   : > { %6156 = vmatpush1.bf16.msra.mxu0 %v7355_v38  ;;  %v2955_v38 = vld [vmem:[%s8810_s19 + $0x650] sm:$0xff] }
 0x4de   : > { %6197 = vmatpush1.bf16.msra.mxu1 %v7483_v39  ;;  %6157 = vmatprep.subr.bf16.mxu0 %v7364_v40  ;;  %v2959_v39 = vld [vmem:[%s8810_s19 + $0x670] sm:$0xff]  ;;  %v7411_v40 = vcombine.low %v2819_v23, %v2823_v24 }
 0x4df   : > { %6198 = vmatprep.subr.bf16.mxu1 %v7492_v43  ;;  %v7539_v43 = vcombine.low %v2947_v28, %v2951_v29  ;;  %v7548_v45 = vcombine.high %v2955_v38, %v2959_v39  ;;  %v2871_v13 = vld [vmem:[%s8810_s19 + $0x3b0] sm:$0xff] }
 0x4e0   : > { %v7460_v23 = vcombine.high %v2867_v10, %v2871_v13  ;;  %v2875_v28 = vld [vmem:[%s8810_s19 + $0x3d0] sm:$0xff] }
 0x4e1   : > { %6158 = vmatpush1.bf16.msra.mxu0 %v7363_v49  ;;  %v2963_v49 = vld [vmem:[%s8810_s19 + $0x690] sm:$0xff] }
 0x4e2   : > { %6199 = vmatpush1.bf16.msra.mxu1 %v7491_v37  ;;  %6159 = vmatprep.subr.bf16.mxu0 %v7372_v50  ;;  %v2967_v37 = vld [vmem:[%s8810_s19 + $0x6b0] sm:$0xff]  ;;  %v7419_v50 = vcombine.low %v2827_v35, %v2831_v36 }
 0x4e3   : > { %6200 = vmatprep.subr.bf16.mxu1 %v7500_v51  ;;  %v7547_v51 = vcombine.low %v2955_v38, %v2959_v39  ;;  %v7556_v53 = vcombine.high %v2963_v49, %v2967_v37  ;;  %v2879_v29 = vld [vmem:[%s8810_s19 + $0x3f0] sm:$0xff] }
 0x4e4   : > { %v7468_v35 = vcombine.high %v2875_v28, %v2879_v29  ;;  %v3011_v38 = vld [vmem:[%s8810_s19 + $0x810] sm:$0xff] }
 0x4e5   : > { %6160 = vmatpush1.bf16.msra.mxu0 %v7371_v56  ;;  %v2971_v56 = vld [vmem:[%s8810_s19 + $0x6d0] sm:$0xff] }
 0x4e6   : > { %6201 = vmatpush1.bf16.msra.mxu1 %v7499_v16  ;;  %6161 = vmatprep.subr.bf16.mxu0 %v7380_v25  ;;  %v2975_v16 = vld [vmem:[%s8810_s19 + $0x6f0] sm:$0xff]  ;;  %v7427_v25 = vcombine.low %v2835_v47, %v2839_v48 }
 0x4e7   : > { %6202 = vmatprep.subr.bf16.mxu1 %v7508_v17  ;;  %v7555_v17 = vcombine.low %v2963_v49, %v2967_v37  ;;  %v7564_v57 = vcombine.high %v2971_v56, %v2975_v16  ;;  %v3015_v39 = vld [vmem:[%s8810_s19 + $0x830] sm:$0xff] }
 0x4e8   : > { %v7604_v47 = vcombine.high %v3011_v38, %v3015_v39  ;;  %v3019_v49 = vld [vmem:[%s8810_s19 + $0x850] sm:$0xff] }
 0x4e9   : > { %6162 = vmatpush1.bf16.msra.mxu0 %v7379_v60  ;;  %v2979_v60 = vld [vmem:[%s8810_s19 + $0x710] sm:$0xff] }
 0x4ea   : > { %6203 = vmatpush1.bf16.msra.mxu1 %v7507_v27  ;;  %6163 = vmatprep.subr.bf16.mxu0 %v7388_v61  ;;  %v2983_v27 = vld [vmem:[%s8810_s19 + $0x730] sm:$0xff]  ;;  %v7435_v61 = vcombine.low %v2843_v54, %v2847_v55 }
 0x4eb   : > { %6204 = vmatprep.subr.bf16.mxu1 %v7516_v62  ;;  %v7563_v62 = vcombine.low %v2971_v56, %v2975_v16  ;;  %v7572_v8 = vcombine.high %v2979_v60, %v2983_v27  ;;  %v3023_v37 = vld [vmem:[%s8810_s19 + $0x870] sm:$0xff] }
 0x4ec   : > { %v7612_v54 = vcombine.high %v3019_v49, %v3023_v37  ;;  %v3027_v55 = vld [vmem:[%s8810_s19 + $0x890] sm:$0xff] }
 0x4ed   : > { %6164 = vmatpush1.bf16.msra.mxu0 %v7387_v2  ;;  %v2987_v2 = vld [vmem:[%s8810_s19 + $0x750] sm:$0xff] }
 0x4ee   : > { %6205 = vmatpush1.bf16.msra.mxu1 %v7515_v3  ;;  %6165 = vmatprep.subr.bf16.mxu0 %v7396_v4  ;;  %v2991_v3 = vld [vmem:[%s8810_s19 + $0x770] sm:$0xff]  ;;  %v7443_v4 = vcombine.low %v2851_v58, %v2855_v59 }
 0x4ef   : > { %6206 = vmatprep.subr.bf16.mxu1 %v7524_v6  ;;  %v7571_v6 = vcombine.low %v2979_v60, %v2983_v27  ;;  %v7580_v9 = vcombine.high %v2987_v2, %v2991_v3  ;;  %v3031_v56 = vld [vmem:[%s8810_s19 + $0x8b0] sm:$0xff] }
 0x4f0   : > { %v7620_v58 = vcombine.high %v3027_v55, %v3031_v56  ;;  %v3035_v60 = vld [vmem:[%s8810_s19 + $0x8d0] sm:$0xff] }
 0x4f1   : > { %6166 = vmatpush1.bf16.msra.mxu0 %v7395_v14  ;;  %v2995_v14 = vld [vmem:[%s8810_s19 + $0x790] sm:$0xff] }
 0x4f2   : > { %6207 = vmatpush1.bf16.msra.mxu1 %v7523_v19  ;;  %6167 = vmatprep.subr.bf16.mxu0 %v7404_v20  ;;  %v2999_v19 = vld [vmem:[%s8810_s19 + $0x7b0] sm:$0xff]  ;;  %v7451_v20 = vcombine.low %v2859_v0, %v2863_v1 }
 0x4f3   : > { %6208 = vmatprep.subr.bf16.mxu1 %v7532_v22  ;;  %v7579_v22 = vcombine.low %v2987_v2, %v2991_v3  ;;  %v7588_v24 = vcombine.high %v2995_v14, %v2999_v19  ;;  %v3039_v27 = vld [vmem:[%s8810_s19 + $0x8f0] sm:$0xff] }
 0x4f4   : > { %v7628_v0 = vcombine.high %v3035_v60, %v3039_v27  ;;  %v3043_v2 = vld [vmem:[%s8810_s19 + $0x910] sm:$0xff] }
 0x4f5   : > { %6168 = vmatpush1.bf16.msra.mxu0 %v7403_v31  ;;  %v3003_v31 = vld [vmem:[%s8810_s19 + $0x7d0] sm:$0xff] }
 0x4f6   : > { %6209 = vmatpush1.bf16.msra.mxu1 %v7531_v32  ;;  %6169 = vmatprep.subr.bf16.mxu0 %v7412_v33  ;;  %v3007_v32 = vld [vmem:[%s8810_s19 + $0x7f0] sm:$0xff]  ;;  %v7459_v33 = vcombine.low %v2867_v10, %v2871_v13 }
 0x4f7   : > { %6210 = vmatprep.subr.bf16.mxu1 %v7540_v34  ;;  %v7587_v34 = vcombine.low %v2995_v14, %v2999_v19  ;;  %v7596_v36 = vcombine.high %v3003_v31, %v3007_v32  ;;  %v3047_v3 = vld [vmem:[%s8810_s19 + $0x930] sm:$0xff] }
 0x4f8   : > { %v7636_v10 = vcombine.high %v3043_v2, %v3047_v3  ;;  %v3051_v14 = vld [vmem:[%s8810_s19 + $0x950] sm:$0xff] }
 0x4f9   : > { %6170 = vmatpush1.bf16.msra.mxu0 %v7411_v40  ;;  %v3139_v40 = vld [vmem:[%s8810_s19 + $0xc10] sm:$0xff] }
 0x4fa   : > { %6211 = vmatpush1.bf16.msra.mxu1 %v7539_v43  ;;  %6171 = vmatprep.subr.bf16.mxu0 %v7420_v44  ;;  %v3143_v43 = vld [vmem:[%s8810_s19 + $0xc30] sm:$0xff]  ;;  %v7467_v44 = vcombine.low %v2875_v28, %v2879_v29 }
 0x4fb   : > { %6212 = vmatprep.subr.bf16.mxu1 %v7548_v45  ;;  %v7595_v45 = vcombine.low %v3003_v31, %v3007_v32  ;;  %v7732_v48 = vcombine.high %v3139_v40, %v3143_v43  ;;  %v3055_v19 = vld [vmem:[%s8810_s19 + $0x970] sm:$0xff] }
 0x4fc   : > { %v7644_v28 = vcombine.high %v3051_v14, %v3055_v19  ;;  %v3059_v31 = vld [vmem:[%s8810_s19 + $0x990] sm:$0xff] }
 0x4fd   : > { %6172 = vmatpush1.bf16.msra.mxu0 %v7419_v50  ;;  %v7603_v50 = vcombine.low %v3011_v38, %v3015_v39  ;;  %v3063_v32 = vld [vmem:[%s8810_s19 + $0x9b0] sm:$0xff] }
 0x4fe   : > { %6213 = vmatpush1.bf16.msra.mxu1 %v7547_v51  ;;  %6173 = vmatprep.subr.bf16.mxu0 %v7428_v52  ;;  %v3147_v51 = vld [vmem:[%s8810_s19 + $0xc50] sm:$0xff]  ;;  %v7652_v38 = vcombine.high %v3059_v31, %v3063_v32 }
 0x4ff   : > { %6214 = vmatprep.subr.bf16.mxu1 %v7556_v53  ;;  %v3151_v52 = vld [vmem:[%s8810_s19 + $0xc70] sm:$0xff]  ;;  %v7731_v53 = vcombine.low %v3139_v40, %v3143_v43 }
 0x500   : > { %v7740_v16 = vcombine.high %v3147_v51, %v3151_v52  ;;  %v3067_v43 = vld [vmem:[%s8810_s19 + $0x9d0] sm:$0xff] }
 0x501   : > { %6174 = vmatpush1.bf16.msra.mxu0 %v7427_v25  ;;  %v3155_v25 = vld [vmem:[%s8810_s19 + $0xc90] sm:$0xff] }
 0x502   : > { %6215 = vmatpush1.bf16.msra.mxu1 %v7555_v17  ;;  %6175 = vmatprep.subr.bf16.mxu0 %v7436_v21  ;;  %v3159_v17 = vld [vmem:[%s8810_s19 + $0xcb0] sm:$0xff]  ;;  %v7611_v21 = vcombine.low %v3019_v49, %v3023_v37 }
 0x503   : > { %6216 = vmatprep.subr.bf16.mxu1 %v7564_v57  ;;  %v7739_v57 = vcombine.low %v3147_v51, %v3151_v52  ;;  %v7748_v59 = vcombine.high %v3155_v25, %v3159_v17  ;;  %v3195_v49 = vld [vmem:[%s8810_s19 + $0xdd0] sm:$0xff] }
 0x504   : > { %v3199_v37 = vld [vmem:[%s8810_s19 + $0xdf0] sm:$0xff] }
 0x505   : > { %6176 = vmatpush1.bf16.msra.mxu0 %v7435_v61  ;;  %v3163_v61 = vld [vmem:[%s8810_s19 + $0xcd0] sm:$0xff] }
 0x506   : > { %6217 = vmatpush1.bf16.msra.mxu1 %v7563_v62  ;;  %6177 = vmatprep.subr.bf16.mxu0 %v7444_v63  ;;  %v3167_v62 = vld [vmem:[%s8810_s19 + $0xcf0] sm:$0xff]  ;;  %v7619_v63 = vcombine.low %v3027_v55, %v3031_v56  ;;  %v2738_v56 = vld [vmem:[#allocation2 + $0x8] sm:$0xff] }
 0x507   : > { %6218 = vmatprep.subr.bf16.mxu1 %v7572_v8  ;;  %v7747_v8 = vcombine.low %v3155_v25, %v3159_v17  ;;  %v7756_v1 = vcombine.high %v3163_v61, %v3167_v62 }
 0x509   : > { %6178 = vmatpush1.bf16.msra.mxu0 %v7443_v4  ;;  %v3171_v4 = vld [vmem:[%s8810_s19 + $0xd10] sm:$0xff] }
 0x50a   : > { %6219 = vmatpush1.bf16.msra.mxu1 %v7571_v6  ;;  %6179 = vmatprep.subr.bf16.mxu0 %v7452_v7  ;;  %v3175_v6 = vld [vmem:[%s8810_s19 + $0xd30] sm:$0xff]  ;;  %v7627_v7 = vcombine.low %v3035_v60, %v3039_v27 }
 0x50b   : > { %6220 = vmatprep.subr.bf16.mxu1 %v7580_v9  ;;  %v7755_v9 = vcombine.low %v3163_v61, %v3167_v62  ;;  %v7764_v13 = vcombine.high %v3171_v4, %v3175_v6  ;;  %v3203_v27 = vld [vmem:[%s8810_s19 + $0xe10] sm:$0xff] }
 0x50c   : > { %v3207_v61 = vld [vmem:[%s8810_s19 + $0xe30] sm:$0xff] }
 0x50d   : > { %6180 = vmatpush1.bf16.msra.mxu0 %v7451_v20  ;;  %v3179_v20 = vld [vmem:[%s8810_s19 + $0xd50] sm:$0xff] }
 0x50e   : > { %6221 = vmatpush1.bf16.msra.mxu1 %v7579_v22  ;;  %6181 = vmatprep.subr.bf16.mxu0 %v7460_v23  ;;  %v3183_v22 = vld [vmem:[%s8810_s19 + $0xd70] sm:$0xff]  ;;  %v7635_v23 = vcombine.low %v3043_v2, %v3047_v3 }
 0x50f   : > { %6222 = vmatprep.subr.bf16.mxu1 %v7588_v24  ;;  %v7763_v24 = vcombine.low %v3171_v4, %v3175_v6  ;;  %v7772_v29 = vcombine.high %v3179_v20, %v3183_v22  ;;  %v3083_v2 = vld [vmem:[%s8810_s19 + $0xa50] sm:$0xff] }
 0x510   : > { %v3087_v3 = vld [vmem:[%s8810_s19 + $0xa70] sm:$0xff] }
 0x511   : > { %6182 = vmatpush1.bf16.msra.mxu0 %v7459_v33  ;;  %v3187_v33 = vld [vmem:[%s8810_s19 + $0xd90] sm:$0xff] }
 0x512   : > { %6223 = vmatpush1.bf16.msra.mxu1 %v7587_v34  ;;  %6183 = vmatprep.subr.bf16.mxu0 %v7468_v35  ;;  %v3191_v34 = vld [vmem:[%s8810_s19 + $0xdb0] sm:$0xff]  ;;  %v7643_v35 = vcombine.low %v3051_v14, %v3055_v19 }
 0x513   : > { %6224 = vmatprep.subr.bf16.mxu1 %v7596_v36  ;;  %v7771_v36 = vcombine.low %v3179_v20, %v3183_v22  ;;  %v7780_v40 = vcombine.high %v3187_v33, %v3191_v34  ;;  %v7779_v25 = vcombine.low %v3187_v33, %v3191_v34  ;;  %v3211_v4 = vld [vmem:[%s8810_s19 + $0xe50] sm:$0xff] }
 0x514   : > { %v3215_v6 = vld [vmem:[%s8810_s19 + $0xe70] sm:$0xff] }
 0x515   : > { %6184 = vmatpush1.bf16.msra.mxu0 %v7467_v44  ;;  %v3071_v44 = vld [vmem:[%s8810_s19 + $0x9f0] sm:$0xff] }
 0x516   : > { %6225 = vmatpush1.bf16.msra.mxu1 %v7595_v45  ;;  %6235 = vmatprep.subr.bf16.mxu0 %v7604_v47  ;;  %v7660_v17 = vcombine.high %v3067_v43, %v3071_v44  ;;  %v3091_v14 = vld [vmem:[%s8810_s19 + $0xa90] sm:$0xff] }
 0x517   : > { %6276 = vmatprep.subr.bf16.mxu1 %v7732_v48  ;;  %v3095_v19 = vld [vmem:[%s8810_s19 + $0xab0] sm:$0xff] }
 0x518   : > { %6186 = vmatmul.mubr.bf16.vlgmr.msra.gmra.mrb[28].mxu0 %v9184_v5  ;;  %v3219_v20 = vld [vmem:[%s8810_s19 + $0xe90] sm:$0xff] }
 0x519   : > { %6227 = vmatmul.mubr.bf16.vlgmr.msra.gmra.mrb[28].mxu1 %v9190_v12  ;;  %6236 = vmatpush1.bf16.msra.mxu0 %v7603_v50  ;;  %v2737_v50 = vld [vmem:[#allocation2] sm:$0xff]  ;;  %v3223_v22 = vld [vmem:[%s8810_s19 + $0xeb0] sm:$0xff] }
 0x51a   : > { %6267 = vmatprep.mubr.bf16.mxu0 %v9278_v42  ;;  %6277 = vmatpush1.bf16.msra.mxu1 %v7731_v53  ;;  %v3227_v33 = vld [vmem:[%s8810_s19 + $0xed0] sm:$0xff] }
 0x51b   : > { %6308 = vmatprep.mubr.bf16.mxu1 %v9284_v46  ;;  %6237 = vmatprep.subr.bf16.mxu0 %v7612_v54  ;;  %v7651_v54 = vcombine.low %v3059_v31, %v3063_v32  ;;  %v3099_v31 = vld [vmem:[%s8810_s19 + $0xad0] sm:$0xff] }
 0x51c   : > { %6278 = vmatprep.subr.bf16.mxu1 %v7740_v16  ;;  %v3103_v32 = vld [vmem:[%s8810_s19 + $0xaf0] sm:$0xff] }
 0x51d   : > { %6238 = vmatpush1.bf16.msra.mxu0 %v7611_v21  ;;  %v3231_v34 = vld [vmem:[%s8810_s19 + $0xef0] sm:$0xff] }
 0x51e   : > { %6279 = vmatpush1.bf16.msra.mxu1 %v7739_v57  ;;  %6239 = vmatprep.subr.bf16.mxu0 %v7620_v58  ;;  %v3075_v58 = vld [vmem:[%s8810_s19 + $0xa10] sm:$0xff] }
 0x51f   : > { %6280 = vmatprep.subr.bf16.mxu1 %v7748_v59  ;;  %v3079_v59 = vld [vmem:[%s8810_s19 + $0xa30] sm:$0xff] }
 0x521   : > { %6240 = vmatpush1.bf16.msra.mxu0 %v7619_v63  ;;  %v7659_v63 = vcombine.low %v3067_v43, %v3071_v44  ;;  %v3111_v43 = vld [vmem:[%s8810_s19 + $0xb30] sm:$0xff] }
 0x522   : > { %6281 = vmatpush1.bf16.msra.mxu1 %v7747_v8  ;;  %6241 = vmatprep.subr.bf16.mxu0 %v7628_v0  ;;  %v7787_v8 = vcombine.low %v3195_v49, %v3199_v37  ;;  %v7668_v0 = vcombine.high %v3075_v58, %v3079_v59  ;;  %v3235_v44 = vld [vmem:[%s8810_s19 + $0xf10] sm:$0xff] }
 0x523   : > { %6282 = vmatprep.subr.bf16.mxu1 %v7756_v1  ;;  %v7796_v1 = vcombine.high %v3203_v27, %v3207_v61 }
 0x525   : > { %6242 = vmatpush1.bf16.msra.mxu0 %v7627_v7  ;;  %v7667_v7 = vcombine.low %v3075_v58, %v3079_v59 }
 0x526   : > { %6283 = vmatpush1.bf16.msra.mxu1 %v7755_v9  ;;  %6243 = vmatprep.subr.bf16.mxu0 %v7636_v10  ;;  %v7795_v9 = vcombine.low %v3203_v27, %v3207_v61  ;;  %v7676_v10 = vcombine.high %v3083_v2, %v3087_v3  ;;  %v3135_v27 = vld [vmem:[%s8810_s19 + $0xbf0] sm:$0xff] }
 0x527   : > { %6284 = vmatprep.subr.bf16.mxu1 %v7764_v13  ;;  %v7804_v13 = vcombine.high %v3211_v4, %v3215_v6  ;;  %v3259_v61 = vld [vmem:[%s8810_s19 + $0xfd0] sm:$0xff] }
 0x529   : > { %6244 = vmatpush1.bf16.msra.mxu0 %v7635_v23  ;;  %v7675_v23 = vcombine.low %v3083_v2, %v3087_v3  ;;  %v2756_v2 = vld [vmem:[%s8810_s19 + $0x18] sm:$0xff] }
 0x52a   : > { %6285 = vmatpush1.bf16.msra.mxu1 %v7763_v24  ;;  %6245 = vmatprep.subr.bf16.mxu0 %v7644_v28  ;;  %v7803_v24 = vcombine.low %v3211_v4, %v3215_v6  ;;  %v7684_v28 = vcombine.high %v3091_v14, %v3095_v19  ;;  %v2760_v3 = vld [vmem:[%s8810_s19 + $0x38] sm:$0xff] }
 0x52b   : > { %v5941_v39 = vpop.f32.mrb[16].mxu0  ;;  %6286 = vmatprep.subr.bf16.mxu1 %v7772_v29  ;;  %v5982_v47 = vpop.f32.mrb[16].mxu1  ;;  %v7812_v29 = vcombine.high %v3219_v20, %v3223_v22  ;;  %v2884_v4 = vld [vmem:[%s8810_s19 + $0x418] sm:$0xff] }
 0x52c   : > { %v5942_v45 = vadd.f32 %v5941_v39, %v9390_v15  ;;  %v5943_v48 = vpop.f32.mrb[17].mxu0  ;;  %v5984_v52 = vpop.f32.mrb[17].mxu1  ;;  %v7820_v39 = vcombine.high %v3227_v33, %v3231_v34  ;;  %v2888_v6 = vld [vmem:[%s8810_s19 + $0x438] sm:$0xff] }
 0x52d   : > { %v5944_v51 = vadd.f32 %v5943_v48, %v9392_v26  ;;  %6246 = vmatpush1.bf16.msra.mxu0 %v7643_v35  ;;  %v5945_v53 = vpop.f32.mrb[18].mxu0  ;;  %v5986_v16 = vpop.f32.mrb[18].mxu1  ;;  %v7788_v26 = vcombine.high %v3195_v49, %v3199_v37  ;;  %v7683_v35 = vcombine.low %v3091_v14, %v3095_v19  ;;  %v7819_v48 = vcombine.low %v3227_v33, %v3231_v34  ;;  %v2764_v14 = vld [vmem:[%s8810_s19 + $0x58] sm:$0xff] }
 0x52e   : > { %v5983_v55 = vadd.f32 %v5982_v47, %v5942_v45  ;;  %6287 = vmatpush1.bf16.msra.mxu1 %v7771_v36  ;;  %v5946_v15 = vpop.f32.mrb[19].mxu0  ;;  %6247 = vmatprep.subr.bf16.mxu0 %v7652_v38  ;;  %v5987_v57 = vpop.f32.mrb[19].mxu1  ;;  %v7811_v36 = vcombine.low %v3219_v20, %v3223_v22  ;;  %v7692_v38 = vcombine.high %v3099_v31, %v3103_v32  ;;  %v3239_v45 = vld [vmem:[%s8810_s19 + $0xf30] sm:$0xff]  ;;  %v2768_v19 = vld [vmem:[%s8810_s19 + $0x78] sm:$0xff] }
 0x52f   : > { %v5985_v21 = vadd.f32 %v5984_v52, %v5944_v51  ;;  %6288 = vmatprep.subr.bf16.mxu1 %v7780_v40  ;;  %v3107_v40 = vld [vmem:[%s8810_s19 + $0xb10] sm:$0xff]  ;;  %v7691_v47 = vcombine.low %v3099_v31, %v3103_v32  ;;  %v7828_v37 = vcombine.high %v3235_v44, %v3239_v45  ;;  %v7349_v20 = vcombine.low %v2756_v2, %v2760_v3  ;;  %v2892_v22 = vld [vmem:[%s8810_s19 + $0x458] sm:$0xff] }
 0x530   : > { %v6481_v60 = vadd.f32 %v5983_v55, %v2737_v50  ;;  %v7700_v49 = vcombine.high %v3107_v40, %v3111_v43  ;;  %v3115_v50 = vld [vmem:[%s8810_s19 + $0xb50] sm:$0xff]  ;;  %v7827_v55 = vcombine.low %v3235_v44, %v3239_v45  ;;  %v2776_v31 = vld [vmem:[%s8810_s19 + $0xb8] sm:$0xff] }
 0x531   : > { %v6482_v62 = vadd.f32 %v5985_v21, %v2738_v56  ;;  %6248 = vmatpush1.bf16.msra.mxu0 %v7651_v54  ;;  %v3119_v51 = vld [vmem:[%s8810_s19 + $0xb70] sm:$0xff]  ;;  %v7699_v54 = vcombine.low %v3107_v40, %v3111_v43  ;;  %v2900_v33 = vld [vmem:[%s8810_s19 + $0x498] sm:$0xff] }
 0x532   : > { %6489 = vst [vmem:[#allocation2] sm:$0xff] %v6481_v60  ;;  %6289 = vmatpush1.bf16.msra.mxu1 %v7779_v25  ;;  %6249 = vmatprep.subr.bf16.mxu0 %v7660_v17  ;;  %v3243_v52 = vld [vmem:[%s8810_s19 + $0xf50] sm:$0xff]  ;;  %v7708_v56 = vcombine.high %v3115_v50, %v3119_v51  ;;  %v7707_v57 = vcombine.low %v3115_v50, %v3119_v51  ;;  %v2904_v34 = vld [vmem:[%s8810_s19 + $0x4b8] sm:$0xff] }
 0x533   : > { %6490 = vst [vmem:[#allocation2 + $0x8] sm:$0xff] %v6482_v62  ;;  %6290 = vmatprep.subr.bf16.mxu1 %v7788_v26  ;;  %v3247_v53 = vld [vmem:[%s8810_s19 + $0xf70] sm:$0xff]  ;;  %v2780_v40 = vld [vmem:[%s8810_s19 + $0xd8] sm:$0xff] }
 0x534   : > { %v7836_v16 = vcombine.high %v3243_v52, %v3247_v53  ;;  %v3123_v15 = vld [vmem:[%s8810_s19 + $0xb90] sm:$0xff]  ;;  %v7835_v26 = vcombine.low %v3243_v52, %v3247_v53  ;;  %v2784_v43 = vld [vmem:[%s8810_s19 + $0xf8] sm:$0xff] }
 0x535   : > { %6250 = vmatpush1.bf16.msra.mxu0 %v7659_v63  ;;  %v3127_v25 = vld [vmem:[%s8810_s19 + $0xbb0] sm:$0xff]  ;;  %v2908_v44 = vld [vmem:[%s8810_s19 + $0x4d8] sm:$0xff]  ;;  %v7373_v52 = vcombine.low %v2780_v40, %v2784_v43 }
 0x536   : > { %6291 = vmatpush1.bf16.msra.mxu1 %v7787_v8  ;;  %6251 = vmatprep.subr.bf16.mxu0 %v7668_v0  ;;  %v3251_v17 = vld [vmem:[%s8810_s19 + $0xf90] sm:$0xff]  ;;  %v7716_v58 = vcombine.high %v3123_v15, %v3127_v25  ;;  %v7715_v63 = vcombine.low %v3123_v15, %v3127_v25  ;;  %v2912_v45 = vld [vmem:[%s8810_s19 + $0x4f8] sm:$0xff] }
 0x537   : > { %6292 = vmatprep.subr.bf16.mxu1 %v7796_v1  ;;  %v3255_v21 = vld [vmem:[%s8810_s19 + $0xfb0] sm:$0xff]  ;;  %v2916_v50 = vld [vmem:[%s8810_s19 + $0x518] sm:$0xff]  ;;  %v7501_v53 = vcombine.low %v2908_v44, %v2912_v45 }
 0x538   : > { %v7844_v59 = vcombine.high %v3251_v17, %v3255_v21  ;;  %v3131_v60 = vld [vmem:[%s8810_s19 + $0xbd0] sm:$0xff]  ;;  %v7843_v8 = vcombine.low %v3251_v17, %v3255_v21  ;;  %v2920_v51 = vld [vmem:[%s8810_s19 + $0x538] sm:$0xff] }
 0x539   : > { %6252 = vmatpush1.bf16.msra.mxu0 %v7667_v7  ;;  %v3263_v62 = vld [vmem:[%s8810_s19 + $0xff0] sm:$0xff]  ;;  %v7724_v0 = vcombine.high %v3131_v60, %v3135_v27  ;;  %v7723_v7 = vcombine.low %v3131_v60, %v3135_v27  ;;  %v2924_v15 = vld [vmem:[%s8810_s19 + $0x558] sm:$0xff]  ;;  %v7509_v21 = vcombine.low %v2916_v50, %v2920_v51 }
 0x53a   : > { %6293 = vmatpush1.bf16.msra.mxu1 %v7795_v9  ;;  %6253 = vmatprep.subr.bf16.mxu0 %v7676_v10  ;;  %v7852_v1 = vcombine.high %v3259_v61, %v3263_v62  ;;  %v7851_v9 = vcombine.low %v3259_v61, %v3263_v62  ;;  %v7350_v10 = vcombine.high %v2756_v2, %v2760_v3  ;;  %v2928_v25 = vld [vmem:[%s8810_s19 + $0x578] sm:$0xff] }
 0x53b   : > { %6294 = vmatprep.subr.bf16.mxu1 %v7804_v13  ;;  %v7478_v13 = vcombine.high %v2884_v4, %v2888_v6  ;;  %v2932_v60 = vld [vmem:[%s8810_s19 + $0x598] sm:$0xff]  ;;  %v7517_v62 = vcombine.low %v2924_v15, %v2928_v25 }
 0x53c   : > { %v2936_v27 = vld [vmem:[%s8810_s19 + $0x5b8] sm:$0xff] }
 0x53d   : > { %6254 = vmatpush1.bf16.msra.mxu0 %v7675_v23  ;;  %v2896_v23 = vld [vmem:[%s8810_s19 + $0x478] sm:$0xff] }
 0x53e   : > { %6295 = vmatpush1.bf16.msra.mxu1 %v7803_v24  ;;  %6255 = vmatprep.subr.bf16.mxu0 %v7684_v28  ;;  %v7477_v24 = vcombine.low %v2884_v4, %v2888_v6  ;;  %v7358_v28 = vcombine.high %v2764_v14, %v2768_v19  ;;  %v7486_v32 = vcombine.high %v2892_v22, %v2896_v23  ;;  %v2816_v2 = vld [vmem:[%s8810_s19 + $0x1f8] sm:$0xff] }
 0x53f   : > { %6296 = vmatprep.subr.bf16.mxu1 %v7812_v29  ;;  %v2772_v29 = vld [vmem:[%s8810_s19 + $0x98] sm:$0xff] }
 0x540   : > { %v2940_v6 = vld [vmem:[%s8810_s19 + $0x5d8] sm:$0xff] }
 0x541   : > { %6256 = vmatpush1.bf16.msra.mxu0 %v7683_v35  ;;  %v7357_v35 = vcombine.low %v2764_v14, %v2768_v19 }
 0x542   : > { %6297 = vmatpush1.bf16.msra.mxu1 %v7811_v36  ;;  %6257 = vmatprep.subr.bf16.mxu0 %v7692_v38  ;;  %v7485_v36 = vcombine.low %v2892_v22, %v2896_v23  ;;  %v7366_v38 = vcombine.high %v2772_v29, %v2776_v31  ;;  %v7525_v23 = vcombine.low %v2932_v60, %v2936_v27 }
 0x543   : > { %6298 = vmatprep.subr.bf16.mxu1 %v7820_v39  ;;  %v7494_v39 = vcombine.high %v2900_v33, %v2904_v34 }
 0x545   : > { %6258 = vmatpush1.bf16.msra.mxu0 %v7691_v47  ;;  %v7365_v47 = vcombine.low %v2772_v29, %v2776_v31  ;;  %v2820_v31 = vld [vmem:[%s8810_s19 + $0x218] sm:$0xff] }
 0x546   : > { %6299 = vmatpush1.bf16.msra.mxu1 %v7819_v48  ;;  %6259 = vmatprep.subr.bf16.mxu0 %v7700_v49  ;;  %v7374_v48 = vcombine.high %v2780_v40, %v2784_v43  ;;  %v2788_v49 = vld [vmem:[%s8810_s19 + $0x118] sm:$0xff] }
 0x547   : > { %6300 = vmatprep.subr.bf16.mxu1 %v7828_v37  ;;  %v2792_v37 = vld [vmem:[%s8810_s19 + $0x138] sm:$0xff] }
 0x548   : > { %v7381_v17 = vcombine.low %v2788_v49, %v2792_v37  ;;  %v2828_v40 = vld [vmem:[%s8810_s19 + $0x258] sm:$0xff] }
 0x549   : > { %6260 = vmatpush1.bf16.msra.mxu0 %v7699_v54  ;;  %v7382_v54 = vcombine.high %v2788_v49, %v2792_v37  ;;  %v2832_v43 = vld [vmem:[%s8810_s19 + $0x278] sm:$0xff] }
 0x54a   : > { %6301 = vmatpush1.bf16.msra.mxu1 %v7827_v55  ;;  %6261 = vmatprep.subr.bf16.mxu0 %v7708_v56  ;;  %v7510_v55 = vcombine.high %v2916_v50, %v2920_v51  ;;  %v2796_v56 = vld [vmem:[%s8810_s19 + $0x158] sm:$0xff] }
 0x54b   : > { %6302 = vmatprep.subr.bf16.mxu1 %v7836_v16  ;;  %v2800_v16 = vld [vmem:[%s8810_s19 + $0x178] sm:$0xff] }
 0x54c   : > { %v7389_v61 = vcombine.low %v2796_v56, %v2800_v16  ;;  %v2836_v49 = vld [vmem:[%s8810_s19 + $0x298] sm:$0xff] }
 0x54d   : > { %6262 = vmatpush1.bf16.msra.mxu0 %v7707_v57  ;;  %v7390_v57 = vcombine.high %v2796_v56, %v2800_v16  ;;  %v2840_v37 = vld [vmem:[%s8810_s19 + $0x2b8] sm:$0xff] }
 0x54e   : > { %6303 = vmatpush1.bf16.msra.mxu1 %v7835_v26  ;;  %6263 = vmatprep.subr.bf16.mxu0 %v7716_v58  ;;  %v7518_v26 = vcombine.high %v2924_v15, %v2928_v25  ;;  %v2804_v58 = vld [vmem:[%s8810_s19 + $0x198] sm:$0xff] }
 0x54f   : > { %6304 = vmatprep.subr.bf16.mxu1 %v7844_v59  ;;  %v2808_v59 = vld [vmem:[%s8810_s19 + $0x1b8] sm:$0xff] }
 0x550   : > { %v7397_v14 = vcombine.low %v2804_v58, %v2808_v59  ;;  %v2964_v50 = vld [vmem:[%s8810_s19 + $0x698] sm:$0xff] }
 0x551   : > { %6264 = vmatpush1.bf16.msra.mxu0 %v7715_v63  ;;  %v7398_v63 = vcombine.high %v2804_v58, %v2808_v59  ;;  %v2968_v51 = vld [vmem:[%s8810_s19 + $0x6b8] sm:$0xff] }
 0x552   : > { %6305 = vmatpush1.bf16.msra.mxu1 %v7843_v8  ;;  %6265 = vmatprep.subr.bf16.mxu0 %v7724_v0  ;;  %v7526_v0 = vcombine.high %v2932_v60, %v2936_v27  ;;  %v2844_v56 = vld [vmem:[%s8810_s19 + $0x2d8] sm:$0xff] }
 0x553   : > { %6306 = vmatprep.subr.bf16.mxu1 %v7852_v1  ;;  %v2812_v1 = vld [vmem:[%s8810_s19 + $0x1d8] sm:$0xff] }
 0x554   : > { %v2848_v16 = vld [vmem:[%s8810_s19 + $0x2f8] sm:$0xff] }
 0x555   : > { %6266 = vmatpush1.bf16.msra.mxu0 %v7723_v7  ;;  %v2944_v7 = vld [vmem:[%s8810_s19 + $0x5f8] sm:$0xff] }
 0x556   : > { %6307 = vmatpush1.bf16.msra.mxu1 %v7851_v9  ;;  %6317 = vmatprep.subr.bf16.mxu0 %v7350_v10  ;;  %v7534_v29 = vcombine.high %v2940_v6, %v2944_v7  ;;  %v2972_v15 = vld [vmem:[%s8810_s19 + $0x6d8] sm:$0xff] }
 0x557   : > { %6358 = vmatprep.subr.bf16.mxu1 %v7478_v13  ;;  %v2976_v25 = vld [vmem:[%s8810_s19 + $0x6f8] sm:$0xff] }
 0x558   : > { %6268 = vmatmul.mubr.bf16.vlgmr.msra.gmra.mrb[32].mxu0 %v9282_v30  ;;  %v2852_v58 = vld [vmem:[%s8810_s19 + $0x318] sm:$0xff] }
 0x559   : > { %6309 = vmatmul.mubr.bf16.vlgmr.msra.gmra.mrb[32].mxu1 %v9276_v41  ;;  %6318 = vmatpush1.bf16.msra.mxu0 %v7349_v20  ;;  %v2856_v59 = vld [vmem:[%s8810_s19 + $0x338] sm:$0xff] }
 0x55a   : > { %6349 = vmatprep.mubr.bf16.mxu0 %v9188_v11  ;;  %6359 = vmatpush1.bf16.msra.mxu1 %v7477_v24  ;;  %v7493_v11 = vcombine.low %v2900_v33, %v2904_v34  ;;  %v7406_v24 = vcombine.high %v2812_v1, %v2816_v2  ;;  %v2948_v33 = vld [vmem:[%s8810_s19 + $0x618] sm:$0xff] }
 0x55b   : > { %6390 = vmatprep.mubr.bf16.mxu1 %v9201_v18  ;;  %6319 = vmatprep.subr.bf16.mxu0 %v7358_v28  ;;  %v7502_v18 = vcombine.high %v2908_v44, %v2912_v45  ;;  %v2952_v34 = vld [vmem:[%s8810_s19 + $0x638] sm:$0xff] }
 0x55c   : > { %6360 = vmatprep.subr.bf16.mxu1 %v7486_v32  ;;  %v2824_v32 = vld [vmem:[%s8810_s19 + $0x238] sm:$0xff] }
 0x55d   : > { %6320 = vmatpush1.bf16.msra.mxu0 %v7357_v35  ;;  %v7405_v35 = vcombine.low %v2812_v1, %v2816_v2  ;;  %v2956_v44 = vld [vmem:[%s8810_s19 + $0x658] sm:$0xff] }
 0x55e   : > { %6361 = vmatpush1.bf16.msra.mxu1 %v7485_v36  ;;  %6321 = vmatprep.subr.bf16.mxu0 %v7366_v38  ;;  %v7533_v36 = vcombine.low %v2940_v6, %v2944_v7  ;;  %v7414_v38 = vcombine.high %v2820_v31, %v2824_v32  ;;  %v2960_v45 = vld [vmem:[%s8810_s19 + $0x678] sm:$0xff] }
 0x55f   : > { %6362 = vmatprep.subr.bf16.mxu1 %v7494_v39  ;;  %v7542_v39 = vcombine.high %v2948_v33, %v2952_v34  ;;  %v2980_v60 = vld [vmem:[%s8810_s19 + $0x718] sm:$0xff] }
 0x560   : > { %v2984_v27 = vld [vmem:[%s8810_s19 + $0x738] sm:$0xff] }
 0x561   : > { %6322 = vmatpush1.bf16.msra.mxu0 %v7365_v47  ;;  %v7413_v47 = vcombine.low %v2820_v31, %v2824_v32  ;;  %v2864_v1 = vld [vmem:[%s8810_s19 + $0x378] sm:$0xff]  ;;  %v7573_v6 = vcombine.low %v2980_v60, %v2984_v27 }
 0x562   : > { %6363 = vmatpush1.bf16.msra.mxu1 %v7493_v11  ;;  %6323 = vmatprep.subr.bf16.mxu0 %v7374_v48  ;;  %v7541_v11 = vcombine.low %v2948_v33, %v2952_v34  ;;  %v7422_v48 = vcombine.high %v2828_v40, %v2832_v43  ;;  %v2988_v2 = vld [vmem:[%s8810_s19 + $0x758] sm:$0xff] }
 0x563   : > { %6364 = vmatprep.subr.bf16.mxu1 %v7502_v18  ;;  %v7550_v18 = vcombine.high %v2956_v44, %v2960_v45  ;;  %v2876_v31 = vld [vmem:[%s8810_s19 + $0x3d8] sm:$0xff] }
 0x564   : > { %v2880_v32 = vld [vmem:[%s8810_s19 + $0x3f8] sm:$0xff] }
 0x565   : > { %6324 = vmatpush1.bf16.msra.mxu0 %v7373_v52  ;;  %v7421_v52 = vcombine.low %v2828_v40, %v2832_v43  ;;  %v3004_v33 = vld [vmem:[%s8810_s19 + $0x7d8] sm:$0xff] }
 0x566   : > { %6365 = vmatpush1.bf16.msra.mxu1 %v7501_v53  ;;  %6325 = vmatprep.subr.bf16.mxu0 %v7382_v54  ;;  %v7549_v53 = vcombine.low %v2956_v44, %v2960_v45  ;;  %v7430_v54 = vcombine.high %v2836_v49, %v2840_v37  ;;  %v3008_v34 = vld [vmem:[%s8810_s19 + $0x7f8] sm:$0xff] }
 0x567   : > { %6366 = vmatprep.subr.bf16.mxu1 %v7510_v55  ;;  %v7558_v55 = vcombine.high %v2964_v50, %v2968_v51  ;;  %v3012_v40 = vld [vmem:[%s8810_s19 + $0x818] sm:$0xff] }
 0x568   : > { %v3016_v43 = vld [vmem:[%s8810_s19 + $0x838] sm:$0xff] }
 0x569   : > { %6326 = vmatpush1.bf16.msra.mxu0 %v7381_v17  ;;  %v7429_v17 = vcombine.low %v2836_v49, %v2840_v37  ;;  %v3140_v44 = vld [vmem:[%s8810_s19 + $0xc18] sm:$0xff] }
 0x56a   : > { %6367 = vmatpush1.bf16.msra.mxu1 %v7509_v21  ;;  %6327 = vmatprep.subr.bf16.mxu0 %v7390_v57  ;;  %v7557_v21 = vcombine.low %v2964_v50, %v2968_v51  ;;  %v7438_v57 = vcombine.high %v2844_v56, %v2848_v16  ;;  %v3144_v45 = vld [vmem:[%s8810_s19 + $0xc38] sm:$0xff]  ;;  %v7605_v50 = vcombine.low %v3012_v40, %v3016_v43 }
 0x56b   : > { %v6023_v8 = vpop.f32.mrb[20].mxu0  ;;  %6368 = vmatprep.subr.bf16.mxu1 %v7518_v26  ;;  %v6064_v3 = vpop.f32.mrb[20].mxu1  ;;  %v7566_v26 = vcombine.high %v2972_v15, %v2976_v25  ;;  %v3020_v49 = vld [vmem:[%s8810_s19 + $0x858] sm:$0xff] }
 0x56c   : > { %v6025_v4 = vpop.f32.mrb[21].mxu0  ;;  %v9600_v9 = vadd.f32 %v6064_v3, %v6023_v8  ;;  %v6066_v10 = vpop.f32.mrb[21].mxu1  ;;  %v7574_v8 = vcombine.high %v2980_v60, %v2984_v27  ;;  %v2992_v3 = vld [vmem:[%s8810_s19 + $0x778] sm:$0xff] }
 0x56d   : > { %v6027_v13 = vpop.f32.mrb[22].mxu0  ;;  %6328 = vmatpush1.bf16.msra.mxu0 %v7389_v61  ;;  %v9602_v19 = vadd.f32 %v6066_v10, %v6025_v4  ;;  %v6068_v20 = vpop.f32.mrb[22].mxu1  ;;  %v7437_v61 = vcombine.low %v2844_v56, %v2848_v16  ;;  %v7445_v4 = vcombine.low %v2852_v58, %v2856_v59  ;;  %v7582_v10 = vcombine.high %v2988_v2, %v2992_v3  ;;  %v3024_v37 = vld [vmem:[%s8810_s19 + $0x878] sm:$0xff] }
 0x56e   : > { %6369 = vmatpush1.bf16.msra.mxu1 %v7517_v62  ;;  %v6028_v22 = vpop.f32.mrb[23].mxu0  ;;  %6329 = vmatprep.subr.bf16.mxu0 %v7398_v63  ;;  %v6069_v28 = vpop.f32.mrb[23].mxu1  ;;  %v7565_v62 = vcombine.low %v2972_v15, %v2976_v25  ;;  %v7446_v63 = vcombine.high %v2852_v58, %v2856_v59  ;;  %v2868_v13 = vld [vmem:[%s8810_s19 + $0x398] sm:$0xff] }
 0x56f   : > { %6370 = vmatprep.subr.bf16.mxu1 %v7526_v0  ;;  %v2860_v0 = vld [vmem:[%s8810_s19 + $0x358] sm:$0xff] }
 0x570   : > { %v7454_v7 = vcombine.high %v2860_v0, %v2864_v1  ;;  %v2996_v20 = vld [vmem:[%s8810_s19 + $0x798] sm:$0xff] }
 0x571   : > { %6330 = vmatpush1.bf16.msra.mxu0 %v7397_v14  ;;  %v2872_v14 = vld [vmem:[%s8810_s19 + $0x3b8] sm:$0xff] }
 0x572   : > { %6371 = vmatpush1.bf16.msra.mxu1 %v7525_v23  ;;  %6331 = vmatprep.subr.bf16.mxu0 %v7406_v24  ;;  %v3000_v22 = vld [vmem:[%s8810_s19 + $0x7b8] sm:$0xff]  ;;  %v7453_v23 = vcombine.low %v2860_v0, %v2864_v1  ;;  %v7581_v24 = vcombine.low %v2988_v2, %v2992_v3  ;;  %v7462_v28 = vcombine.high %v2868_v13, %v2872_v14 }
 0x573   : > { %6372 = vmatprep.subr.bf16.mxu1 %v7534_v29  ;;  %v7590_v29 = vcombine.high %v2996_v20, %v3000_v22  ;;  %v3148_v51 = vld [vmem:[%s8810_s19 + $0xc58] sm:$0xff] }
 0x574   : > { %v3032_v56 = vld [vmem:[%s8810_s19 + $0x8b8] sm:$0xff] }
 0x575   : > { %6332 = vmatpush1.bf16.msra.mxu0 %v7405_v35  ;;  %v7461_v35 = vcombine.low %v2868_v13, %v2872_v14  ;;  %v3156_v15 = vld [vmem:[%s8810_s19 + $0xc98] sm:$0xff] }
 0x576   : > { %6373 = vmatpush1.bf16.msra.mxu1 %v7533_v36  ;;  %6333 = vmatprep.subr.bf16.mxu0 %v7414_v38  ;;  %v7589_v36 = vcombine.low %v2996_v20, %v3000_v22  ;;  %v7470_v38 = vcombine.high %v2876_v31, %v2880_v32  ;;  %v3160_v25 = vld [vmem:[%s8810_s19 + $0xcb8] sm:$0xff] }
 0x577   : > { %6374 = vmatprep.subr.bf16.mxu1 %v7542_v39  ;;  %v7598_v39 = vcombine.high %v3004_v33, %v3008_v34  ;;  %v3040_v58 = vld [vmem:[%s8810_s19 + $0x8f8] sm:$0xff] }
 0x578   : > { %v3164_v59 = vld [vmem:[%s8810_s19 + $0xcd8] sm:$0xff] }
 0x579   : > { %6334 = vmatpush1.bf16.msra.mxu0 %v7413_v47  ;;  %v7469_v47 = vcombine.low %v2876_v31, %v2880_v32 }
 0x57a   : > { %6375 = vmatpush1.bf16.msra.mxu1 %v7541_v11  ;;  %6335 = vmatprep.subr.bf16.mxu0 %v7422_v48  ;;  %v7597_v11 = vcombine.low %v3004_v33, %v3008_v34  ;;  %v7606_v48 = vcombine.high %v3012_v40, %v3016_v43 }
 0x57b   : > { %6376 = vmatprep.subr.bf16.mxu1 %v7550_v18  ;;  %v7734_v18 = vcombine.high %v3140_v44, %v3144_v45 }
 0x57d   : > { %6336 = vmatpush1.bf16.msra.mxu0 %v7421_v52  ;;  %v3152_v52 = vld [vmem:[%s8810_s19 + $0xc78] sm:$0xff] }
 0x57e   : > { %6377 = vmatpush1.bf16.msra.mxu1 %v7549_v53  ;;  %6337 = vmatprep.subr.bf16.mxu0 %v7430_v54  ;;  %v7733_v53 = vcombine.low %v3140_v44, %v3144_v45  ;;  %v7614_v54 = vcombine.high %v3020_v49, %v3024_v37  ;;  %v7742_v16 = vcombine.high %v3148_v51, %v3152_v52  ;;  %v3196_v44 = vld [vmem:[%s8810_s19 + $0xdd8] sm:$0xff] }
 0x57f   : > { %6378 = vmatprep.subr.bf16.mxu1 %v7558_v55  ;;  %v3028_v55 = vld [vmem:[%s8810_s19 + $0x898] sm:$0xff] }
 0x580   : > { %v7621_v60 = vcombine.low %v3028_v55, %v3032_v56  ;;  %v3200_v45 = vld [vmem:[%s8810_s19 + $0xdf8] sm:$0xff] }
 0x581   : > { %6338 = vmatpush1.bf16.msra.mxu0 %v7429_v17  ;;  %v7613_v17 = vcombine.low %v3020_v49, %v3024_v37 }
 0x582   : > { %6379 = vmatpush1.bf16.msra.mxu1 %v7557_v21  ;;  %6339 = vmatprep.subr.bf16.mxu0 %v7438_v57  ;;  %v7741_v21 = vcombine.low %v3148_v51, %v3152_v52  ;;  %v7622_v57 = vcombine.high %v3028_v55, %v3032_v56  ;;  %v3076_v56 = vld [vmem:[%s8810_s19 + $0xa18] sm:$0xff] }
 0x583   : > { %6380 = vmatprep.subr.bf16.mxu1 %v7566_v26  ;;  %v3036_v26 = vld [vmem:[%s8810_s19 + $0x8d8] sm:$0xff] }
 0x584   : > { %v7630_v27 = vcombine.high %v3036_v26, %v3040_v58  ;;  %v7629_v0 = vcombine.low %v3036_v26, %v3040_v58 }
 0x585   : > { %6340 = vmatpush1.bf16.msra.mxu0 %v7437_v61  ;;  %v3044_v61 = vld [vmem:[%s8810_s19 + $0x918] sm:$0xff] }
 0x586   : > { %6381 = vmatpush1.bf16.msra.mxu1 %v7565_v62  ;;  %6341 = vmatprep.subr.bf16.mxu0 %v7446_v63  ;;  %v3048_v62 = vld [vmem:[%s8810_s19 + $0x938] sm:$0xff] }
 0x587   : > { %6382 = vmatprep.subr.bf16.mxu1 %v7574_v8  ;;  %v3172_v63 = vld [vmem:[%s8810_s19 + $0xd18] sm:$0xff]  ;;  %v7638_v2 = vcombine.high %v3044_v61, %v3048_v62  ;;  %v7637_v13 = vcombine.low %v3044_v61, %v3048_v62 }
 0x588   : > { %v3176_v8 = vld [vmem:[%s8810_s19 + $0xd38] sm:$0xff] }
 0x589   : > { %6342 = vmatpush1.bf16.msra.mxu0 %v7445_v4  ;;  %v7766_v3 = vcombine.high %v3172_v63, %v3176_v8  ;;  %v3052_v4 = vld [vmem:[%s8810_s19 + $0x958] sm:$0xff]  ;;  %v7765_v14 = vcombine.low %v3172_v63, %v3176_v8 }
 0x58a   : > { %6383 = vmatpush1.bf16.msra.mxu1 %v7573_v6  ;;  %6343 = vmatprep.subr.bf16.mxu0 %v7454_v7  ;;  %v3056_v6 = vld [vmem:[%s8810_s19 + $0x978] sm:$0xff] }
 0x58b   : > { %6384 = vmatprep.subr.bf16.mxu1 %v7582_v10  ;;  %v3180_v7 = vld [vmem:[%s8810_s19 + $0xd58] sm:$0xff]  ;;  %v7646_v20 = vcombine.high %v3052_v4, %v3056_v6  ;;  %v7645_v31 = vcombine.low %v3052_v4, %v3056_v6 }
 0x58c   : > { %v3184_v10 = vld [vmem:[%s8810_s19 + $0xd78] sm:$0xff] }
 0x58d   : > { %6344 = vmatpush1.bf16.msra.mxu0 %v7453_v23  ;;  %v7774_v22 = vcombine.high %v3180_v7, %v3184_v10  ;;  %v3060_v23 = vld [vmem:[%s8810_s19 + $0x998] sm:$0xff]  ;;  %v7773_v32 = vcombine.low %v3180_v7, %v3184_v10 }
 0x58e   : > { %6385 = vmatpush1.bf16.msra.mxu1 %v7581_v24  ;;  %6345 = vmatprep.subr.bf16.mxu0 %v7462_v28  ;;  %v3064_v24 = vld [vmem:[%s8810_s19 + $0x9b8] sm:$0xff] }
 0x58f   : > { %6386 = vmatprep.subr.bf16.mxu1 %v7590_v29  ;;  %v3188_v28 = vld [vmem:[%s8810_s19 + $0xd98] sm:$0xff]  ;;  %v7654_v33 = vcombine.high %v3060_v23, %v3064_v24  ;;  %v7653_v49 = vcombine.low %v3060_v23, %v3064_v24 }
 0x590   : > { %v3192_v29 = vld [vmem:[%s8810_s19 + $0xdb8] sm:$0xff] }
 0x591   : > { %6346 = vmatpush1.bf16.msra.mxu0 %v7461_v35  ;;  %v7782_v35 = vcombine.high %v3188_v28, %v3192_v29  ;;  %v7781_v52 = vcombine.low %v3188_v28, %v3192_v29  ;;  %v3092_v63 = vld [vmem:[%s8810_s19 + $0xa98] sm:$0xff] }
 0x592   : > { %6387 = vmatpush1.bf16.msra.mxu1 %v7589_v36  ;;  %6347 = vmatprep.subr.bf16.mxu0 %v7470_v38  ;;  %v3068_v36 = vld [vmem:[%s8810_s19 + $0x9d8] sm:$0xff] }
 0x593   : > { %6388 = vmatprep.subr.bf16.mxu1 %v7598_v39  ;;  %v3072_v38 = vld [vmem:[%s8810_s19 + $0x9f8] sm:$0xff] }
 0x594   : > { %v3096_v8 = vld [vmem:[%s8810_s19 + $0xab8] sm:$0xff] }
 0x595   : > { %6348 = vmatpush1.bf16.msra.mxu0 %v7469_v47  ;;  %v2739_v47 = vld [vmem:[#allocation2 + $0x10] sm:$0xff]  ;;  %v7686_v4 = vcombine.high %v3092_v63, %v3096_v8  ;;  %v3100_v7 = vld [vmem:[%s8810_s19 + $0xad8] sm:$0xff] }
 0x596   : > { %6389 = vmatpush1.bf16.msra.mxu1 %v7597_v11  ;;  %6399 = vmatprep.subr.bf16.mxu0 %v7606_v48  ;;  %v3104_v10 = vld [vmem:[%s8810_s19 + $0xaf8] sm:$0xff] }
 0x597   : > { %6440 = vmatprep.subr.bf16.mxu1 %v7734_v18  ;;  %v7694_v23 = vcombine.high %v3100_v7, %v3104_v10  ;;  %v3108_v28 = vld [vmem:[%s8810_s19 + $0xb18] sm:$0xff] }
 0x598   : > { %6350 = vmatmul.mubr.bf16.vlgmr.msra.gmra.mrb[36].mxu0 %v9184_v5  ;;  %v7750_v5 = vcombine.high %v3156_v15, %v3160_v25  ;;  %v3112_v29 = vld [vmem:[%s8810_s19 + $0xb38] sm:$0xff] }
 0x599   : > { %6391 = vmatmul.mubr.bf16.vlgmr.msra.gmra.mrb[36].mxu1 %v9190_v12  ;;  %6400 = vmatpush1.bf16.msra.mxu0 %v7605_v50  ;;  %v3168_v12 = vld [vmem:[%s8810_s19 + $0xcf8] sm:$0xff]  ;;  %v2740_v50 = vld [vmem:[#allocation2 + $0x18] sm:$0xff] }
 0x59a   : > { %6431 = vmatprep.mubr.bf16.mxu0 %v9278_v42  ;;  %6441 = vmatpush1.bf16.msra.mxu1 %v7733_v53  ;;  %v7749_v42 = vcombine.low %v3156_v15, %v3160_v25  ;;  %v7757_v1 = vcombine.low %v3164_v59, %v3168_v12  ;;  %v7662_v53 = vcombine.high %v3068_v36, %v3072_v38  ;;  %v3204_v25 = vld [vmem:[%s8810_s19 + $0xe18] sm:$0xff] }
 0x59b   : > { %6472 = vmatprep.mubr.bf16.mxu1 %v9284_v46  ;;  %6401 = vmatprep.subr.bf16.mxu0 %v7614_v54  ;;  %v7758_v46 = vcombine.high %v3164_v59, %v3168_v12  ;;  %v3084_v59 = vld [vmem:[%s8810_s19 + $0xa58] sm:$0xff] }
 0x59c   : > { %6442 = vmatprep.subr.bf16.mxu1 %v7742_v16  ;;  %v3080_v16 = vld [vmem:[%s8810_s19 + $0xa38] sm:$0xff] }
 0x59d   : > { %6402 = vmatpush1.bf16.msra.mxu0 %v7613_v17  ;;  %v3208_v17 = vld [vmem:[%s8810_s19 + $0xe38] sm:$0xff]  ;;  %v7670_v26 = vcombine.high %v3076_v56, %v3080_v16 }
 0x59e   : > { %6443 = vmatpush1.bf16.msra.mxu1 %v7741_v21  ;;  %6403 = vmatprep.subr.bf16.mxu0 %v7622_v57  ;;  %v7661_v57 = vcombine.low %v3068_v36, %v3072_v38  ;;  %v7798_v58 = vcombine.high %v3204_v25, %v3208_v17  ;;  %v3088_v12 = vld [vmem:[%s8810_s19 + $0xa78] sm:$0xff] }
 0x59f   : > { %6444 = vmatprep.subr.bf16.mxu1 %v7750_v5  ;;  %v7789_v5 = vcombine.low %v3196_v44, %v3200_v45  ;;  %v7678_v61 = vcombine.high %v3084_v59, %v3088_v12  ;;  %v3116_v38 = vld [vmem:[%s8810_s19 + $0xb58] sm:$0xff] }
 0x5a1   : > { %6404 = vmatpush1.bf16.msra.mxu0 %v7621_v60  ;;  %v3212_v60 = vld [vmem:[%s8810_s19 + $0xe58] sm:$0xff] }
 0x5a2   : > { %6445 = vmatpush1.bf16.msra.mxu1 %v7749_v42  ;;  %6405 = vmatprep.subr.bf16.mxu0 %v7630_v27  ;;  %v3216_v42 = vld [vmem:[%s8810_s19 + $0xe78] sm:$0xff]  ;;  %v7669_v27 = vcombine.low %v3076_v56, %v3080_v16 }
 0x5a3   : > { %6446 = vmatprep.subr.bf16.mxu1 %v7758_v46  ;;  %v7797_v46 = vcombine.low %v3204_v25, %v3208_v17  ;;  %v7806_v62 = vcombine.high %v3212_v60, %v3216_v42 }
 0x5a5   : > { %6406 = vmatpush1.bf16.msra.mxu0 %v7629_v0  ;;  %v3220_v0 = vld [vmem:[%s8810_s19 + $0xe98] sm:$0xff] }
 0x5a6   : > { %6447 = vmatpush1.bf16.msra.mxu1 %v7757_v1  ;;  %6407 = vmatprep.subr.bf16.mxu0 %v7638_v2  ;;  %v3224_v1 = vld [vmem:[%s8810_s19 + $0xeb8] sm:$0xff]  ;;  %v7677_v2 = vcombine.low %v3084_v59, %v3088_v12 }
 0x5a7   : > { %6448 = vmatprep.subr.bf16.mxu1 %v7766_v3  ;;  %v7805_v3 = vcombine.low %v3212_v60, %v3216_v42  ;;  %v7814_v6 = vcombine.high %v3220_v0, %v3224_v1 }
 0x5a9   : > { %6408 = vmatpush1.bf16.msra.mxu0 %v7637_v13  ;;  %v3228_v13 = vld [vmem:[%s8810_s19 + $0xed8] sm:$0xff] }
 0x5aa   : > { %6449 = vmatpush1.bf16.msra.mxu1 %v7765_v14  ;;  %6409 = vmatprep.subr.bf16.mxu0 %v7646_v20  ;;  %v3232_v14 = vld [vmem:[%s8810_s19 + $0xef8] sm:$0xff]  ;;  %v7685_v20 = vcombine.low %v3092_v63, %v3096_v8 }
 0x5ab   : > { %v6105_v34 = vpop.f32.mrb[24].mxu0  ;;  %6450 = vmatprep.subr.bf16.mxu1 %v7774_v22  ;;  %v7813_v22 = vcombine.low %v3220_v0, %v3224_v1  ;;  %v7822_v24 = vcombine.high %v3228_v13, %v3232_v14  ;;  %v2741_v0 = vld [vmem:[#allocation2 + $0x20] sm:$0xff] }
 0x5ac   : > { %v6106_v39 = vadd.f32 %v6105_v34, %v9600_v9  ;;  %v6146_v40 = vpop.f32.mrb[24].mxu1  ;;  %v6107_v43 = vpop.f32.mrb[25].mxu0  ;;  %v7821_v34 = vcombine.low %v3228_v13, %v3232_v14 }
 0x5ad   : > { %v6108_v11 = vadd.f32 %v6107_v43, %v9602_v19  ;;  %v6148_v48 = vpop.f32.mrb[25].mxu1  ;;  %v6109_v18 = vpop.f32.mrb[26].mxu0  ;;  %6410 = vmatpush1.bf16.msra.mxu0 %v7645_v31  ;;  %v7790_v19 = vcombine.high %v3196_v44, %v3200_v45  ;;  %v3236_v31 = vld [vmem:[%s8810_s19 + $0xf18] sm:$0xff]  ;;  %v7701_v44 = vcombine.low %v3108_v28, %v3112_v29 }
 0x5ae   : > { %v6147_v37 = vadd.f32 %v6146_v40, %v6106_v39  ;;  %v6150_v51 = vpop.f32.mrb[26].mxu1  ;;  %6451 = vmatpush1.bf16.msra.mxu1 %v7773_v32  ;;  %v6110_v9 = vpop.f32.mrb[27].mxu0  ;;  %6411 = vmatprep.subr.bf16.mxu0 %v7654_v33  ;;  %v3240_v32 = vld [vmem:[%s8810_s19 + $0xf38] sm:$0xff]  ;;  %v7693_v33 = vcombine.low %v3100_v7, %v3104_v10 }
 0x5af   : > { %v6149_v54 = vadd.f32 %v6148_v48, %v6108_v11  ;;  %v6151_v55 = vpop.f32.mrb[27].mxu1  ;;  %6452 = vmatprep.subr.bf16.mxu1 %v7782_v35  ;;  %v7702_v35 = vcombine.high %v3108_v28, %v3112_v29  ;;  %v7830_v36 = vcombine.high %v3236_v31, %v3240_v32  ;;  %v3120_v39 = vld [vmem:[%s8810_s19 + $0xb78] sm:$0xff]  ;;  %v7829_v45 = vcombine.low %v3236_v31, %v3240_v32 }
 0x5b0   : > { %v6483_v15 = vadd.f32 %v6147_v37, %v2739_v47  ;;  %v3244_v40 = vld [vmem:[%s8810_s19 + $0xf58] sm:$0xff]  ;;  %v7710_v47 = vcombine.high %v3116_v38, %v3120_v39 }
 0x5b1   : > { %v6484_v21 = vadd.f32 %v6149_v54, %v2740_v50  ;;  %6412 = vmatpush1.bf16.msra.mxu0 %v7653_v49  ;;  %v3248_v43 = vld [vmem:[%s8810_s19 + $0xf78] sm:$0xff]  ;;  %v7709_v50 = vcombine.low %v3116_v38, %v3120_v39 }
 0x5b2   : > { %6491 = vst [vmem:[#allocation2 + $0x10] sm:$0xff] %v6483_v15  ;;  %6453 = vmatpush1.bf16.msra.mxu1 %v7781_v52  ;;  %6413 = vmatprep.subr.bf16.mxu0 %v7662_v53  ;;  %v7838_v11 = vcombine.high %v3244_v40, %v3248_v43  ;;  %v3124_v48 = vld [vmem:[%s8810_s19 + $0xb98] sm:$0xff]  ;;  %v7837_v51 = vcombine.low %v3244_v40, %v3248_v43  ;;  %v2743_v40 = vld [vmem:[#allocation2 + $0x30] sm:$0xff] }
 0x5b3   : > { %6492 = vst [vmem:[#allocation2 + $0x18] sm:$0xff] %v6484_v21  ;;  %6454 = vmatprep.subr.bf16.mxu1 %v7790_v19  ;;  %v3128_v18 = vld [vmem:[%s8810_s19 + $0xbb8] sm:$0xff] }
 0x5b4   : > { %v3252_v49 = vld [vmem:[%s8810_s19 + $0xf98] sm:$0xff]  ;;  %v7718_v9 = vcombine.high %v3124_v48, %v3128_v18  ;;  %v7717_v56 = vcombine.low %v3124_v48, %v3128_v18 }
 0x5b5   : > { %6414 = vmatpush1.bf16.msra.mxu0 %v7661_v57  ;;  %v3256_v37 = vld [vmem:[%s8810_s19 + $0xfb8] sm:$0xff] }
 0x5b6   : > { %6455 = vmatpush1.bf16.msra.mxu1 %v7789_v5  ;;  %6415 = vmatprep.subr.bf16.mxu0 %v7670_v26  ;;  %v7846_v52 = vcombine.high %v3252_v49, %v3256_v37  ;;  %v3132_v53 = vld [vmem:[%s8810_s19 + $0xbd8] sm:$0xff]  ;;  %v7845_v16 = vcombine.low %v3252_v49, %v3256_v37 }
 0x5b7   : > { %6456 = vmatprep.subr.bf16.mxu1 %v7798_v58  ;;  %v3136_v54 = vld [vmem:[%s8810_s19 + $0xbf8] sm:$0xff] }
 0x5b8   : > { %v3260_v55 = vld [vmem:[%s8810_s19 + $0xfd8] sm:$0xff]  ;;  %v7726_v15 = vcombine.high %v3132_v53, %v3136_v54  ;;  %v7725_v17 = vcombine.low %v3132_v53, %v3136_v54 }
 0x5b9   : > { %6416 = vmatpush1.bf16.msra.mxu0 %v7669_v27  ;;  %v3264_v19 = vld [vmem:[%s8810_s19 + $0xff8] sm:$0xff] }
 0x5ba   : > { %6457 = vmatpush1.bf16.msra.mxu1 %v7797_v46  ;;  %6417 = vmatprep.subr.bf16.mxu0 %v7678_v61  ;;  %v7854_v25 = vcombine.high %v3260_v55, %v3264_v19  ;;  %v7853_v21 = vcombine.low %v3260_v55, %v3264_v19  ;;  %v6517_v53 = vld [vmem:[%s10134_s5] sm:$0xff] (!%p7855_p12)  ;;  %v6518_v55 = vld [vmem:[%s10134_s5 + $0x8] sm:$0xff] (!%p7855_p12) }
 0x5bb   : > { %6458 = vmatprep.subr.bf16.mxu1 %v7806_v62  ;;  %v6565_v19 = vld [vmem:[%s10134_s5 + $0x180] sm:$0xff] (!%p7855_p12) }
 0x5bd   : > { %6418 = vmatpush1.bf16.msra.mxu0 %v7677_v2 }
 0x5be   : > { %6459 = vmatpush1.bf16.msra.mxu1 %v7805_v3  ;;  %6419 = vmatprep.subr.bf16.mxu0 %v7686_v4 }
 0x5bf   : > { %6460 = vmatprep.subr.bf16.mxu1 %v7814_v6 }
 0x5c1   : > { %6420 = vmatpush1.bf16.msra.mxu0 %v7685_v20 }
 0x5c2   : > { %6461 = vmatpush1.bf16.msra.mxu1 %v7813_v22  ;;  %6421 = vmatprep.subr.bf16.mxu0 %v7694_v23 }
 0x5c3   : > { %6462 = vmatprep.subr.bf16.mxu1 %v7822_v24 }
 0x5c5   : > { %6422 = vmatpush1.bf16.msra.mxu0 %v7693_v33 }
 0x5c6   : > { %6463 = vmatpush1.bf16.msra.mxu1 %v7821_v34  ;;  %6423 = vmatprep.subr.bf16.mxu0 %v7702_v35 }
 0x5c7   : > { %6464 = vmatprep.subr.bf16.mxu1 %v7830_v36 }
 0x5c9   : > { %6424 = vmatpush1.bf16.msra.mxu0 %v7701_v44 }
 0x5ca   : > { %6465 = vmatpush1.bf16.msra.mxu1 %v7829_v45  ;;  %6425 = vmatprep.subr.bf16.mxu0 %v7710_v47 }
 0x5cb   : > { %6466 = vmatprep.subr.bf16.mxu1 %v7838_v11  ;;  %v2744_v11 = vld [vmem:[#allocation2 + $0x38] sm:$0xff] }
 0x5cd   : > { %6426 = vmatpush1.bf16.msra.mxu0 %v7709_v50 }
 0x5ce   : > { %6467 = vmatpush1.bf16.msra.mxu1 %v7837_v51  ;;  %6427 = vmatprep.subr.bf16.mxu0 %v7718_v9  ;;  %v6533_v9 = vld [vmem:[%s10134_s5 + $0x80] sm:$0xff] (!%p7855_p12) }
 0x5cf   : > { %6468 = vmatprep.subr.bf16.mxu1 %v7846_v52  ;;  %v6534_v52 = vld [vmem:[%s10134_s5 + $0x88] sm:$0xff] (!%p7855_p12) }
 0x5d0   : > { %v8006_v54 = vpack.c.bf16 (!%p7855_p12), %v6534_v52, %v6533_v9  ;;  %v6527_v52 = vld [vmem:[%s10134_s5 + $0x50] sm:$0xff] (!%p7855_p12) }
 0x5d1   : > { %6428 = vmatpush1.bf16.msra.mxu0 %v7717_v56  ;;  %v6566_v56 = vld [vmem:[%s10134_s5 + $0x188] sm:$0xff] (!%p7855_p12) }
 0x5d2   : > { %6469 = vmatpush1.bf16.msra.mxu1 %v7845_v16  ;;  %6429 = vmatprep.subr.bf16.mxu0 %v7726_v15  ;;  %v8008_v16 = vpack.c.bf16 (!%p7855_p12), %v6518_v55, %v6517_v53  ;;  %v8038_v15 = vpack.c.bf16 (!%p7855_p12), %v6566_v56, %v6565_v19  ;;  %v6528_v53 = vld [vmem:[%s10134_s5 + $0x58] sm:$0xff] (!%p7855_p12)  ;;  %v6545_v56 = vld [vmem:[%s10134_s5 + $0xe0] sm:$0xff] (!%p7855_p12) }
 0x5d3   : > { %6470 = vmatprep.subr.bf16.mxu1 %v7854_v25  ;;  %v6549_v25 = vld [vmem:[%s10134_s5 + $0x100] sm:$0xff] (!%p7855_p12)  ;;  %v6560_v19 = vld [vmem:[%s10134_s5 + $0x158] sm:$0xff] (!%p7855_p12) }
 0x5d5   : > { %6430 = vmatpush1.bf16.msra.mxu0 %v7725_v17  ;;  %v6550_v17 = vld [vmem:[%s10134_s5 + $0x108] sm:$0xff] (!%p7855_p12) }
 0x5d6   : > { %6471 = vmatpush1.bf16.msra.mxu1 %v7853_v21  ;;  %v6535_v21 = vld [vmem:[%s10134_s5 + $0x90] sm:$0xff] (!%p7855_p12)  ;;  %8007 = vmatprep.subr.bf16.mxu0 (!%p7855_p12), %v8006_v54 }
 0x5d7   : > { %8039 = vmatprep.subr.bf16.mxu1 (!%p7855_p12), %v8038_v15  ;;  %v6559_v54 = vld [vmem:[%s10134_s5 + $0x150] sm:$0xff] (!%p7855_p12)  ;;  %v6577_v15 = vld [vmem:[%s10134_s5 + $0x1e0] sm:$0xff] (!%p7855_p12) }
 0x5d8   : > { %6432 = vmatmul.mubr.bf16.vlgmr.msra.gmra.mrb[40].mxu0 %v9282_v30 }
 0x5d9   : > { %6473 = vmatmul.mubr.bf16.vlgmr.msra.gmra.mrb[40].mxu1 %v9276_v41  ;;  %v2742_v41 = vld [vmem:[#allocation2 + $0x28] sm:$0xff]  ;;  %8009 = vmatpush3.bf16.msra.mxu0 (!%p7855_p12), %v8008_v16 }
 0x5da   : > { %v6546_v16 = vld [vmem:[%s10134_s5 + $0xe8] sm:$0xff] (!%p7855_p12) }
 0x5eb   : > { %v6187_v57 = vpop.f32.mrb[28].mxu0 }
 0x5ec   : > { %v6228_v5 = vpop.f32.mrb[28].mxu1  ;;  %v6189_v26 = vpop.f32.mrb[29].mxu0 }
 0x5ed   : > { %v6229_v58 = vadd.f32 %v6228_v5, %v6187_v57  ;;  %v6230_v59 = vpop.f32.mrb[29].mxu1  ;;  %v6191_v12 = vpop.f32.mrb[30].mxu0  ;;  %v8040_v57 = vpack.c.bf16 (!%p7855_p12), %v6550_v17, %v6549_v25  ;;  %v6536_v5 = vld [vmem:[%s10134_s5 + $0x98] sm:$0xff] (!%p7855_p12)  ;;  %v6578_v25 = vld [vmem:[%s10134_s5 + $0x1e8] sm:$0xff] (!%p7855_p12)  ;;  %v8028_v17 = vpack.c.bf16 (!%p7855_p12), %v6528_v53, %v6527_v52 }
 0x5ee   : > { %v6231_v60 = vadd.f32 %v6230_v59, %v6189_v26  ;;  %v6232_v42 = vpop.f32.mrb[30].mxu1  ;;  %v6192_v27 = vpop.f32.mrb[31].mxu0  ;;  %v6519_v26 = vld [vmem:[%s10134_s5 + $0x10] sm:$0xff] (!%p7855_p12)  ;;  %v8010_v59 = vpack.c.bf16 (!%p7855_p12), %v6536_v5, %v6535_v21  ;;  %v6529_v21 = vld [vmem:[%s10134_s5 + $0x60] sm:$0xff] (!%p7855_p12)  ;;  %v8060_v5 = vpack.c.bf16 (!%p7855_p12), %v6560_v19, %v6559_v54  ;;  %v6634_v52 = vld [vmem:[%s10134_s5 + $0x3a8] sm:$0xff] (!%p7855_p12) }
 0x5ef   : > { %v6233_v46 = vpop.f32.mrb[31].mxu1  ;;  %v6568_v42 = vld [vmem:[%s10134_s5 + $0x198] sm:$0xff] (!%p7855_p12)  ;;  %v6551_v27 = vld [vmem:[%s10134_s5 + $0x110] sm:$0xff] (!%p7855_p12)  ;;  %8041 = vmatpush3.bf16.msra.mxu1 (!%p7855_p12), %v8040_v57  ;;  %v6530_v57 = vld [vmem:[%s10134_s5 + $0x68] sm:$0xff] (!%p7855_p12) }
 0x5f0   : > { %8011 = vmatprep.subr.bf16.mxu0 (!%p7855_p12), %v8010_v59  ;;  %v6562_v59 = vld [vmem:[%s10134_s5 + $0x168] sm:$0xff] (!%p7855_p12)  ;;  %v6585_v19 = vld [vmem:[%s10134_s5 + $0x220] sm:$0xff] (!%p7855_p12) }
 0x62b   : > { %v6269_v61 = vpop.f32.mrb[32].mxu0 }
 0x62c   : > { %v6270_v62 = vadd.f32 %v6269_v61, %v6229_v58  ;;  %v6310_v63 = vpop.f32.mrb[32].mxu1  ;;  %v6271_v8 = vpop.f32.mrb[33].mxu0  ;;  %v6520_v58 = vld [vmem:[%s10134_s5 + $0x18] sm:$0xff] (!%p7855_p12) }
 0x62d   : > { %v6272_v1 = vadd.f32 %v6271_v8, %v6231_v60  ;;  %v6312_v2 = vpop.f32.mrb[33].mxu1  ;;  %v6273_v30 = vpop.f32.mrb[34].mxu0  ;;  %v8012_v12 = vpack.c.bf16 (!%p7855_p12), %v6520_v58, %v6519_v26  ;;  %v6567_v60 = vld [vmem:[%s10134_s5 + $0x190] sm:$0xff] (!%p7855_p12)  ;;  %v6552_v61 = vld [vmem:[%s10134_s5 + $0x118] sm:$0xff] (!%p7855_p12)  ;;  %v8030_v26 = vpack.c.bf16 (!%p7855_p12), %v6546_v16, %v6545_v56  ;;  %v6561_v58 = vld [vmem:[%s10134_s5 + $0x160] sm:$0xff] (!%p7855_p12) }
 0x62e   : > { %v6311_v3 = vadd.f32 %v6310_v63, %v6270_v62  ;;  %v6314_v4 = vpop.f32.mrb[34].mxu1  ;;  %v6274_v6 = vpop.f32.mrb[35].mxu0  ;;  %v8042_v46 = vpack.c.bf16 (!%p7855_p12), %v6568_v42, %v6567_v60  ;;  %v6537_v62 = vld [vmem:[%s10134_s5 + $0xa0] sm:$0xff] (!%p7855_p12)  ;;  %v6538_v63 = vld [vmem:[%s10134_s5 + $0xa8] sm:$0xff] (!%p7855_p12)  ;;  %v8044_v8 = vpack.c.bf16 (!%p7855_p12), %v6552_v61, %v6551_v27  ;;  %v8062_v60 = vpack.c.bf16 (!%p7855_p12), %v6578_v25, %v6577_v15  ;;  %v6547_v42 = vld [vmem:[%s10134_s5 + $0xf0] sm:$0xff] (!%p7855_p12) }
 0x62f   : > { %v6313_v7 = vadd.f32 %v6312_v2, %v6272_v1  ;;  %v6315_v10 = vpop.f32.mrb[35].mxu1  ;;  %v6521_v1 = vld [vmem:[%s10134_s5 + $0x20] sm:$0xff] (!%p7855_p12)  ;;  %v6522_v2 = vld [vmem:[%s10134_s5 + $0x28] sm:$0xff] (!%p7855_p12)  ;;  %8013 = vmatpush3.bf16.msra.mxu0 (!%p7855_p12), %v8012_v12  ;;  %v6548_v27 = vld [vmem:[%s10134_s5 + $0xf8] sm:$0xff] (!%p7855_p12) }
 0x630   : > { %v6485_v13 = vadd.f32 %v6311_v3, %v2741_v0  ;;  %v8014_v0 = vpack.c.bf16 (!%p7855_p12), %v6538_v63, %v6537_v62  ;;  %v6569_v30 = vld [vmem:[%s10134_s5 + $0x1a0] sm:$0xff] (!%p7855_p12)  ;;  %8043 = vmatprep.subr.bf16.mxu1 (!%p7855_p12), %v8042_v46  ;;  %v6570_v3 = vld [vmem:[%s10134_s5 + $0x1a8] sm:$0xff] (!%p7855_p12)  ;;  %v8016_v6 = vpack.c.bf16 (!%p7855_p12), %v6522_v2, %v6521_v1  ;;  %v6539_v10 = vld [vmem:[%s10134_s5 + $0xb0] sm:$0xff] (!%p7855_p12)  ;;  %v8064_v1 = vpack.c.bf16 (!%p7855_p12), %v6562_v59, %v6561_v58 }
 0x631   : > { %v6486_v14 = vadd.f32 %v6313_v7, %v2742_v41  ;;  %v6553_v41 = vld [vmem:[%s10134_s5 + $0x120] sm:$0xff] (!%p7855_p12)  ;;  %v6554_v4 = vld [vmem:[%s10134_s5 + $0x128] sm:$0xff] (!%p7855_p12)  ;;  %v8046_v7 = vpack.c.bf16 (!%p7855_p12), %v6570_v3, %v6569_v30  ;;  %8045 = vmatpush3.bf16.msra.mxu1 (!%p7855_p12), %v8044_v8  ;;  %v6504_v61 = vld [vmem:[#allocation2 + $0x18] sm:$0xff] (!%p7855_p12)  ;;  %v8034_v2 = vpack.c.bf16 (!%p7855_p12), %v6548_v27, %v6547_v42 }
 0x632   : > { %6493 = vst [vmem:[#allocation2 + $0x20] sm:$0xff] %v6485_v13  ;;  %v6540_v13 = vld [vmem:[%s10134_s5 + $0xb8] sm:$0xff] (!%p7855_p12)  ;;  %8015 = vmatprep.subr.bf16.mxu0 (!%p7855_p12), %v8014_v0  ;;  %v6502_v12 = vld [vmem:[#allocation2 + $0x8] sm:$0xff] (!%p7855_p12)  ;;  %v6579_v62 = vld [vmem:[%s10134_s5 + $0x1f0] sm:$0xff] (!%p7855_p12)  ;;  %v6512_v8 = vmax.f32 (!%p7855_p12), %v6504_v61, 0.0  ;;  %v8032_v0 = vpack.c.bf16 (!%p7855_p12), %v6530_v57, %v6529_v21 }
 0x633   : > { %6494 = vst [vmem:[#allocation2 + $0x28] sm:$0xff] %v6486_v14  ;;  %v6523_v14 = vld [vmem:[%s10134_s5 + $0x30] sm:$0xff] (!%p7855_p12)  ;;  %8047 = vmatprep.subr.bf16.mxu1 (!%p7855_p12), %v8046_v7  ;;  %8017 = vmatpush3.bf16.msra.mxu0 (!%p7855_p12), %v8016_v6  ;;  %v6510_v46 = vmax.f32 (!%p7855_p12), %v6502_v12, 0.0  ;;  %v6580_v63 = vld [vmem:[%s10134_s5 + $0x1f8] sm:$0xff] (!%p7855_p12)  ;;  %v6597_v7 = vld [vmem:[%s10134_s5 + $0x280] sm:$0xff] (!%p7855_p12) }
 0x634   : > { %v6531_v30 = vld [vmem:[%s10134_s5 + $0x70] sm:$0xff] (!%p7855_p12)  ;;  %v6532_v3 = vld [vmem:[%s10134_s5 + $0x78] sm:$0xff] (!%p7855_p12)  ;;  %6786 = vmatprep.mubr.f32.mxu1 (!%p7855_p12), %v6512_v8  ;;  %v6586_v56 = vld [vmem:[%s10134_s5 + $0x228] sm:$0xff] (!%p7855_p12) }
 0x635   : > { %6716 = vmatprep.mubr.f32.mxu0 (!%p7855_p12), %v6510_v46  ;;  %v6564_v6 = vld [vmem:[%s10134_s5 + $0x178] sm:$0xff] (!%p7855_p12)  ;;  %v6617_v16 = vld [vmem:[%s10134_s5 + $0x320] sm:$0xff] (!%p7855_p12)  ;;  %v6618_v25 = vld [vmem:[%s10134_s5 + $0x328] sm:$0xff] (!%p7855_p12) }
 0x636   : > { %v6604_v21 = vld [vmem:[%s10134_s5 + $0x2b8] sm:$0xff] (!%p7855_p12)  ;;  %v6635_v57 = vld [vmem:[%s10134_s5 + $0x3b0] sm:$0xff] (!%p7855_p12)  ;;  %v8112_v58 = vpack.c.bf16 (!%p7855_p12), %v6618_v25, %v6617_v16  ;;  %v6605_v61 = vld [vmem:[%s10134_s5 + $0x2c0] sm:$0xff] (!%p7855_p12) }
 0x637   : > { %v6587_v12 = vld [vmem:[%s10134_s5 + $0x230] sm:$0xff] (!%p7855_p12)  ;;  %v6620_v46 = vld [vmem:[%s10134_s5 + $0x338] sm:$0xff] (!%p7855_p12)  ;;  %v6638_v8 = vld [vmem:[%s10134_s5 + $0x3c8] sm:$0xff] (!%p7855_p12) }
 0x638   : > { %v6619_v42 = vld [vmem:[%s10134_s5 + $0x330] sm:$0xff] (!%p7855_p12)  ;;  %v6628_v25 = vld [vmem:[%s10134_s5 + $0x378] sm:$0xff] (!%p7855_p12) }
 0x66b   : > { %v6351_v20 = vpop.f32.mrb[36].mxu0 }
 0x66c   : > { %v6392_v22 = vpop.f32.mrb[36].mxu1  ;;  %v6353_v23 = vpop.f32.mrb[37].mxu0 }
 0x66d   : > { %v6393_v24 = vadd.f32 %v6392_v22, %v6351_v20  ;;  %v6394_v28 = vpop.f32.mrb[37].mxu1  ;;  %v6355_v29 = vpop.f32.mrb[38].mxu0  ;;  %v8048_v20 = vpack.c.bf16 (!%p7855_p12), %v6554_v4, %v6553_v41  ;;  %v8018_v22 = vpack.c.bf16 (!%p7855_p12), %v6540_v13, %v6539_v10  ;;  %v6563_v41 = vld [vmem:[%s10134_s5 + $0x170] sm:$0xff] (!%p7855_p12)  ;;  %v8066_v4 = vpack.c.bf16 (!%p7855_p12), %v6580_v63, %v6579_v62  ;;  %v6598_v10 = vld [vmem:[%s10134_s5 + $0x288] sm:$0xff] (!%p7855_p12)  ;;  %v6629_v13 = vld [vmem:[%s10134_s5 + $0x380] sm:$0xff] (!%p7855_p12) }
 0x66e   : > { %v6395_v31 = vadd.f32 %v6394_v28, %v6353_v23  ;;  %v6396_v32 = vpop.f32.mrb[38].mxu1  ;;  %v6356_v33 = vpop.f32.mrb[39].mxu0  ;;  %v6524_v23 = vld [vmem:[%s10134_s5 + $0x38] sm:$0xff] (!%p7855_p12)  ;;  %v6606_v62 = vld [vmem:[%s10134_s5 + $0x2c8] sm:$0xff] (!%p7855_p12)  ;;  %v6637_v63 = vld [vmem:[%s10134_s5 + $0x3c0] sm:$0xff] (!%p7855_p12) }
 0x66f   : > { %v6397_v34 = vpop.f32.mrb[39].mxu1  ;;  %v6572_v28 = vld [vmem:[%s10134_s5 + $0x1b8] sm:$0xff] (!%p7855_p12)  ;;  %v6541_v33 = vld [vmem:[%s10134_s5 + $0xc0] sm:$0xff] (!%p7855_p12)  ;;  %8049 = vmatpush3.bf16.msra.mxu1 (!%p7855_p12), %v8048_v20  ;;  %8019 = vmatprep.subr.bf16.mxu0 (!%p7855_p12), %v8018_v22  ;;  %v8036_v20 = vpack.c.bf16 (!%p7855_p12), %v6532_v3, %v6531_v30  ;;  %v8116_v30 = vpack.c.bf16 (!%p7855_p12), %v6620_v46, %v6619_v42  ;;  %v8086_v3 = vpack.c.bf16 (!%p7855_p12), %v6606_v62, %v6605_v61 }
 0x670   : > { %v6556_v32 = vld [vmem:[%s10134_s5 + $0x138] sm:$0xff] (!%p7855_p12)  ;;  %v6542_v34 = vld [vmem:[%s10134_s5 + $0xc8] sm:$0xff] (!%p7855_p12)  ;;  %v6501_v22 = vld [vmem:[#allocation2] sm:$0xff] (!%p7855_p12) }
 0x6ab   : > { %v6433_v35 = vpop.f32.mrb[40].mxu0 }
 0x6ac   : > { %v6434_v36 = vadd.f32 %v6433_v35, %v6393_v24  ;;  %v6474_v38 = vpop.f32.mrb[40].mxu1  ;;  %v6435_v39 = vpop.f32.mrb[41].mxu0  ;;  %v6571_v24 = vld [vmem:[%s10134_s5 + $0x1b0] sm:$0xff] (!%p7855_p12)  ;;  %v8020_v35 = vpack.c.bf16 (!%p7855_p12), %v6524_v23, %v6523_v14  ;;  %v6630_v14 = vld [vmem:[%s10134_s5 + $0x388] sm:$0xff] (!%p7855_p12)  ;;  %v6581_v23 = vld [vmem:[%s10134_s5 + $0x200] sm:$0xff] (!%p7855_p12) }
 0x6ad   : > { %v6436_v43 = vadd.f32 %v6435_v39, %v6395_v31  ;;  %v6476_v44 = vpop.f32.mrb[41].mxu1  ;;  %v6437_v45 = vpop.f32.mrb[42].mxu0  ;;  %6500 = sbr.rel (%p7855_p12) target bundleno = 1994 (0x7ca), region = 80  ;;  %v8050_v29 = vpack.c.bf16 (!%p7855_p12), %v6572_v28, %v6571_v24  ;;  %v6555_v31 = vld [vmem:[%s10134_s5 + $0x130] sm:$0xff] (!%p7855_p12)  ;;  %v8068_v24 = vpack.c.bf16 (!%p7855_p12), %v6564_v6, %v6563_v41  ;;  %v8070_v28 = vpack.c.bf16 (!%p7855_p12), %v6598_v10, %v6597_v7  ;;  %v6589_v41 = vld [vmem:[%s10134_s5 + $0x240] sm:$0xff] (!%p7855_p12) }
 0x6ae   : > { %v6475_v47 = vadd.f32 %v6474_v38, %v6434_v36  ;;  %v6478_v48 = vpop.f32.mrb[42].mxu1  ;;  %v6438_v18 = vpop.f32.mrb[43].mxu0  ;;  %v6573_v36 = vld [vmem:[%s10134_s5 + $0x1c0] sm:$0xff] (!%p7855_p12)  ;;  %v6574_v38 = vld [vmem:[%s10134_s5 + $0x1c8] sm:$0xff] (!%p7855_p12)  ;;  %v8052_v39 = vpack.c.bf16 (!%p7855_p12), %v6556_v32, %v6555_v31  ;;  %8021 = vmatpush3.bf16.msra.mxu0 (!%p7855_p12), %v8020_v35  ;;  %v6503_v31 = vld [vmem:[#allocation2 + $0x10] sm:$0xff] (!%p7855_p12) }
 0x6af   : > { %v6477_v49 = vadd.f32 %v6476_v44, %v6436_v43  ;;  %v6479_v37 = vpop.f32.mrb[43].mxu1  ;;  %v6525_v43 = vld [vmem:[%s10134_s5 + $0x40] sm:$0xff] (!%p7855_p12)  ;;  %v6526_v44 = vld [vmem:[%s10134_s5 + $0x48] sm:$0xff] (!%p7855_p12)  ;;  %8051 = vmatprep.subr.bf16.mxu1 (!%p7855_p12), %v8050_v29  ;;  %v6543_v48 = vld [vmem:[%s10134_s5 + $0xd0] sm:$0xff] (!%p7855_p12) }
 0x6b0   : > { %v6487_v50 = vadd.f32 %v6475_v47, %v2743_v40  ;;  %v8022_v40 = vpack.c.bf16 (!%p7855_p12), %v6542_v34, %v6541_v33  ;;  %v6557_v45 = vld [vmem:[%s10134_s5 + $0x140] sm:$0xff] (!%p7855_p12)  ;;  %v8054_v47 = vpack.c.bf16 (!%p7855_p12), %v6574_v38, %v6573_v36  ;;  %v6544_v18 = vld [vmem:[%s10134_s5 + $0xd8] sm:$0xff] (!%p7855_p12)  ;;  %8053 = vmatpush3.bf16.msra.mxu1 (!%p7855_p12), %v8052_v39  ;;  %v6582_v29 = vld [vmem:[%s10134_s5 + $0x208] sm:$0xff] (!%p7855_p12)  ;;  %v8102_v33 = vpack.c.bf16 (!%p7855_p12), %v6630_v14, %v6629_v13 }
 0x6b1   : > { %v6488_v51 = vadd.f32 %v6477_v49, %v2744_v11  ;;  %v6558_v11 = vld [vmem:[%s10134_s5 + $0x148] sm:$0xff] (!%p7855_p12)  ;;  %v6575_v49 = vld [vmem:[%s10134_s5 + $0x1d0] sm:$0xff] (!%p7855_p12)  ;;  %v6576_v37 = vld [vmem:[%s10134_s5 + $0x1d8] sm:$0xff] (!%p7855_p12)  ;;  %v8026_v9 = vpack.c.bf16 (!%p7855_p12), %v6544_v18, %v6543_v48  ;;  %v6509_v38 = vmax.f32 (!%p7855_p12), %v6501_v22, 0.0  ;;  %v8118_v13 = vpack.c.bf16 (!%p7855_p12), %v6638_v8, %v6637_v63 }
 0x6b2   : > { %6495 = vst [vmem:[#allocation2 + $0x30] sm:$0xff] %v6487_v50  ;;  %v8024_v50 = vpack.c.bf16 (!%p7855_p12), %v6526_v44, %v6525_v43  ;;  %8023 = vmatprep.subr.bf16.mxu0 (!%p7855_p12), %v8022_v40  ;;  %8055 = vmatprep.subr.bf16.mxu1 (!%p7855_p12), %v8054_v47  ;;  %v8058_v55 = vpack.c.bf16 (!%p7855_p12), %v6576_v37, %v6575_v49  ;;  %v6613_v32 = vld [vmem:[%s10134_s5 + $0x300] sm:$0xff] (!%p7855_p12)  ;;  %v6614_v34 = vld [vmem:[%s10134_s5 + $0x308] sm:$0xff] (!%p7855_p12)  ;;  %v6599_v35 = vld [vmem:[%s10134_s5 + $0x290] sm:$0xff] (!%p7855_p12)  ;;  %v6511_v44 = vmax.f32 (!%p7855_p12), %v6503_v31, 0.0 }
 0x6b3   : > { %6496 = vst [vmem:[#allocation2 + $0x38] sm:$0xff] %v6488_v51  ;;  %v8056_v51 = vpack.c.bf16 (!%p7855_p12), %v6558_v11, %v6557_v45  ;;  %v6600_v36 = vld [vmem:[%s10134_s5 + $0x298] sm:$0xff] (!%p7855_p12)  ;;  %v6631_v39 = vld [vmem:[%s10134_s5 + $0x390] sm:$0xff] (!%p7855_p12)  ;;  %v8072_v43 = vpack.c.bf16 (!%p7855_p12), %v6582_v29, %v6581_v23  ;;  %v8104_v45 = vpack.c.bf16 (!%p7855_p12), %v6614_v34, %v6613_v32  ;;  %v6621_v6 = vld [vmem:[%s10134_s5 + $0x340] sm:$0xff] (!%p7855_p12) }
 0x6b4   : > { %8025 = vmatpush3.bf16.msra.mxu0 %v8024_v50  ;;  %v6632_v40 = vld [vmem:[%s10134_s5 + $0x398] sm:$0xff]  ;;  %v8074_v47 = vpack.c.bf16 %v6600_v36, %v6599_v35  ;;  %v6583_v11 = vld [vmem:[%s10134_s5 + $0x210] sm:$0xff]  ;;  %v6601_v50 = vld [vmem:[%s10134_s5 + $0x2a0] sm:$0xff] }
 0x6b5   : > { %8057 = vmatpush3.bf16.msra.mxu1 %v8056_v51  ;;  %8027 = vmatprep.subr.bf16.mxu0 %v8026_v9  ;;  %v6584_v48 = vld [vmem:[%s10134_s5 + $0x218] sm:$0xff]  ;;  %v6615_v18 = vld [vmem:[%s10134_s5 + $0x310] sm:$0xff]  ;;  %v8106_v49 = vpack.c.bf16 %v6632_v40, %v6631_v39  ;;  %v6602_v51 = vld [vmem:[%s10134_s5 + $0x2a8] sm:$0xff] }
 0x6b6   : > { %8059 = vmatprep.subr.bf16.mxu1 %v8058_v55  ;;  %v6616_v37 = vld [vmem:[%s10134_s5 + $0x318] sm:$0xff]  ;;  %v6633_v9 = vld [vmem:[%s10134_s5 + $0x3a0] sm:$0xff]  ;;  %v8076_v53 = vpack.c.bf16 %v6584_v48, %v6583_v11  ;;  %v8078_v55 = vpack.c.bf16 %v6602_v51, %v6601_v50  ;;  %v6622_v14 = vld [vmem:[%s10134_s5 + $0x348] sm:$0xff] }
 0x6b7   : > { %v8108_v54 = vpack.c.bf16 %v6616_v37, %v6615_v18  ;;  %v8110_v15 = vpack.c.bf16 %v6634_v52, %v6633_v9  ;;  %v6608_v22 = vld [vmem:[%s10134_s5 + $0x2d8] sm:$0xff]  ;;  %v6639_v23 = vld [vmem:[%s10134_s5 + $0x3d0] sm:$0xff]  ;;  %v8120_v29 = vpack.c.bf16 %v6622_v14, %v6621_v6  ;;  %v6610_v39 = vld [vmem:[%s10134_s5 + $0x2e8] sm:$0xff] }
 0x6b8   : > { %8029 = vmatpush3.bf16.msra.mxu0 %v8028_v17  ;;  %v6603_v17 = vld [vmem:[%s10134_s5 + $0x2b0] sm:$0xff]  ;;  %v6624_v36 = vld [vmem:[%s10134_s5 + $0x358] sm:$0xff]  ;;  %v6641_v40 = vld [vmem:[%s10134_s5 + $0x3e0] sm:$0xff] }
 0x6b9   : > { %8061 = vmatpush3.bf16.msra.mxu1 %v8060_v5  ;;  %8031 = vmatprep.subr.bf16.mxu0 %v8030_v26  ;;  %v6636_v5 = vld [vmem:[%s10134_s5 + $0x3b8] sm:$0xff]  ;;  %v8080_v26 = vpack.c.bf16 %v6586_v56, %v6585_v19  ;;  %v8082_v59 = vpack.c.bf16 %v6604_v21, %v6603_v17  ;;  %v6591_v32 = vld [vmem:[%s10134_s5 + $0x250] sm:$0xff]  ;;  %v6593_v11 = vld [vmem:[%s10134_s5 + $0x260] sm:$0xff] }
 0x6ba   : > { %8063 = vmatprep.subr.bf16.mxu1 %v8062_v60  ;;  %v6588_v60 = vld [vmem:[%s10134_s5 + $0x238] sm:$0xff]  ;;  %v8114_v27 = vpack.c.bf16 %v6636_v5, %v6635_v57  ;;  %v6623_v34 = vld [vmem:[%s10134_s5 + $0x350] sm:$0xff]  ;;  %v6594_v48 = vld [vmem:[%s10134_s5 + $0x268] sm:$0xff] }
 0x6bb   : > { %v6625_v18 = vld [vmem:[%s10134_s5 + $0x360] sm:$0xff]  ;;  %v6626_v37 = vld [vmem:[%s10134_s5 + $0x368] sm:$0xff]  ;;  %v6611_v50 = vld [vmem:[%s10134_s5 + $0x2f0] sm:$0xff] }
 0x6bc   : > { %8033 = vmatpush3.bf16.msra.mxu0 %v8032_v0  ;;  %v8084_v0 = vpack.c.bf16 %v6588_v60, %v6587_v12  ;;  %v6612_v51 = vld [vmem:[%s10134_s5 + $0x2f8] sm:$0xff]  ;;  %v6643_v9 = vld [vmem:[%s10134_s5 + $0x3f0] sm:$0xff]  ;;  %v6505_v21 = vld [vmem:[#allocation2 + $0x20] sm:$0xff] }
 0x6bd   : > { %8065 = vmatpush3.bf16.msra.mxu1 %v8064_v1  ;;  %8035 = vmatprep.subr.bf16.mxu0 %v8034_v2  ;;  %v6506_v1 = vld [vmem:[#allocation2 + $0x28] sm:$0xff]  ;;  %v6508_v2 = vld [vmem:[#allocation2 + $0x38] sm:$0xff]  ;;  %v6595_v19 = vld [vmem:[%s10134_s5 + $0x270] sm:$0xff] }
 0x6be   : > { %8067 = vmatprep.subr.bf16.mxu1 %v8066_v4  ;;  %v6590_v4 = vld [vmem:[%s10134_s5 + $0x248] sm:$0xff]  ;;  %v6514_v7 = vmax.f32 %v6506_v1, 0.0  ;;  %v6516_v10 = vmax.f32 %v6508_v2, 0.0  ;;  %v6644_v52 = vld [vmem:[%s10134_s5 + $0x3f8] sm:$0xff]  ;;  %v6507_v5 = vld [vmem:[#allocation2 + $0x30] sm:$0xff] }
 0x6bf   : > { %v6596_v56 = vld [vmem:[%s10134_s5 + $0x278] sm:$0xff]  ;;  %v8130_v16 = vpack.c.bf16 %v6644_v52, %v6643_v9  ;;  %v7856_v12 = vld [vmem:[#allocation14] ss:$0 sm:$0xff] }
 0x6c0   : > { %8037 = vmatpush3.bf16.msra.mxu0 %v8036_v20  ;;  %v6607_v20 = vld [vmem:[%s10134_s5 + $0x2d0] sm:$0xff]  ;;  %v8100_v17 = vpack.c.bf16 %v6596_v56, %v6595_v19 }
 0x6c1   : > { %8069 = vmatpush3.bf16.msra.mxu1 %v8068_v24  ;;  %8071 = vmatprep.subr.bf16.mxu0 %v8070_v28  ;;  %v6640_v24 = vld [vmem:[%s10134_s5 + $0x3d8] sm:$0xff]  ;;  %v8088_v28 = vpack.c.bf16 %v6590_v4, %v6589_v41  ;;  %v8090_v31 = vpack.c.bf16 %v6608_v22, %v6607_v20 }
 0x6c2   : > { %8103 = vmatprep.subr.bf16.mxu1 %v8102_v33  ;;  %v6592_v33 = vld [vmem:[%s10134_s5 + $0x258] sm:$0xff]  ;;  %v8122_v35 = vpack.c.bf16 %v6640_v24, %v6639_v23 }
 0x6c3   : > { %6717 = vmatmul.mubr.f32.vlgmr.msra.gmra.mrb[0].mxu0 %v6509_v38  ;;  %v6609_v38 = vld [vmem:[%s10134_s5 + $0x2e0] sm:$0xff] }
 0x6c4   : > { %8073 = vmatpush3.bf16.msra.mxu0 %v8072_v43  ;;  %6787 = vmatmul.mubr.f32.vlgmr.msra.gmra.mrb[0].mxu1 %v6511_v44  ;;  %v6642_v43 = vld [vmem:[%s10134_s5 + $0x3e8] sm:$0xff]  ;;  %v8092_v44 = vpack.c.bf16 %v6592_v33, %v6591_v32 }
 0x6c5   : > { %8105 = vmatpush3.bf16.msra.mxu1 %v8104_v45  ;;  %8075 = vmatprep.subr.bf16.mxu0 %v8074_v47  ;;  %v8124_v45 = vpack.c.bf16 %v6624_v36, %v6623_v34  ;;  %v8094_v47 = vpack.c.bf16 %v6610_v39, %v6609_v38 }
 0x6c6   : > { %8107 = vmatprep.subr.bf16.mxu1 %v8106_v49  ;;  %6856 = vmatprep.mubr.f32.mxu0 %v6514_v7  ;;  %v8126_v49 = vpack.c.bf16 %v6642_v43, %v6641_v40 }
 0x6c7   : > { %6926 = vmatprep.mubr.f32.mxu1 %v6516_v10 }
 0x6c8   : > { %8077 = vmatpush3.bf16.msra.mxu0 %v8076_v53  ;;  %v8096_v53 = vpack.c.bf16 %v6594_v48, %v6593_v11 }
 0x6c9   : > { %8109 = vmatpush3.bf16.msra.mxu1 %v8108_v54  ;;  %8079 = vmatprep.subr.bf16.mxu0 %v8078_v55  ;;  %v8128_v54 = vpack.c.bf16 %v6626_v37, %v6625_v18  ;;  %v8098_v55 = vpack.c.bf16 %v6612_v51, %v6611_v50 }
 0x6ca   : > { %8111 = vmatprep.subr.bf16.mxu1 %v8110_v15  ;;  %v6627_v15 = vld [vmem:[%s10134_s5 + $0x370] sm:$0xff] }
 0x6cb   : > { %v8132_v57 = vpack.c.bf16 %v6628_v25, %v6627_v15 }
 0x6cc   : > { %8081 = vmatpush3.bf16.msra.mxu0 %v8080_v26  ;;  %v6513_v26 = vmax.f32 %v6505_v21, 0.0 }
 0x6cd   : > { %8113 = vmatpush3.bf16.msra.mxu1 %v8112_v58  ;;  %8083 = vmatprep.subr.bf16.mxu0 %v8082_v59  ;;  %v6515_v58 = vmax.f32 %v6507_v5, 0.0 }
 0x6ce   : > { %8115 = vmatprep.subr.bf16.mxu1 %v8114_v27 }
 0x6d0   : > { %8085 = vmatpush3.bf16.msra.mxu0 %v8084_v0 }
 0x6d1   : > { %8117 = vmatpush3.bf16.msra.mxu1 %v8116_v30  ;;  %8087 = vmatprep.subr.bf16.mxu0 %v8086_v3 }
 0x6d2   : > { %8119 = vmatprep.subr.bf16.mxu1 %v8118_v13 }
 0x6d4   : > { %8089 = vmatpush3.bf16.msra.mxu0 %v8088_v28 }
 0x6d5   : > { %8121 = vmatpush3.bf16.msra.mxu1 %v8120_v29  ;;  %8091 = vmatprep.subr.bf16.mxu0 %v8090_v31 }
 0x6d6   : > { %8123 = vmatprep.subr.bf16.mxu1 %v8122_v35 }
 0x6d8   : > { %8093 = vmatpush3.bf16.msra.mxu0 %v8092_v44 }
 0x6d9   : > { %8125 = vmatpush3.bf16.msra.mxu1 %v8124_v45  ;;  %8095 = vmatprep.subr.bf16.mxu0 %v8094_v47 }
 0x6da   : > { %8127 = vmatprep.subr.bf16.mxu1 %v8126_v49 }
 0x6dc   : > { %8097 = vmatpush3.bf16.msra.mxu0 %v8096_v53 }
 0x6dd   : > { %8129 = vmatpush3.bf16.msra.mxu1 %v8128_v54  ;;  %8099 = vmatprep.subr.bf16.mxu0 %v8098_v55 }
 0x6de   : > { %8131 = vmatprep.subr.bf16.mxu1 %v8130_v16 }
 0x6e0   : > { %8101 = vmatpush3.bf16.msra.mxu0 %v8100_v17 }
 0x6e1   : > { %8133 = vmatpush3.bf16.msra.mxu1 %v8132_v57 }
 0x6e3   : > { %6857 = vmatmul.mubr.f32.vlgmr.msra.gmra.mrb[2].mxu0 %v6513_v26 }
 0x6e4   : > { %6927 = vmatmul.mubr.f32.vlgmr.msra.gmra.mrb[2].mxu1 %v6515_v58 }
 0x796   : > { %v7898_v59 = vpop.f32.mrb[0].mxu0 }
 0x797   : > { %v7899_v60 = vpop.f32.mrb[1].mxu0  ;;  %v7933_v42 = vpop.f32.mrb[0].mxu1 }
 0x798   : > { %v7900_v27 = vadd.f32 %v7899_v60, %v7898_v59  ;;  %v7934_v46 = vpop.f32.mrb[1].mxu1 }
 0x799   : > { %v7935_v61 = vadd.f32 %v7934_v46, %v7933_v42 }
 0x79a   : > { %v6719_v62 = vadd.f32 %v7900_v27, %v7856_v12 }
 0x79c   : > { %v6789_v63 = vadd.f32 %v7935_v61, %v6719_v62 }
 0x7b6   : > { %v7968_v8 = vpop.f32.mrb[2].mxu0 }
 0x7b7   : > { %v7969_v0 = vpop.f32.mrb[3].mxu0  ;;  %v8003_v1 = vpop.f32.mrb[2].mxu1 }
 0x7b8   : > { %v7970_v2 = vadd.f32 %v7969_v0, %v7968_v8  ;;  %v8004_v30 = vpop.f32.mrb[3].mxu1 }
 0x7b9   : > { %v8005_v3 = vadd.f32 %v8004_v30, %v8003_v1 }
 0x7ba   : > { %v6859_v41 = vadd.f32 %v7970_v2, %v6789_v63 }
 0x7bc   : > { %v6929_v4 = vadd.f32 %v8005_v3, %v6859_v41 }
 0x7be   : > { %8250 = vtanh.f32 %v6929_v4 }
 0x7c8   : > { %v8251_v6 = vpop.eup %8250 }
 0x7c9   : > { %6934 = vst.msk [vmem:[#allocation16] sm:$0xff] %vm6933_vm2, %v8251_v6 }
 0x7ca PF: > { %p8203_p2 = scmp.eq.s32.totalorder %s8572_s28, 1  ;;  %s8512_s3 = smov [#allocation16]  }
 0x7cb   : > { %s6942_s14 = sshll.u32 %s8512_s3, 4  ;;  %s6943_s14 = int_to_ptr.vmem [resolvable:$true] %s6942_s14 }
 0x7cc   : > { %s8424_s23 = scalar_lea.vmem %s6943_s14, 128  ;;  %p8431_p10 = scmp.lt.s32.totalorder %s6943_s14, %s6943_s14 }
 0x7cd   : > { %p8425_p1 = scmp.ne.s32.totalorder %s6943_s14, %s8424_s23  ;;  %p8432_p6 = scmp.lt.s32.totalorder %s8424_s23, %s8424_s23 }
 0x7cf   : > { %p8426_p8 = pnand %p8425_p1, %p8203_p2  ;;  %p8433_p9 = por %p8432_p6, %p8431_p10 }
 0x7d1   : > { %p8427_p5 = pneg %p8426_p8 }
 0x7d3   : > { %p8434_p11 = pnand %p8433_p9, %p8427_p5 }
 0x7d5   : > { %8437 = shalt.err (!%p8434_p11)
}
 0x7d6   : > { %s8438_s18 = scalar_lea.hbm %s10136_s7, 128 }
 0x7d7   : > { %p8439_p0 = scmp.ne.s32.totalorder %s10136_s7, %s8438_s18  ;;  %p8444_p7 = scmp.lt.u32.totalorder %s8438_s18, %s10136_s7 }
 0x7d9   : > { %p8440_p13 = pnand %p8439_p0, %p8203_p2 }
 0x7db   : > { %p8441_p3 = pneg %p8440_p13 }
 0x7dd   : > { %p8446_p4 = pnand %p8444_p7, %p8441_p3 }
 0x7df   : > { %8449 = shalt.err (!%p8446_p4)
}
 0x7e0   : > { %8171 = dma.vmem_to_hbm [thread:$0]  (%p8203_p2), %s6943_s14, 128, %s10136_s7, [#allocation7]  }
 0x7e1   : > { %8483 = dma.done.wait (%p8203_p2), [#allocation7], 128  }
 0x7e2   : > { %8485 = vsyncadd (%p8203_p2), [#allocation7], 4294967168 }
 0x7e3 PF: > { %s10174_s27 = sld [smem:[#allocation22_spill]]  ;;  %s10175_s22 = sld [smem:[#allocation23_spill]] }
 0x7e4   : > { %s10176_s24 = smov %s8492_s25  ;;  %s10177_s25 = smov %s8496_s26 }
 0x7e9   : > { %p21_p12 = scmp.ge.s32.totalorder %s10174_s27, 4   ;;  %s10178_s26 = smov %s10175_s22 }
 0x7eb   :  { %23 = sbr.rel (!%p21_p12) target bundleno = 10 (0xa), region = 121 }
 0x7f2   :  { %6955 = vsyncpa [#allocation6], 1 }
 0x7f3   :  { %6957 = vsyncpa [#allocation6 + $0x1], 1 }
 0x7f4   :  { %6958 = vsyncpa [#allocation9], 1 }
 0x7f5   :  { %6959 = vsyncpa [#allocation12], 1 }
 0x7f6   :  { %6961 = vsyncpa [#allocation12 + $0x1], 1 }
 0x7f7   :  { %6962 = vsyncpa [#allocation15], 1 }
 0x7f8   :  { %6963 = vsyncpa [#allocation7], 1 }
 0x7f9   :  { %6965 = vsyncpa [#allocation7 + $0x1], 1 }

</bundles_post_ra>
